<compile_context>
chip_gen: v5e
topology: v5e:2x2
jax: 0.10.0
libtpu: 0.0.40
codegen_flags: <defaults>
</compile_context>

<pallas_src>
import functools

import jax
import jax.numpy as jnp
from jax.experimental import pallas as pl
from jax.experimental.pallas import tpu as pltpu


NUM_CLASSES = 3                                  # synthetic (background + 2 classes)
NUM_ANCHORS = 4                                  # anchors per spatial location
C1, C2, C3 = 16, 32, 64                          # backbone channel widths
HEAD_C = NUM_ANCHORS * (NUM_CLASSES + 4)         # fused cls+reg head channels = 28
LANE = 128


def _round_up(x, m):
    return (x + m - 1) // m * m


# ----------------------------- Pallas kernel ------------------------------- #

def _fused_matmul_kernel(a_ref, b_ref, bias_ref, o_ref, *, apply_relu):
    # One (tm, Kp)bf16 x (Kp, Np)bf16 tile matmul on the MXU, f32 accumulate,
    # fused bias add + optional ReLU.
    acc = jnp.dot(a_ref[...], b_ref[...], preferred_element_type=jnp.float32)
    acc = acc + bias_ref[...]
    if apply_relu:
        acc = jnp.maximum(acc, 0.0)
    o_ref[...] = acc.astype(o_ref.dtype)


def _choose_tm(M, Kp, Np):
    """Largest M-tile that still leaves >=2 grid steps (v7x megacore), else M."""
    tm = M
    for cand in (1024, 512, 256, 128):
        if M % cand == 0 and M // cand >= 2:
            tm = cand
            break
    # VMEM guard (v7x: 64 MiB physical, 32 MiB default scoped limit):
    # double-buffered bf16 A tile + resident bf16 W + double-buffered f32 out.
    vmem_est = 2 * tm * Kp * 2 + Kp * Np * 2 + 2 * tm * Np * 4
    assert vmem_est < 24 * 1024 * 1024, (
        f"tile ({tm},{Kp})x({Kp},{Np}) would need ~{vmem_est} B of VMEM")
    return tm


def matmul_bias_act(a, w_p, bias_p, *, apply_relu, out_dtype):
    """a: (M, K) bf16; w_p: (Kp, Np) bf16 pre-padded; bias_p: (1, Np) f32.

    Returns the padded (M, Np) result (caller slices valid columns).
    """
    M, K = a.shape
    Kp, Np = w_p.shape
    assert M % 8 == 0, f"M={M} must be a multiple of 8"
    if K != Kp:                      # zero-pad K (benign: matching weight rows are 0)
        a = jnp.pad(a, ((0, 0), (0, Kp - K)))

    tm = _choose_tm(M, Kp, Np)
    grid = (M // tm,)

    kernel = functools.partial(_fused_matmul_kernel, apply_relu=apply_relu)
    out = pl.pallas_call(
        kernel,
        out_shape=jax.ShapeDtypeStruct((M, Np), out_dtype),
        grid_spec=pltpu.PrefetchScalarGridSpec(
            num_scalar_prefetch=0,
            grid=grid,
            in_specs=[
                pl.BlockSpec((tm, Kp), lambda i: (i, 0)),   # patches tile (bf16)
                pl.BlockSpec((Kp, Np), lambda i: (0, 0)),   # full weight (bf16)
                pl.BlockSpec((1, Np), lambda i: (0, 0)),    # bias row (f32)
            ],
            out_specs=pl.BlockSpec((tm, Np), lambda i: (i, 0)),
        ),
        compiler_params=pltpu.CompilerParams(
            dimension_semantics=("parallel",)),
    )(a, w_p, bias_p)
    return out


# --------------------------- conv / pool wrappers --------------------------- #

def conv2d_pallas(x_nhwc, w_p, bias_p, cout, *, apply_relu, out_dtype):
    """3x3 'same' conv, stride 1 -> im2col (glue) + fused Pallas GEMM (hot path)."""
    n, h, w, cin = x_nhwc.shape
    kh = kw = 3
    xp = jnp.pad(x_nhwc.astype(jnp.bfloat16), ((0, 0), (1, 1), (1, 1), (0, 0)))
    cols = []
    for di in range(kh):
        for dj in range(kw):
            cols.append(xp[:, di:di + h, dj:dj + w, :])
    patches = jnp.concatenate(cols, axis=-1)               # (n, h, w, 9*cin) bf16
    a = patches.reshape(n * h * w, kh * kw * cin)
    out = matmul_bias_act(a, w_p, bias_p, apply_relu=apply_relu, out_dtype=out_dtype)
    return out[:, :cout].reshape(n, h, w, cout)


def maxpool2x2(x_nhwc):
    # Lightweight glue (not the hot path).
    n, h, w, c = x_nhwc.shape
    return x_nhwc.reshape(n, h // 2, 2, w // 2, 2, c).max(axis=(2, 4))


# ------------------------------ parameters ---------------------------------- #

def init_params(key):
    """Raw per-layer f32 parameters (stand-in for the checkpoint)."""
    def conv_init(k, kh, kw, cin, cout, scale=0.05):
        kw_, kb_ = jax.random.split(k)
        w = scale * jax.random.normal(kw_, (kh, kw, cin, cout), jnp.float32)
        b = 0.01 * jax.random.normal(kb_, (cout,), jnp.float32)
        return w, b

    keys = jax.random.split(key, 7)
    p = {}
    p["conv1_w"], p["conv1_b"] = conv_init(keys[0], 3, 3, 3, C1)
    p["conv2_w"], p["conv2_b"] = conv_init(keys[1], 3, 3, C1, C2)
    p["conv3_w"], p["conv3_b"] = conv_init(keys[2], 3, 3, C2, C3)
    # Detection heads (per feature scale): cls -> A*K channels, reg -> A*4.
    p["cls1_w"], p["cls1_b"] = conv_init(keys[3], 3, 3, C2, NUM_ANCHORS * NUM_CLASSES)
    p["reg1_w"], p["reg1_b"] = conv_init(keys[4], 3, 3, C2, NUM_ANCHORS * 4)
    p["cls2_w"], p["cls2_b"] = conv_init(keys[5], 3, 3, C3, NUM_ANCHORS * NUM_CLASSES)
    p["reg2_w"], p["reg2_b"] = conv_init(keys[6], 3, 3, C3, NUM_ANCHORS * 4)
    return p


def pack_params(params):
    """One-time weight prep: fuse cls+reg heads, reshape to (K, N), zero-pad to
    (Kp, Np) with 128-multiples, cast to bf16; bias -> (1, Np) f32."""
    def pack(w_hwio, b):
        kh, kw, cin, cout = w_hwio.shape
        k = kh * kw * cin
        kp, np_ = _round_up(k, LANE), _round_up(cout, LANE)
        w_p = jnp.zeros((kp, np_), jnp.bfloat16)
        w_p = w_p.at[:k, :cout].set(w_hwio.reshape(k, cout).astype(jnp.bfloat16))
        b_p = jnp.zeros((1, np_), jnp.float32).at[0, :cout].set(b.astype(jnp.float32))
        return w_p, b_p

    packed = {
        "conv1": pack(params["conv1_w"], params["conv1_b"]),
        "conv2": pack(params["conv2_w"], params["conv2_b"]),
        "conv3": pack(params["conv3_w"], params["conv3_b"]),
    }
    # Fuse cls+reg heads per scale: they share the exact same im2col patches,
    # so a single GEMM with concatenated output channels serves both.
    for i in (1, 2):
        w = jnp.concatenate([params[f"cls{i}_w"], params[f"reg{i}_w"]], axis=3)
        b = jnp.concatenate([params[f"cls{i}_b"], params[f"reg{i}_b"]], axis=0)
        packed[f"head{i}"] = pack(w, b)
    return packed


# ------------------------------ Detector model ------------------------------ #

def _flatten_head(x_nhwc, k):
    # torchvision SSDHead: (N, A*K, H, W) -> permute (N, H, W, A*K) -> view (N, -1, K).
    # Our NHWC output is already (N, H, W, A*K).
    n = x_nhwc.shape[0]
    return x_nhwc.reshape(n, -1, k)


def detector_forward(packed, x_nchw):
    """Mini SSD forward. x_nchw: (N, 3, 32, 32) float32."""
    x = jnp.transpose(x_nchw, (0, 2, 3, 1))                                   # NHWC

    # VGG-style backbone (all conv compute inside the Pallas GEMM kernel);
    # activations kept in bf16 between layers.
    h = conv2d_pallas(x, *packed["conv1"], C1, apply_relu=True, out_dtype=jnp.bfloat16)
    h = maxpool2x2(h)                                                         # (N,16,16,16)
    h = conv2d_pallas(h, *packed["conv2"], C2, apply_relu=True, out_dtype=jnp.bfloat16)
    feat1 = maxpool2x2(h)                                                     # (N, 8, 8,32)
    h = conv2d_pallas(feat1, *packed["conv3"], C3, apply_relu=True, out_dtype=jnp.bfloat16)
    feat2 = maxpool2x2(h)                                                     # (N, 4, 4,64)

    # Multi-scale detection heads: one fused cls+reg conv per scale (f32 logits).
    head1 = conv2d_pallas(feat1, *packed["head1"], HEAD_C, apply_relu=False,
                          out_dtype=jnp.float32)
    head2 = conv2d_pallas(feat2, *packed["head2"], HEAD_C, apply_relu=False,
                          out_dtype=jnp.float32)

    c_cls = NUM_ANCHORS * NUM_CLASSES
    cls1, reg1 = head1[..., :c_cls], head1[..., c_cls:]
    cls2, reg2 = head2[..., :c_cls], head2[..., c_cls:]

    cls_logits = jnp.concatenate(
        [_flatten_head(cls1, NUM_CLASSES), _flatten_head(cls2, NUM_CLASSES)], axis=1)
    bbox_regression = jnp.concatenate(
        [_flatten_head(reg1, 4), _flatten_head(reg2, 4)], axis=1)

    # TODO(synk): eval-mode torchvision returns decoded, NMS-filtered boxes;
    # we return the raw SSD head outputs instead.
    return {"cls_logits": cls_logits, "bbox_regression": bbox_regression}


# ------------------------- pure-JAX f32 reference --------------------------- #

def _conv_ref(x, w, b, relu):
    n, h, wd, cin = x.shape
    kh, kw, _, cout = w.shape
    xp = jnp.pad(x, ((0, 0), (1, 1), (1, 1), (0, 0)))
    cols = [xp[:, di:di + h, dj:dj + wd, :] for di in range(kh) for dj in range(kw)]
    patches = jnp.concatenate(cols, axis=-1).reshape(n * h * wd, kh * kw * cin)
    o = patches @ w.reshape(kh * kw * cin, cout) + b
    if relu:
        o = jnp.maximum(o, 0.0)
    return o.reshape(n, h, wd, cout)


def reference_forward(params, x_nchw):
    x = jnp.transpose(x_nchw, (0, 2, 3, 1))
    h = _conv_ref(x, params["conv1_w"], params["conv1_b"], True)
    h = maxpool2x2(h)
    h = _conv_ref(h, params["conv2_w"], params["conv2_b"], True)
    feat1 = maxpool2x2(h)
    h = _conv_ref(feat1, params["conv3_w"], params["conv3_b"], True)
    feat2 = maxpool2x2(h)
    cls1 = _conv_ref(feat1, params["cls1_w"], params["cls1_b"], False)
    reg1 = _conv_ref(feat1, params["reg1_w"], params["reg1_b"], False)
    cls2 = _conv_ref(feat2, params["cls2_w"], params["cls2_b"], False)
    reg2 = _conv_ref(feat2, params["reg2_w"], params["reg2_b"], False)
    cls_logits = jnp.concatenate(
        [_flatten_head(cls1, NUM_CLASSES), _flatten_head(cls2, NUM_CLASSES)], axis=1)
    bbox_regression = jnp.concatenate(
        [_flatten_head(reg1, 4), _flatten_head(reg2, 4)], axis=1)
    return {"cls_logits": cls_logits, "bbox_regression": bbox_regression}


# ----------------------------------- main ----------------------------------- #

if __name__ == "__main__":
    key = jax.random.PRNGKey(0)
    k_params, k_x = jax.random.split(key)
    params = init_params(k_params)
    packed = pack_params(params)    # one-time prep: fuse heads, pad, cast to bf16

    # Small input consistent with the module's NCHW image input (image_size shrunk).
    x = jax.random.uniform(k_x, (2, 3, 32, 32), jnp.float32)

    fwd = jax.jit(detector_forward)
    out = jax.block_until_ready(fwd(packed, x))

    n_anchors_total = NUM_ANCHORS * (8 * 8 + 4 * 4)
    assert out["cls_logits"].shape == (2, n_anchors_total, NUM_CLASSES)
    assert out["bbox_regression"].shape == (2, n_anchors_total, 4)

    ref = reference_forward(params, x)
    for name in ("cls_logits", "bbox_regression"):
        assert jnp.all(jnp.isfinite(out[name]))
        err = float(jnp.max(jnp.abs(out[name] - ref[name])))
        assert err < 3e-2, f"{name} max abs err {err} vs f32 reference"

    print("KERNEL_OK")
</pallas_src>

<mosaic_0001>
module attributes {stable_mosaic.version = 11 : i64} {
  func.func @_fused_matmul_kernel(%arg0: i32, %arg1: memref<1024x128xbf16, #tpu.memory_space<vmem>>, %arg2: memref<128x128xbf16, #tpu.memory_space<vmem>>, %arg3: memref<1x128xf32, #tpu.memory_space<vmem>>, %arg4: memref<1024x128xbf16, #tpu.memory_space<vmem>>) attributes {dimension_semantics = [#tpu.dimension_semantics<parallel>], iteration_bounds = array<i64: 2>, scalar_prefetch = 0 : i64, scratch_operands = 0 : i64, tpu.core_type = #tpu.core_type<tc>, window_params = [{transform_indices = @transform_0, window_bounds = array<i64: 1024, 128>}, {pipeline_mode = #tpu.pipeline_mode<synchronous>, transform_indices = @transform_1, window_bounds = array<i64: 128, 128>}, {pipeline_mode = #tpu.pipeline_mode<synchronous>, transform_indices = @transform_2, window_bounds = array<i64: 1, 128>}, {transform_indices = @transform_3, window_bounds = array<i64: 1024, 128>}]} {
    %c0 = arith.constant 0 : index
    %c0_0 = arith.constant 0 : index
    %0 = vector.load %arg1[%c0, %c0_0] : memref<1024x128xbf16, #tpu.memory_space<vmem>>, vector<1024x128xbf16>
    %c0_1 = arith.constant 0 : index
    %c0_2 = arith.constant 0 : index
    %1 = vector.load %arg2[%c0_1, %c0_2] : memref<128x128xbf16, #tpu.memory_space<vmem>>, vector<128x128xbf16>
    %cst = arith.constant dense<0.000000e+00> : vector<1024x128xf32>
    %2 = tpu.matmul %0, %1, %cst {dimension_numbers = #tpu.dot_dimension_numbers<[1], [0], [0], [1], [0, 0, 1, 1], [], []>} : vector<1024x128xbf16>, vector<128x128xbf16>, vector<1024x128xf32> -> vector<1024x128xf32>
    %c0_3 = arith.constant 0 : index
    %c0_4 = arith.constant 0 : index
    %3 = vector.load %arg3[%c0_3, %c0_4] : memref<1x128xf32, #tpu.memory_space<vmem>>, vector<1x128xf32>
    %4 = vector.broadcast %3 : vector<1x128xf32> to vector<1024x128xf32>
    %5 = arith.addf %2, %4 : vector<1024x128xf32>
    %cst_5 = arith.constant 0.000000e+00 : f32
    %6 = vector.broadcast %cst_5 : f32 to vector<1024x128xf32>
    %7 = arith.maximumf %5, %6 : vector<1024x128xf32>
    %8 = arith.truncf %7 : vector<1024x128xf32> to vector<1024x128xbf16>
    %c0_6 = arith.constant 0 : index
    %c0_7 = arith.constant 0 : index
    %9 = vector.load %arg4[%c0_6, %c0_7] : memref<1024x128xbf16, #tpu.memory_space<vmem>>, vector<1024x128xbf16>
    tpu.vector_store %arg4[%c0_6, %c0_7], %8 {strides = array<i32>} : memref<1024x128xbf16, #tpu.memory_space<vmem>>, vector<1024x128xbf16>,
    return
  }
  func.func @transform_0(%arg0: i32) -> (i32, i32) {
    %c0_i32 = arith.constant 0 : i32
    %c0_i32_0 = arith.constant 0 : i32
    return %arg0, %c0_i32 : i32, i32
  }
  func.func @transform_1(%arg0: i32) -> (i32, i32) {
    %c0_i32 = arith.constant 0 : i32
    %c0_i32_0 = arith.constant 0 : i32
    %c0_i32_1 = arith.constant 0 : i32
    return %c0_i32, %c0_i32_0 : i32, i32
  }
  func.func @transform_2(%arg0: i32) -> (i32, i32) {
    %c0_i32 = arith.constant 0 : i32
    %c0_i32_0 = arith.constant 0 : i32
    %c0_i32_1 = arith.constant 0 : i32
    return %c0_i32, %c0_i32_0 : i32, i32
  }
  func.func @transform_3(%arg0: i32) -> (i32, i32) {
    %c0_i32 = arith.constant 0 : i32
    %c0_i32_0 = arith.constant 0 : i32
    return %arg0, %c0_i32 : i32, i32
  }
}

module attributes {stable_mosaic.version = 11 : i64} {
  func.func @_fused_matmul_kernel(%arg0: i32, %arg1: memref<256x256xbf16, #tpu.memory_space<vmem>>, %arg2: memref<256x128xbf16, #tpu.memory_space<vmem>>, %arg3: memref<1x128xf32, #tpu.memory_space<vmem>>, %arg4: memref<256x128xbf16, #tpu.memory_space<vmem>>) attributes {dimension_semantics = [#tpu.dimension_semantics<parallel>], iteration_bounds = array<i64: 2>, scalar_prefetch = 0 : i64, scratch_operands = 0 : i64, tpu.core_type = #tpu.core_type<tc>, window_params = [{transform_indices = @transform_0, window_bounds = array<i64: 256, 256>}, {pipeline_mode = #tpu.pipeline_mode<synchronous>, transform_indices = @transform_1, window_bounds = array<i64: 256, 128>}, {pipeline_mode = #tpu.pipeline_mode<synchronous>, transform_indices = @transform_2, window_bounds = array<i64: 1, 128>}, {transform_indices = @transform_3, window_bounds = array<i64: 256, 128>}]} {
    %c0 = arith.constant 0 : index
    %c0_0 = arith.constant 0 : index
    %0 = vector.load %arg1[%c0, %c0_0] : memref<256x256xbf16, #tpu.memory_space<vmem>>, vector<256x256xbf16>
    %c0_1 = arith.constant 0 : index
    %c0_2 = arith.constant 0 : index
    %1 = vector.load %arg2[%c0_1, %c0_2] : memref<256x128xbf16, #tpu.memory_space<vmem>>, vector<256x128xbf16>
    %cst = arith.constant dense<0.000000e+00> : vector<256x128xf32>
    %2 = tpu.matmul %0, %1, %cst {dimension_numbers = #tpu.dot_dimension_numbers<[1], [0], [0], [1], [0, 0, 1, 1], [], []>} : vector<256x256xbf16>, vector<256x128xbf16>, vector<256x128xf32> -> vector<256x128xf32>
    %c0_3 = arith.constant 0 : index
    %c0_4 = arith.constant 0 : index
    %3 = vector.load %arg3[%c0_3, %c0_4] : memref<1x128xf32, #tpu.memory_space<vmem>>, vector<1x128xf32>
    %4 = vector.broadcast %3 : vector<1x128xf32> to vector<256x128xf32>
    %5 = arith.addf %2, %4 : vector<256x128xf32>
    %cst_5 = arith.constant 0.000000e+00 : f32
    %6 = vector.broadcast %cst_5 : f32 to vector<256x128xf32>
    %7 = arith.maximumf %5, %6 : vector<256x128xf32>
    %8 = arith.truncf %7 : vector<256x128xf32> to vector<256x128xbf16>
    %c0_6 = arith.constant 0 : index
    %c0_7 = arith.constant 0 : index
    %9 = vector.load %arg4[%c0_6, %c0_7] : memref<256x128xbf16, #tpu.memory_space<vmem>>, vector<256x128xbf16>
    tpu.vector_store %arg4[%c0_6, %c0_7], %8 {strides = array<i32>} : memref<256x128xbf16, #tpu.memory_space<vmem>>, vector<256x128xbf16>,
    return
  }
  func.func @transform_0(%arg0: i32) -> (i32, i32) {
    %c0_i32 = arith.constant 0 : i32
    %c0_i32_0 = arith.constant 0 : i32
    return %arg0, %c0_i32 : i32, i32
  }
  func.func @transform_1(%arg0: i32) -> (i32, i32) {
    %c0_i32 = arith.constant 0 : i32
    %c0_i32_0 = arith.constant 0 : i32
    %c0_i32_1 = arith.constant 0 : i32
    return %c0_i32, %c0_i32_0 : i32, i32
  }
  func.func @transform_2(%arg0: i32) -> (i32, i32) {
    %c0_i32 = arith.constant 0 : i32
    %c0_i32_0 = arith.constant 0 : i32
    %c0_i32_1 = arith.constant 0 : i32
    return %c0_i32, %c0_i32_0 : i32, i32
  }
  func.func @transform_3(%arg0: i32) -> (i32, i32) {
    %c0_i32 = arith.constant 0 : i32
    %c0_i32_0 = arith.constant 0 : i32
    return %arg0, %c0_i32 : i32, i32
  }
}

module attributes {stable_mosaic.version = 11 : i64} {
  func.func @_fused_matmul_kernel(%arg0: i32, %arg1: memref<128x384xbf16, #tpu.memory_space<vmem>>, %arg2: memref<384x128xbf16, #tpu.memory_space<vmem>>, %arg3: memref<1x128xf32, #tpu.memory_space<vmem>>, %arg4: memref<128x128xf32, #tpu.memory_space<vmem>>) attributes {dimension_semantics = [#tpu.dimension_semantics<parallel>], iteration_bounds = array<i64: 1>, scalar_prefetch = 0 : i64, scratch_operands = 0 : i64, tpu.core_type = #tpu.core_type<tc>, window_params = [{transform_indices = @transform_0, window_bounds = array<i64: 128, 384>}, {pipeline_mode = #tpu.pipeline_mode<synchronous>, transform_indices = @transform_1, window_bounds = array<i64: 384, 128>}, {pipeline_mode = #tpu.pipeline_mode<synchronous>, transform_indices = @transform_2, window_bounds = array<i64: 1, 128>}, {transform_indices = @transform_3, window_bounds = array<i64: 128, 128>}]} {
    %c0 = arith.constant 0 : index
    %c0_0 = arith.constant 0 : index
    %0 = vector.load %arg1[%c0, %c0_0] : memref<128x384xbf16, #tpu.memory_space<vmem>>, vector<128x384xbf16>
    %c0_1 = arith.constant 0 : index
    %c0_2 = arith.constant 0 : index
    %1 = vector.load %arg2[%c0_1, %c0_2] : memref<384x128xbf16, #tpu.memory_space<vmem>>, vector<384x128xbf16>
    %cst = arith.constant dense<0.000000e+00> : vector<128x128xf32>
    %2 = tpu.matmul %0, %1, %cst {dimension_numbers = #tpu.dot_dimension_numbers<[1], [0], [0], [1], [0, 0, 1, 1], [], []>} : vector<128x384xbf16>, vector<384x128xbf16>, vector<128x128xf32> -> vector<128x128xf32>
    %c0_3 = arith.constant 0 : index
    %c0_4 = arith.constant 0 : index
    %3 = vector.load %arg3[%c0_3, %c0_4] : memref<1x128xf32, #tpu.memory_space<vmem>>, vector<1x128xf32>
    %4 = vector.broadcast %3 : vector<1x128xf32> to vector<128x128xf32>
    %5 = arith.addf %2, %4 : vector<128x128xf32>
    %c0_5 = arith.constant 0 : index
    %c0_6 = arith.constant 0 : index
    %6 = vector.load %arg4[%c0_5, %c0_6] : memref<128x128xf32, #tpu.memory_space<vmem>>, vector<128x128xf32>
    tpu.vector_store %arg4[%c0_5, %c0_6], %5 {strides = array<i32>} : memref<128x128xf32, #tpu.memory_space<vmem>>, vector<128x128xf32>,
    return
  }
  func.func @transform_0(%arg0: i32) -> (i32, i32) {
    %c0_i32 = arith.constant 0 : i32
    %c0_i32_0 = arith.constant 0 : i32
    return %arg0, %c0_i32 : i32, i32
  }
  func.func @transform_1(%arg0: i32) -> (i32, i32) {
    %c0_i32 = arith.constant 0 : i32
    %c0_i32_0 = arith.constant 0 : i32
    %c0_i32_1 = arith.constant 0 : i32
    return %c0_i32, %c0_i32_0 : i32, i32
  }
  func.func @transform_2(%arg0: i32) -> (i32, i32) {
    %c0_i32 = arith.constant 0 : i32
    %c0_i32_0 = arith.constant 0 : i32
    %c0_i32_1 = arith.constant 0 : i32
    return %c0_i32, %c0_i32_0 : i32, i32
  }
  func.func @transform_3(%arg0: i32) -> (i32, i32) {
    %c0_i32 = arith.constant 0 : i32
    %c0_i32_0 = arith.constant 0 : i32
    return %arg0, %c0_i32 : i32, i32
  }
}

module attributes {stable_mosaic.version = 11 : i64} {
  func.func @_fused_matmul_kernel(%arg0: i32, %arg1: memref<128x384xbf16, #tpu.memory_space<vmem>>, %arg2: memref<384x128xbf16, #tpu.memory_space<vmem>>, %arg3: memref<1x128xf32, #tpu.memory_space<vmem>>, %arg4: memref<128x128xbf16, #tpu.memory_space<vmem>>) attributes {dimension_semantics = [#tpu.dimension_semantics<parallel>], iteration_bounds = array<i64: 1>, scalar_prefetch = 0 : i64, scratch_operands = 0 : i64, tpu.core_type = #tpu.core_type<tc>, window_params = [{transform_indices = @transform_0, window_bounds = array<i64: 128, 384>}, {pipeline_mode = #tpu.pipeline_mode<synchronous>, transform_indices = @transform_1, window_bounds = array<i64: 384, 128>}, {pipeline_mode = #tpu.pipeline_mode<synchronous>, transform_indices = @transform_2, window_bounds = array<i64: 1, 128>}, {transform_indices = @transform_3, window_bounds = array<i64: 128, 128>}]} {
    %c0 = arith.constant 0 : index
    %c0_0 = arith.constant 0 : index
    %0 = vector.load %arg1[%c0, %c0_0] : memref<128x384xbf16, #tpu.memory_space<vmem>>, vector<128x384xbf16>
    %c0_1 = arith.constant 0 : index
    %c0_2 = arith.constant 0 : index
    %1 = vector.load %arg2[%c0_1, %c0_2] : memref<384x128xbf16, #tpu.memory_space<vmem>>, vector<384x128xbf16>
    %cst = arith.constant dense<0.000000e+00> : vector<128x128xf32>
    %2 = tpu.matmul %0, %1, %cst {dimension_numbers = #tpu.dot_dimension_numbers<[1], [0], [0], [1], [0, 0, 1, 1], [], []>} : vector<128x384xbf16>, vector<384x128xbf16>, vector<128x128xf32> -> vector<128x128xf32>
    %c0_3 = arith.constant 0 : index
    %c0_4 = arith.constant 0 : index
    %3 = vector.load %arg3[%c0_3, %c0_4] : memref<1x128xf32, #tpu.memory_space<vmem>>, vector<1x128xf32>
    %4 = vector.broadcast %3 : vector<1x128xf32> to vector<128x128xf32>
    %5 = arith.addf %2, %4 : vector<128x128xf32>
    %cst_5 = arith.constant 0.000000e+00 : f32
    %6 = vector.broadcast %cst_5 : f32 to vector<128x128xf32>
    %7 = arith.maximumf %5, %6 : vector<128x128xf32>
    %8 = arith.truncf %7 : vector<128x128xf32> to vector<128x128xbf16>
    %c0_6 = arith.constant 0 : index
    %c0_7 = arith.constant 0 : index
    %9 = vector.load %arg4[%c0_6, %c0_7] : memref<128x128xbf16, #tpu.memory_space<vmem>>, vector<128x128xbf16>
    tpu.vector_store %arg4[%c0_6, %c0_7], %8 {strides = array<i32>} : memref<128x128xbf16, #tpu.memory_space<vmem>>, vector<128x128xbf16>,
    return
  }
  func.func @transform_0(%arg0: i32) -> (i32, i32) {
    %c0_i32 = arith.constant 0 : i32
    %c0_i32_0 = arith.constant 0 : i32
    return %arg0, %c0_i32 : i32, i32
  }
  func.func @transform_1(%arg0: i32) -> (i32, i32) {
    %c0_i32 = arith.constant 0 : i32
    %c0_i32_0 = arith.constant 0 : i32
    %c0_i32_1 = arith.constant 0 : i32
    return %c0_i32, %c0_i32_0 : i32, i32
  }
  func.func @transform_2(%arg0: i32) -> (i32, i32) {
    %c0_i32 = arith.constant 0 : i32
    %c0_i32_0 = arith.constant 0 : i32
    %c0_i32_1 = arith.constant 0 : i32
    return %c0_i32, %c0_i32_0 : i32, i32
  }
  func.func @transform_3(%arg0: i32) -> (i32, i32) {
    %c0_i32 = arith.constant 0 : i32
    %c0_i32_0 = arith.constant 0 : i32
    return %arg0, %c0_i32 : i32, i32
  }
}

module attributes {stable_mosaic.version = 11 : i64} {
  func.func @_fused_matmul_kernel(%arg0: i32, %arg1: memref<32x640xbf16, #tpu.memory_space<vmem>>, %arg2: memref<640x128xbf16, #tpu.memory_space<vmem>>, %arg3: memref<1x128xf32, #tpu.memory_space<vmem>>, %arg4: memref<32x128xf32, #tpu.memory_space<vmem>>) attributes {dimension_semantics = [#tpu.dimension_semantics<parallel>], iteration_bounds = array<i64: 1>, scalar_prefetch = 0 : i64, scratch_operands = 0 : i64, tpu.core_type = #tpu.core_type<tc>, window_params = [{transform_indices = @transform_0, window_bounds = array<i64: 32, 640>}, {pipeline_mode = #tpu.pipeline_mode<synchronous>, transform_indices = @transform_1, window_bounds = array<i64: 640, 128>}, {pipeline_mode = #tpu.pipeline_mode<synchronous>, transform_indices = @transform_2, window_bounds = array<i64: 1, 128>}, {transform_indices = @transform_3, window_bounds = array<i64: 32, 128>}]} {
    %c0 = arith.constant 0 : index
    %c0_0 = arith.constant 0 : index
    %0 = vector.load %arg1[%c0, %c0_0] : memref<32x640xbf16, #tpu.memory_space<vmem>>, vector<32x640xbf16>
    %c0_1 = arith.constant 0 : index
    %c0_2 = arith.constant 0 : index
    %1 = vector.load %arg2[%c0_1, %c0_2] : memref<640x128xbf16, #tpu.memory_space<vmem>>, vector<640x128xbf16>
    %cst = arith.constant dense<0.000000e+00> : vector<32x128xf32>
    %2 = tpu.matmul %0, %1, %cst {dimension_numbers = #tpu.dot_dimension_numbers<[1], [0], [0], [1], [0, 0, 1, 1], [], []>} : vector<32x640xbf16>, vector<640x128xbf16>, vector<32x128xf32> -> vector<32x128xf32>
    %c0_3 = arith.constant 0 : index
    %c0_4 = arith.constant 0 : index
    %3 = vector.load %arg3[%c0_3, %c0_4] : memref<1x128xf32, #tpu.memory_space<vmem>>, vector<1x128xf32>
    %4 = vector.broadcast %3 : vector<1x128xf32> to vector<32x128xf32>
    %5 = arith.addf %2, %4 : vector<32x128xf32>
    %c0_5 = arith.constant 0 : index
    %c0_6 = arith.constant 0 : index
    %6 = vector.load %arg4[%c0_5, %c0_6] : memref<32x128xf32, #tpu.memory_space<vmem>>, vector<32x128xf32>
    tpu.vector_store %arg4[%c0_5, %c0_6], %5 {strides = array<i32>} : memref<32x128xf32, #tpu.memory_space<vmem>>, vector<32x128xf32>,
    return
  }
  func.func @transform_0(%arg0: i32) -> (i32, i32) {
    %c0_i32 = arith.constant 0 : i32
    %c0_i32_0 = arith.constant 0 : i32
    return %arg0, %c0_i32 : i32, i32
  }
  func.func @transform_1(%arg0: i32) -> (i32, i32) {
    %c0_i32 = arith.constant 0 : i32
    %c0_i32_0 = arith.constant 0 : i32
    %c0_i32_1 = arith.constant 0 : i32
    return %c0_i32, %c0_i32_0 : i32, i32
  }
  func.func @transform_2(%arg0: i32) -> (i32, i32) {
    %c0_i32 = arith.constant 0 : i32
    %c0_i32_0 = arith.constant 0 : i32
    %c0_i32_1 = arith.constant 0 : i32
    return %c0_i32, %c0_i32_0 : i32, i32
  }
  func.func @transform_3(%arg0: i32) -> (i32, i32) {
    %c0_i32 = arith.constant 0 : i32
    %c0_i32_0 = arith.constant 0 : i32
    return %arg0, %c0_i32 : i32, i32
  }
}

</mosaic_0001>

<bundles_post_ra>
// kernel: detector_forward.5
= control target key start
LH: loop header
LB: loop body
LE: loop exit
PB: predicated region body
PF: predicated region fallthrough
CT: control target
= control target key end

     0   :  { %s2339_s12 = smov 0   ;;  %s2641_s0 = inlined_call_operand.vmem [shape: bf16[2048,128], index: 0, kind: input, shape index: {}]   ;;  %s2642_s1 = inlined_call_operand.vmem [shape: bf16[128,128], index: 1, kind: input, shape index: {}]   ;;  %s2643_s2 = inlined_call_operand.vmem [shape: f32[1,128], index: 2, kind: input, shape index: {}]   ;;  %s2644_s3 = inlined_call_operand.vmem [shape: bf16[2048,128], index: 3, kind: output, shape index: {}]  }
   0x1 LB: > { %s1523_s13 = sadd.s32 4294967295, %s2317_s12   ;;  %p1527_p0 = scmp.ge.s32.totalorder %s2317_s12, 1  ;;  %s2317_s12 = sphi %s2339_s12, %s13_s12  }
   0x2   : > { %p138_p1 = scmp.lt.s32.totalorder %s2317_s12, 3 }
   0x4   : > { %p139_p2 = pnand %p1527_p0, %p138_p1 }
   0x5   : > { %s1528_s22 = sshll.u32 (!%p139_p2), %s1523_s13, 7 }
   0x6   : > { %142 = sbr.rel (%p139_p2) target bundleno = 432 (0x1b0), region = 32  ;;  %p163_p3 = scmp.lt.s32.totalorder (!%p139_p2), %s1528_s22, 255 }
   0xb   : > { %v1893_v0 = vld [vmem:[%s2642_s1 + $0x38] sm:$0xff]  ;;  %v1892_v1 = vld [vmem:[%s2642_s1 + $0x30] sm:$0xff]  ;;  %v1891_v2 = vld [vmem:[%s2642_s1 + $0x28] sm:$0xff]  ;;  %s2646_s22 = smov (!%p163_p3, %s1528_s22), 255 }
   0xc   : > { %754 = vmatpush.bf16.msra.mxu0 %v1893_v0  ;;  %2277 = vmatpush.bf16.msra.mxu1 %v1893_v0  ;;  %v1890_v3 = vld [vmem:[%s2642_s1 + $0x20] sm:$0xff]  ;;  %v1889_v4 = vld [vmem:[%s2642_s1 + $0x18] sm:$0xff]  ;;  %v1888_v5 = vld [vmem:[%s2642_s1 + $0x10] sm:$0xff]  ;;  %s1529_s29 = sshll.u32 %s2646_s22, 2 }
   0xd   : > { %2278 = vmatpush.bf16.msra.mxu2 %v1893_v0  ;;  %2279 = vmatpush.bf16.msra.mxu3 %v1893_v0  ;;  %v1887_v6 = vld [vmem:[%s2642_s1 + $0x8] sm:$0xff]  ;;  %v1886_v7 = vld [vmem:[%s2642_s1] sm:$0xff]  ;;  %s2379_s7 = scalar_lea.vmem %s2641_s0, %s1529_s29  ;;  %s2431_s13 = scalar_lea.vmem %s2644_s3, %s1529_s29 }
   0xe   : > { %v1822_v8 = vld [vmem:[%s2379_s7] sm:$0xff]  ;;  %v1823_v12 = vld [vmem:[%s2379_s7 + $0x8] sm:$0xff]  ;;  %v1824_v16 = vld [vmem:[%s2379_s7 + $0x10] sm:$0xff] }
   0xf   : > { %v1838_v9 = vld [vmem:[%s2379_s7 + $0x80] sm:$0xff]  ;;  %v1839_v13 = vld [vmem:[%s2379_s7 + $0x88] sm:$0xff]  ;;  %v1840_v17 = vld [vmem:[%s2379_s7 + $0x90] sm:$0xff] }
  0x10   : > { %755 = vmatpush.bf16.msra.mxu0 %v1892_v1  ;;  %2280 = vmatpush.bf16.msra.mxu1 %v1892_v1  ;;  %v1854_v10 = vld [vmem:[%s2379_s7 + $0x100] sm:$0xff]  ;;  %v1855_v14 = vld [vmem:[%s2379_s7 + $0x108] sm:$0xff]  ;;  %v1856_v18 = vld [vmem:[%s2379_s7 + $0x110] sm:$0xff] }
  0x11   : > { %2281 = vmatpush.bf16.msra.mxu2 %v1892_v1  ;;  %2282 = vmatpush.bf16.msra.mxu3 %v1892_v1  ;;  %v1870_v11 = vld [vmem:[%s2379_s7 + $0x180] sm:$0xff]  ;;  %v1871_v15 = vld [vmem:[%s2379_s7 + $0x188] sm:$0xff]  ;;  %v1872_v19 = vld [vmem:[%s2379_s7 + $0x190] sm:$0xff] }
  0x12   : > { %v1825_v20 = vld [vmem:[%s2379_s7 + $0x18] sm:$0xff]  ;;  %v1826_v24 = vld [vmem:[%s2379_s7 + $0x20] sm:$0xff]  ;;  %v1827_v28 = vld [vmem:[%s2379_s7 + $0x28] sm:$0xff] }
  0x13   : > { %v1841_v21 = vld [vmem:[%s2379_s7 + $0x98] sm:$0xff]  ;;  %v1842_v25 = vld [vmem:[%s2379_s7 + $0xa0] sm:$0xff]  ;;  %v1843_v29 = vld [vmem:[%s2379_s7 + $0xa8] sm:$0xff] }
  0x14   : > { %756 = vmatpush.bf16.msra.mxu0 %v1891_v2  ;;  %2283 = vmatpush.bf16.msra.mxu1 %v1891_v2  ;;  %v1857_v22 = vld [vmem:[%s2379_s7 + $0x118] sm:$0xff]  ;;  %v1858_v26 = vld [vmem:[%s2379_s7 + $0x120] sm:$0xff]  ;;  %v1859_v30 = vld [vmem:[%s2379_s7 + $0x128] sm:$0xff] }
  0x15   : > { %2284 = vmatpush.bf16.msra.mxu2 %v1891_v2  ;;  %2285 = vmatpush.bf16.msra.mxu3 %v1891_v2  ;;  %v1873_v23 = vld [vmem:[%s2379_s7 + $0x198] sm:$0xff]  ;;  %v1874_v27 = vld [vmem:[%s2379_s7 + $0x1a0] sm:$0xff]  ;;  %v1875_v31 = vld [vmem:[%s2379_s7 + $0x1a8] sm:$0xff] }
  0x16   : > { %v1828_v32 = vld [vmem:[%s2379_s7 + $0x30] sm:$0xff]  ;;  %v1829_v36 = vld [vmem:[%s2379_s7 + $0x38] sm:$0xff]  ;;  %v1830_v40 = vld [vmem:[%s2379_s7 + $0x40] sm:$0xff] }
  0x17   : > { %v1844_v33 = vld [vmem:[%s2379_s7 + $0xb0] sm:$0xff]  ;;  %v1845_v37 = vld [vmem:[%s2379_s7 + $0xb8] sm:$0xff]  ;;  %v1846_v41 = vld [vmem:[%s2379_s7 + $0xc0] sm:$0xff] }
  0x18   : > { %757 = vmatpush.bf16.msra.mxu0 %v1890_v3  ;;  %2286 = vmatpush.bf16.msra.mxu1 %v1890_v3  ;;  %v1860_v34 = vld [vmem:[%s2379_s7 + $0x130] sm:$0xff]  ;;  %v1861_v38 = vld [vmem:[%s2379_s7 + $0x138] sm:$0xff]  ;;  %v1862_v44 = vld [vmem:[%s2379_s7 + $0x140] sm:$0xff] }
  0x19   : > { %2287 = vmatpush.bf16.msra.mxu2 %v1890_v3  ;;  %2288 = vmatpush.bf16.msra.mxu3 %v1890_v3  ;;  %v1876_v35 = vld [vmem:[%s2379_s7 + $0x1b0] sm:$0xff]  ;;  %v1877_v39 = vld [vmem:[%s2379_s7 + $0x1b8] sm:$0xff]  ;;  %v1878_v45 = vld [vmem:[%s2379_s7 + $0x1c0] sm:$0xff] }
  0x1a   : > { %v2420_v46 = vld [vmem:[%s2643_s2] ss:$0 sm:$0xff]  ;;  %v1831_v1 = vld [vmem:[%s2379_s7 + $0x48] sm:$0xff] }
  0x1b   : > { %v1847_v2 = vld [vmem:[%s2379_s7 + $0xc8] sm:$0xff] }
  0x1c   : > { %758 = vmatpush.bf16.msra.mxu0 %v1889_v4  ;;  %2289 = vmatpush.bf16.msra.mxu1 %v1889_v4 }
  0x1d   : > { %2290 = vmatpush.bf16.msra.mxu2 %v1889_v4  ;;  %2291 = vmatpush.bf16.msra.mxu3 %v1889_v4 }
  0x20   : > { %759 = vmatpush.bf16.msra.mxu0 %v1888_v5  ;;  %2292 = vmatpush.bf16.msra.mxu1 %v1888_v5 }
  0x21   : > { %2293 = vmatpush.bf16.msra.mxu2 %v1888_v5  ;;  %2294 = vmatpush.bf16.msra.mxu3 %v1888_v5 }
  0x24   : > { %760 = vmatpush.bf16.msra.mxu0 %v1887_v6  ;;  %2295 = vmatpush.bf16.msra.mxu1 %v1887_v6 }
  0x25   : > { %2296 = vmatpush.bf16.msra.mxu2 %v1887_v6  ;;  %2297 = vmatpush.bf16.msra.mxu3 %v1887_v6 }
  0x28   : > { %761 = vmatpush.bf16.msra.mxu0 %v1886_v7  ;;  %2298 = vmatpush.bf16.msra.mxu1 %v1886_v7 }
  0x29   : > { %2299 = vmatpush.bf16.msra.mxu2 %v1886_v7  ;;  %2300 = vmatpush.bf16.msra.mxu3 %v1886_v7  ;;  %v1863_v7 = vld [vmem:[%s2379_s7 + $0x148] sm:$0xff] }
  0x2b   : > { %762 = vmatmul.bf16.vlgmr.msra.gmra.mxu0 %v1822_v8  ;;  %842 = vmatmul.bf16.vlgmr.msra.gmra.mxu1 %v1838_v9  ;;  %v1879_v8 = vld [vmem:[%s2379_s7 + $0x1c8] sm:$0xff] }
  0x2c   : > { %922 = vmatmul.bf16.vlgmr.msra.gmra.mxu2 %v1854_v10  ;;  %1002 = vmatmul.bf16.vlgmr.msra.gmra.mxu3 %v1870_v11 }
  0x3b   : > { %767 = vmatmul.bf16.gmra.mxu0 %v1823_v12  ;;  %847 = vmatmul.bf16.gmra.mxu1 %v1839_v13 }
  0x3c   : > { %927 = vmatmul.bf16.gmra.mxu2 %v1855_v14  ;;  %1007 = vmatmul.bf16.gmra.mxu3 %v1871_v15 }
  0x4b   : > { %772 = vmatmul.bf16.gmra.mxu0 %v1824_v16  ;;  %852 = vmatmul.bf16.gmra.mxu1 %v1840_v17 }
  0x4c   : > { %932 = vmatmul.bf16.gmra.mxu2 %v1856_v18  ;;  %1012 = vmatmul.bf16.gmra.mxu3 %v1872_v19 }
  0x5b   : > { %777 = vmatmul.bf16.gmra.mxu0 %v1825_v20  ;;  %857 = vmatmul.bf16.gmra.mxu1 %v1841_v21 }
  0x5c   : > { %937 = vmatmul.bf16.gmra.mxu2 %v1857_v22  ;;  %1017 = vmatmul.bf16.gmra.mxu3 %v1873_v23 }
  0x6b   : > { %782 = vmatmul.bf16.gmra.mxu0 %v1826_v24  ;;  %862 = vmatmul.bf16.gmra.mxu1 %v1842_v25 }
  0x6c   : > { %942 = vmatmul.bf16.gmra.mxu2 %v1858_v26  ;;  %1022 = vmatmul.bf16.gmra.mxu3 %v1874_v27 }
  0x7b   : > { %787 = vmatmul.bf16.gmra.mxu0 %v1827_v28  ;;  %867 = vmatmul.bf16.gmra.mxu1 %v1843_v29 }
  0x7c   : > { %947 = vmatmul.bf16.gmra.mxu2 %v1859_v30  ;;  %1027 = vmatmul.bf16.gmra.mxu3 %v1875_v31 }
  0x8b   : > { %792 = vmatmul.bf16.gmra.mxu0 %v1828_v32  ;;  %872 = vmatmul.bf16.gmra.mxu1 %v1844_v33  ;;  %v1832_v33 = vld [vmem:[%s2379_s7 + $0x50] sm:$0xff] }
  0x8c   : > { %952 = vmatmul.bf16.gmra.mxu2 %v1860_v34  ;;  %1032 = vmatmul.bf16.gmra.mxu3 %v1876_v35  ;;  %v1848_v34 = vld [vmem:[%s2379_s7 + $0xd0] sm:$0xff] }
  0x9b   : > { %797 = vmatmul.bf16.gmra.mxu0 %v1829_v36  ;;  %877 = vmatmul.bf16.gmra.mxu1 %v1845_v37 }
  0x9c   : > { %957 = vmatmul.bf16.gmra.mxu2 %v1861_v38  ;;  %1037 = vmatmul.bf16.gmra.mxu3 %v1877_v39  ;;  %v1864_v39 = vld [vmem:[%s2379_s7 + $0x150] sm:$0xff] }
  0xa8   : > { %v763_v42 = vpop.f32.mrf.mxu0  ;;  %v843_v43 = vpop.f32.mrf.mxu1 }
  0xa9   : > { %v764_v47 = vadd.f32 %v2420_v46, %v763_v42  ;;  %v844_v48 = vadd.f32 %v2420_v46, %v843_v43 }
  0xab   : > { %802 = vmatmul.bf16.gmra.mxu0 %v1830_v40  ;;  %882 = vmatmul.bf16.gmra.mxu1 %v1846_v41  ;;  %v1083_v55 = vmax.f32 %v764_v47, 0.0  ;;  %v1115_v56 = vmax.f32 %v844_v48, 0.0  ;;  %v1880_v40 = vld [vmem:[%s2379_s7 + $0x1d0] sm:$0xff] }
  0xac   : > { %962 = vmatmul.bf16.gmra.mxu2 %v1862_v44  ;;  %1042 = vmatmul.bf16.gmra.mxu3 %v1878_v45 }
  0xaf   : > { %v923_v49 = vpop.f32.mrf.mxu2  ;;  %v1003_v50 = vpop.f32.mrf.mxu3 }
  0xb0   : > { %v765_v51 = vpop.f32.mrf.mxu0  ;;  %v845_v52 = vpop.f32.mrf.mxu1  ;;  %v924_v61 = vadd.f32 %v2420_v46, %v923_v49  ;;  %v1004_v62 = vadd.f32 %v2420_v46, %v1003_v50 }
  0xb1   : > { %v766_v53 = vadd.f32 %v2420_v46, %v765_v51  ;;  %v846_v54 = vadd.f32 %v2420_v46, %v845_v52 }
  0xb2   : > { %v1147_v9 = vmax.f32 %v924_v61, 0.0  ;;  %v1179_v10 = vmax.f32 %v1004_v62, 0.0 }
  0xb3   : > { %v1084_v57 = vmax.f32 %v766_v53, 0.0  ;;  %v1116_v58 = vmax.f32 %v846_v54, 0.0 }
  0xb5   : > { %v1897_v59 = vpack.c.bf16 %v1084_v57, %v1083_v55  ;;  %v1977_v60 = vpack.c.bf16 %v1116_v58, %v1115_v56 }
  0xb7   : > { %1898 = vst [vmem:[%s2431_s13] sm:$0xff] %v1897_v59   ;;  %v925_v63 = vpop.f32.mrf.mxu2  ;;  %v1005_v0 = vpop.f32.mrf.mxu3 }
  0xb8   : > { %2229 = vst [vmem:[%s2431_s13 + $0x80] sm:$0xff] %v1977_v60   ;;  %v926_v3 = vadd.f32 %v2420_v46, %v925_v63  ;;  %v1006_v4 = vadd.f32 %v2420_v46, %v1005_v0  ;;  %v768_v5 = vpop.f32.mrf.mxu0  ;;  %v848_v6 = vpop.f32.mrf.mxu1 }
  0xb9   : > { %v769_v15 = vadd.f32 %v2420_v46, %v768_v5  ;;  %v849_v16 = vadd.f32 %v2420_v46, %v848_v6 }
  0xba   : > { %v1148_v11 = vmax.f32 %v926_v3, 0.0  ;;  %v1180_v12 = vmax.f32 %v1006_v4, 0.0  ;;  %v1849_v3 = vld [vmem:[%s2379_s7 + $0xd8] sm:$0xff] }
  0xbb   : > { %807 = vmatmul.bf16.gmra.mxu0 %v1831_v1  ;;  %887 = vmatmul.bf16.gmra.mxu1 %v1847_v2  ;;  %v1085_v23 = vmax.f32 %v769_v15, 0.0  ;;  %v1117_v24 = vmax.f32 %v849_v16, 0.0  ;;  %v1833_v2 = vld [vmem:[%s2379_s7 + $0x58] sm:$0xff] }
  0xbc   : > { %v2057_v13 = vpack.c.bf16 %v1148_v11, %v1147_v9  ;;  %v2137_v14 = vpack.c.bf16 %v1180_v12, %v1179_v10  ;;  %967 = vmatmul.bf16.gmra.mxu2 %v1863_v7  ;;  %1047 = vmatmul.bf16.gmra.mxu3 %v1879_v8  ;;  %v1865_v8 = vld [vmem:[%s2379_s7 + $0x158] sm:$0xff] }
  0xbd   : > { %v1881_v9 = vld [vmem:[%s2379_s7 + $0x1d8] sm:$0xff] }
  0xbe   : > { %2245 = vst [vmem:[%s2431_s13 + $0x100] sm:$0xff] %v2057_v13  }
  0xbf   : > { %2261 = vst [vmem:[%s2431_s13 + $0x180] sm:$0xff] %v2137_v14   ;;  %v928_v17 = vpop.f32.mrf.mxu2  ;;  %v1008_v18 = vpop.f32.mrf.mxu3 }
  0xc0   : > { %v770_v19 = vpop.f32.mrf.mxu0  ;;  %v850_v20 = vpop.f32.mrf.mxu1  ;;  %v929_v29 = vadd.f32 %v2420_v46, %v928_v17  ;;  %v1009_v30 = vadd.f32 %v2420_v46, %v1008_v18 }
  0xc1   : > { %v771_v21 = vadd.f32 %v2420_v46, %v770_v19  ;;  %v851_v22 = vadd.f32 %v2420_v46, %v850_v20 }
  0xc2   : > { %v1149_v41 = vmax.f32 %v929_v29, 0.0  ;;  %v1181_v42 = vmax.f32 %v1009_v30, 0.0 }
  0xc3   : > { %v1086_v25 = vmax.f32 %v771_v21, 0.0  ;;  %v1118_v26 = vmax.f32 %v851_v22, 0.0 }
  0xc5   : > { %v1902_v27 = vpack.c.bf16 %v1086_v25, %v1085_v23  ;;  %v1982_v28 = vpack.c.bf16 %v1118_v26, %v1117_v24 }
  0xc7   : > { %2214 = vst [vmem:[%s2431_s13 + $0x8] sm:$0xff] %v1902_v27   ;;  %v930_v31 = vpop.f32.mrf.mxu2  ;;  %v1010_v32 = vpop.f32.mrf.mxu3 }
  0xc8   : > { %2230 = vst [vmem:[%s2431_s13 + $0x88] sm:$0xff] %v1982_v28   ;;  %v931_v35 = vadd.f32 %v2420_v46, %v930_v31  ;;  %v1011_v36 = vadd.f32 %v2420_v46, %v1010_v32  ;;  %v773_v37 = vpop.f32.mrf.mxu0  ;;  %v853_v38 = vpop.f32.mrf.mxu1 }
  0xc9   : > { %v774_v48 = vadd.f32 %v2420_v46, %v773_v37  ;;  %v854_v49 = vadd.f32 %v2420_v46, %v853_v38 }
  0xca   : > { %v1150_v43 = vmax.f32 %v931_v35, 0.0  ;;  %v1182_v44 = vmax.f32 %v1011_v36, 0.0  ;;  %v1850_v35 = vld [vmem:[%s2379_s7 + $0xe0] sm:$0xff] }
  0xcb   : > { %812 = vmatmul.bf16.gmra.mxu0 %v1832_v33  ;;  %892 = vmatmul.bf16.gmra.mxu1 %v1848_v34  ;;  %v1087_v56 = vmax.f32 %v774_v48, 0.0  ;;  %v1119_v57 = vmax.f32 %v854_v49, 0.0  ;;  %v1834_v34 = vld [vmem:[%s2379_s7 + $0x60] sm:$0xff] }
  0xcc   : > { %v2062_v45 = vpack.c.bf16 %v1150_v43, %v1149_v41  ;;  %v2142_v47 = vpack.c.bf16 %v1182_v44, %v1181_v42  ;;  %972 = vmatmul.bf16.gmra.mxu2 %v1864_v39  ;;  %1052 = vmatmul.bf16.gmra.mxu3 %v1880_v40  ;;  %v1866_v40 = vld [vmem:[%s2379_s7 + $0x160] sm:$0xff] }
  0xcd   : > { %v1882_v41 = vld [vmem:[%s2379_s7 + $0x1e0] sm:$0xff] }
  0xce   : > { %2246 = vst [vmem:[%s2431_s13 + $0x108] sm:$0xff] %v2062_v45  }
  0xcf   : > { %2262 = vst [vmem:[%s2431_s13 + $0x188] sm:$0xff] %v2142_v47   ;;  %v933_v50 = vpop.f32.mrf.mxu2  ;;  %v1013_v51 = vpop.f32.mrf.mxu3 }
  0xd0   : > { %v775_v52 = vpop.f32.mrf.mxu0  ;;  %v855_v53 = vpop.f32.mrf.mxu1  ;;  %v934_v62 = vadd.f32 %v2420_v46, %v933_v50  ;;  %v1014_v63 = vadd.f32 %v2420_v46, %v1013_v51 }
  0xd1   : > { %v776_v54 = vadd.f32 %v2420_v46, %v775_v52  ;;  %v856_v55 = vadd.f32 %v2420_v46, %v855_v53 }
  0xd2   : > { %v1151_v10 = vmax.f32 %v934_v62, 0.0  ;;  %v1183_v11 = vmax.f32 %v1014_v63, 0.0 }
  0xd3   : > { %v1088_v58 = vmax.f32 %v776_v54, 0.0  ;;  %v1120_v59 = vmax.f32 %v856_v55, 0.0 }
  0xd5   : > { %v1907_v60 = vpack.c.bf16 %v1088_v58, %v1087_v56  ;;  %v1987_v61 = vpack.c.bf16 %v1120_v59, %v1119_v57 }
  0xd7   : > { %2215 = vst [vmem:[%s2431_s13 + $0x10] sm:$0xff] %v1907_v60   ;;  %v935_v0 = vpop.f32.mrf.mxu2  ;;  %v1015_v1 = vpop.f32.mrf.mxu3 }
  0xd8   : > { %2231 = vst [vmem:[%s2431_s13 + $0x90] sm:$0xff] %v1987_v61   ;;  %v936_v4 = vadd.f32 %v2420_v46, %v935_v0  ;;  %v1016_v5 = vadd.f32 %v2420_v46, %v1015_v1  ;;  %v778_v6 = vpop.f32.mrf.mxu0  ;;  %v858_v7 = vpop.f32.mrf.mxu1 }
  0xd9   : > { %v779_v16 = vadd.f32 %v2420_v46, %v778_v6  ;;  %v859_v17 = vadd.f32 %v2420_v46, %v858_v7 }
  0xda   : > { %v1152_v12 = vmax.f32 %v936_v4, 0.0  ;;  %v1184_v13 = vmax.f32 %v1016_v5, 0.0  ;;  %v1851_v4 = vld [vmem:[%s2379_s7 + $0xe8] sm:$0xff] }
  0xdb   : > { %817 = vmatmul.bf16.gmra.mxu0 %v1833_v2  ;;  %897 = vmatmul.bf16.gmra.mxu1 %v1849_v3  ;;  %v1089_v24 = vmax.f32 %v779_v16, 0.0  ;;  %v1121_v25 = vmax.f32 %v859_v17, 0.0  ;;  %v1835_v3 = vld [vmem:[%s2379_s7 + $0x68] sm:$0xff] }
  0xdc   : > { %v2067_v14 = vpack.c.bf16 %v1152_v12, %v1151_v10  ;;  %v2147_v15 = vpack.c.bf16 %v1184_v13, %v1183_v11  ;;  %977 = vmatmul.bf16.gmra.mxu2 %v1865_v8  ;;  %1057 = vmatmul.bf16.gmra.mxu3 %v1881_v9  ;;  %v1867_v9 = vld [vmem:[%s2379_s7 + $0x168] sm:$0xff] }
  0xdd   : > { %v1883_v10 = vld [vmem:[%s2379_s7 + $0x1e8] sm:$0xff] }
  0xde   : > { %2247 = vst [vmem:[%s2431_s13 + $0x110] sm:$0xff] %v2067_v14  }
  0xdf   : > { %2263 = vst [vmem:[%s2431_s13 + $0x190] sm:$0xff] %v2147_v15   ;;  %v938_v18 = vpop.f32.mrf.mxu2  ;;  %v1018_v19 = vpop.f32.mrf.mxu3 }
  0xe0   : > { %v780_v20 = vpop.f32.mrf.mxu0  ;;  %v860_v21 = vpop.f32.mrf.mxu1  ;;  %v939_v30 = vadd.f32 %v2420_v46, %v938_v18  ;;  %v1019_v31 = vadd.f32 %v2420_v46, %v1018_v19 }
  0xe1   : > { %v781_v22 = vadd.f32 %v2420_v46, %v780_v20  ;;  %v861_v23 = vadd.f32 %v2420_v46, %v860_v21 }
  0xe2   : > { %v1153_v42 = vmax.f32 %v939_v30, 0.0  ;;  %v1185_v43 = vmax.f32 %v1019_v31, 0.0 }
  0xe3   : > { %v1090_v26 = vmax.f32 %v781_v22, 0.0  ;;  %v1122_v27 = vmax.f32 %v861_v23, 0.0 }
  0xe5   : > { %v1912_v28 = vpack.c.bf16 %v1090_v26, %v1089_v24  ;;  %v1992_v29 = vpack.c.bf16 %v1122_v27, %v1121_v25 }
  0xe7   : > { %2216 = vst [vmem:[%s2431_s13 + $0x18] sm:$0xff] %v1912_v28   ;;  %v940_v32 = vpop.f32.mrf.mxu2  ;;  %v1020_v33 = vpop.f32.mrf.mxu3 }
  0xe8   : > { %2232 = vst [vmem:[%s2431_s13 + $0x98] sm:$0xff] %v1992_v29   ;;  %v941_v36 = vadd.f32 %v2420_v46, %v940_v32  ;;  %v1021_v37 = vadd.f32 %v2420_v46, %v1020_v33  ;;  %v783_v38 = vpop.f32.mrf.mxu0  ;;  %v863_v39 = vpop.f32.mrf.mxu1 }
  0xe9   : > { %v784_v49 = vadd.f32 %v2420_v46, %v783_v38  ;;  %v864_v50 = vadd.f32 %v2420_v46, %v863_v39 }
  0xea   : > { %v1154_v44 = vmax.f32 %v941_v36, 0.0  ;;  %v1186_v45 = vmax.f32 %v1021_v37, 0.0  ;;  %v1852_v36 = vld [vmem:[%s2379_s7 + $0xf0] sm:$0xff] }
  0xeb   : > { %822 = vmatmul.bf16.gmra.mxu0 %v1834_v34  ;;  %902 = vmatmul.bf16.gmra.mxu1 %v1850_v35  ;;  %v1091_v57 = vmax.f32 %v784_v49, 0.0  ;;  %v1123_v58 = vmax.f32 %v864_v50, 0.0  ;;  %v1836_v35 = vld [vmem:[%s2379_s7 + $0x70] sm:$0xff] }
  0xec   : > { %v2072_v47 = vpack.c.bf16 %v1154_v44, %v1153_v42  ;;  %v2152_v48 = vpack.c.bf16 %v1186_v45, %v1185_v43  ;;  %982 = vmatmul.bf16.gmra.mxu2 %v1866_v40  ;;  %1062 = vmatmul.bf16.gmra.mxu3 %v1882_v41  ;;  %v1868_v41 = vld [vmem:[%s2379_s7 + $0x170] sm:$0xff] }
  0xed   : > { %v1884_v42 = vld [vmem:[%s2379_s7 + $0x1f0] sm:$0xff] }
  0xee   : > { %2248 = vst [vmem:[%s2431_s13 + $0x118] sm:$0xff] %v2072_v47  }
  0xef   : > { %2264 = vst [vmem:[%s2431_s13 + $0x198] sm:$0xff] %v2152_v48   ;;  %v943_v51 = vpop.f32.mrf.mxu2  ;;  %v1023_v52 = vpop.f32.mrf.mxu3 }
  0xf0   : > { %v785_v53 = vpop.f32.mrf.mxu0  ;;  %v865_v54 = vpop.f32.mrf.mxu1  ;;  %v944_v63 = vadd.f32 %v2420_v46, %v943_v51  ;;  %v1024_v0 = vadd.f32 %v2420_v46, %v1023_v52 }
  0xf1   : > { %v786_v55 = vadd.f32 %v2420_v46, %v785_v53  ;;  %v866_v56 = vadd.f32 %v2420_v46, %v865_v54 }
  0xf2   : > { %v1155_v11 = vmax.f32 %v944_v63, 0.0  ;;  %v1187_v12 = vmax.f32 %v1024_v0, 0.0 }
  0xf3   : > { %v1092_v59 = vmax.f32 %v786_v55, 0.0  ;;  %v1124_v60 = vmax.f32 %v866_v56, 0.0 }
  0xf5   : > { %v1917_v61 = vpack.c.bf16 %v1092_v59, %v1091_v57  ;;  %v1997_v62 = vpack.c.bf16 %v1124_v60, %v1123_v58 }
  0xf7   : > { %2217 = vst [vmem:[%s2431_s13 + $0x20] sm:$0xff] %v1917_v61   ;;  %v945_v1 = vpop.f32.mrf.mxu2  ;;  %v1025_v2 = vpop.f32.mrf.mxu3 }
  0xf8   : > { %2233 = vst [vmem:[%s2431_s13 + $0xa0] sm:$0xff] %v1997_v62   ;;  %v946_v5 = vadd.f32 %v2420_v46, %v945_v1  ;;  %v1026_v6 = vadd.f32 %v2420_v46, %v1025_v2  ;;  %v788_v7 = vpop.f32.mrf.mxu0  ;;  %v868_v8 = vpop.f32.mrf.mxu1 }
  0xf9   : > { %v789_v17 = vadd.f32 %v2420_v46, %v788_v7  ;;  %v869_v18 = vadd.f32 %v2420_v46, %v868_v8 }
  0xfa   : > { %v1156_v13 = vmax.f32 %v946_v5, 0.0  ;;  %v1188_v14 = vmax.f32 %v1026_v6, 0.0  ;;  %v1853_v5 = vld [vmem:[%s2379_s7 + $0xf8] sm:$0xff] }
  0xfb   : > { %827 = vmatmul.bf16.gmra.mxu0 %v1835_v3  ;;  %907 = vmatmul.bf16.gmra.mxu1 %v1851_v4  ;;  %v1093_v25 = vmax.f32 %v789_v17, 0.0  ;;  %v1125_v26 = vmax.f32 %v869_v18, 0.0  ;;  %v1837_v4 = vld [vmem:[%s2379_s7 + $0x78] sm:$0xff] }
  0xfc   : > { %v2077_v15 = vpack.c.bf16 %v1156_v13, %v1155_v11  ;;  %v2157_v16 = vpack.c.bf16 %v1188_v14, %v1187_v12  ;;  %987 = vmatmul.bf16.gmra.mxu2 %v1867_v9  ;;  %1067 = vmatmul.bf16.gmra.mxu3 %v1883_v10  ;;  %v1869_v10 = vld [vmem:[%s2379_s7 + $0x178] sm:$0xff] }
  0xfd   : > { %v1885_v11 = vld [vmem:[%s2379_s7 + $0x1f8] sm:$0xff] }
  0xfe   : > { %2249 = vst [vmem:[%s2431_s13 + $0x120] sm:$0xff] %v2077_v15  }
  0xff   : > { %2265 = vst [vmem:[%s2431_s13 + $0x1a0] sm:$0xff] %v2157_v16   ;;  %v948_v19 = vpop.f32.mrf.mxu2  ;;  %v1028_v20 = vpop.f32.mrf.mxu3 }
 0x100   : > { %v790_v21 = vpop.f32.mrf.mxu0  ;;  %v870_v22 = vpop.f32.mrf.mxu1  ;;  %v949_v31 = vadd.f32 %v2420_v46, %v948_v19  ;;  %v1029_v32 = vadd.f32 %v2420_v46, %v1028_v20 }
 0x101   : > { %v791_v23 = vadd.f32 %v2420_v46, %v790_v21  ;;  %v871_v24 = vadd.f32 %v2420_v46, %v870_v22 }
 0x102   : > { %v1157_v43 = vmax.f32 %v949_v31, 0.0  ;;  %v1189_v44 = vmax.f32 %v1029_v32, 0.0 }
 0x103   : > { %v1094_v27 = vmax.f32 %v791_v23, 0.0  ;;  %v1126_v28 = vmax.f32 %v871_v24, 0.0 }
 0x105   : > { %v1922_v29 = vpack.c.bf16 %v1094_v27, %v1093_v25  ;;  %v2002_v30 = vpack.c.bf16 %v1126_v28, %v1125_v26 }
 0x107   : > { %2218 = vst [vmem:[%s2431_s13 + $0x28] sm:$0xff] %v1922_v29   ;;  %v950_v33 = vpop.f32.mrf.mxu2  ;;  %v1030_v34 = vpop.f32.mrf.mxu3 }
 0x108   : > { %2234 = vst [vmem:[%s2431_s13 + $0xa8] sm:$0xff] %v2002_v30   ;;  %v951_v37 = vadd.f32 %v2420_v46, %v950_v33  ;;  %v1031_v38 = vadd.f32 %v2420_v46, %v1030_v34  ;;  %v793_v39 = vpop.f32.mrf.mxu0  ;;  %v873_v40 = vpop.f32.mrf.mxu1 }
 0x109   : > { %v794_v50 = vadd.f32 %v2420_v46, %v793_v39  ;;  %v874_v51 = vadd.f32 %v2420_v46, %v873_v40 }
 0x10a   : > { %v1158_v45 = vmax.f32 %v951_v37, 0.0  ;;  %v1190_v47 = vmax.f32 %v1031_v38, 0.0 }
 0x10b   : > { %832 = vmatmul.bf16.gmra.mxu0 %v1836_v35  ;;  %912 = vmatmul.bf16.gmra.mxu1 %v1852_v36  ;;  %v1095_v58 = vmax.f32 %v794_v50, 0.0  ;;  %v1127_v59 = vmax.f32 %v874_v51, 0.0 }
 0x10c   : > { %v2082_v48 = vpack.c.bf16 %v1158_v45, %v1157_v43  ;;  %v2162_v49 = vpack.c.bf16 %v1190_v47, %v1189_v44  ;;  %992 = vmatmul.bf16.gmra.mxu2 %v1868_v41  ;;  %1072 = vmatmul.bf16.gmra.mxu3 %v1884_v42 }
 0x10e   : > { %2250 = vst [vmem:[%s2431_s13 + $0x128] sm:$0xff] %v2082_v48  }
 0x10f   : > { %2266 = vst [vmem:[%s2431_s13 + $0x1a8] sm:$0xff] %v2162_v49   ;;  %v953_v52 = vpop.f32.mrf.mxu2  ;;  %v1033_v53 = vpop.f32.mrf.mxu3 }
 0x110   : > { %v795_v54 = vpop.f32.mrf.mxu0  ;;  %v875_v55 = vpop.f32.mrf.mxu1  ;;  %v954_v0 = vadd.f32 %v2420_v46, %v953_v52  ;;  %v1034_v1 = vadd.f32 %v2420_v46, %v1033_v53 }
 0x111   : > { %v796_v56 = vadd.f32 %v2420_v46, %v795_v54  ;;  %v876_v57 = vadd.f32 %v2420_v46, %v875_v55 }
 0x112   : > { %v1159_v12 = vmax.f32 %v954_v0, 0.0  ;;  %v1191_v13 = vmax.f32 %v1034_v1, 0.0 }
 0x113   : > { %v1096_v60 = vmax.f32 %v796_v56, 0.0  ;;  %v1128_v61 = vmax.f32 %v876_v57, 0.0 }
 0x115   : > { %v1927_v62 = vpack.c.bf16 %v1096_v60, %v1095_v58  ;;  %v2007_v63 = vpack.c.bf16 %v1128_v61, %v1127_v59 }
 0x117   : > { %2219 = vst [vmem:[%s2431_s13 + $0x30] sm:$0xff] %v1927_v62   ;;  %v955_v2 = vpop.f32.mrf.mxu2  ;;  %v1035_v3 = vpop.f32.mrf.mxu3 }
 0x118   : > { %2235 = vst [vmem:[%s2431_s13 + $0xb0] sm:$0xff] %v2007_v63   ;;  %v956_v6 = vadd.f32 %v2420_v46, %v955_v2  ;;  %v1036_v7 = vadd.f32 %v2420_v46, %v1035_v3  ;;  %v798_v8 = vpop.f32.mrf.mxu0  ;;  %v878_v9 = vpop.f32.mrf.mxu1 }
 0x119   : > { %v799_v18 = vadd.f32 %v2420_v46, %v798_v8  ;;  %v879_v19 = vadd.f32 %v2420_v46, %v878_v9 }
 0x11a   : > { %v1160_v14 = vmax.f32 %v956_v6, 0.0  ;;  %v1192_v15 = vmax.f32 %v1036_v7, 0.0 }
 0x11b   : > { %837 = vmatmul.bf16.gmra.mxu0 %v1837_v4  ;;  %917 = vmatmul.bf16.gmra.mxu1 %v1853_v5  ;;  %v1097_v26 = vmax.f32 %v799_v18, 0.0  ;;  %v1129_v27 = vmax.f32 %v879_v19, 0.0 }
 0x11c   : > { %v2087_v16 = vpack.c.bf16 %v1160_v14, %v1159_v12  ;;  %v2167_v17 = vpack.c.bf16 %v1192_v15, %v1191_v13  ;;  %997 = vmatmul.bf16.gmra.mxu2 %v1869_v10  ;;  %1077 = vmatmul.bf16.gmra.mxu3 %v1885_v11 }
 0x11e   : > { %2251 = vst [vmem:[%s2431_s13 + $0x130] sm:$0xff] %v2087_v16  }
 0x11f   : > { %2267 = vst [vmem:[%s2431_s13 + $0x1b0] sm:$0xff] %v2167_v17   ;;  %v958_v20 = vpop.f32.mrf.mxu2  ;;  %v1038_v21 = vpop.f32.mrf.mxu3 }
 0x120   : > { %v800_v22 = vpop.f32.mrf.mxu0  ;;  %v880_v23 = vpop.f32.mrf.mxu1  ;;  %v959_v32 = vadd.f32 %v2420_v46, %v958_v20  ;;  %v1039_v33 = vadd.f32 %v2420_v46, %v1038_v21 }
 0x121   : > { %v801_v24 = vadd.f32 %v2420_v46, %v800_v22  ;;  %v881_v25 = vadd.f32 %v2420_v46, %v880_v23 }
 0x122   : > { %v1161_v40 = vmax.f32 %v959_v32, 0.0  ;;  %v1193_v41 = vmax.f32 %v1039_v33, 0.0 }
 0x123   : > { %v1098_v28 = vmax.f32 %v801_v24, 0.0  ;;  %v1130_v29 = vmax.f32 %v881_v25, 0.0 }
 0x125   : > { %v1932_v30 = vpack.c.bf16 %v1098_v28, %v1097_v26  ;;  %v2012_v31 = vpack.c.bf16 %v1130_v29, %v1129_v27 }
 0x127   : > { %2220 = vst [vmem:[%s2431_s13 + $0x38] sm:$0xff] %v1932_v30   ;;  %v960_v34 = vpop.f32.mrf.mxu2  ;;  %v1040_v35 = vpop.f32.mrf.mxu3 }
 0x128   : > { %2236 = vst [vmem:[%s2431_s13 + $0xb8] sm:$0xff] %v2012_v31   ;;  %v961_v36 = vadd.f32 %v2420_v46, %v960_v34  ;;  %v1041_v37 = vadd.f32 %v2420_v46, %v1040_v35  ;;  %v803_v38 = vpop.f32.mrf.mxu0  ;;  %v883_v39 = vpop.f32.mrf.mxu1 }
 0x129   : > { %v804_v47 = vadd.f32 %v2420_v46, %v803_v38  ;;  %v884_v48 = vadd.f32 %v2420_v46, %v883_v39 }
 0x12a   : > { %v1162_v42 = vmax.f32 %v961_v36, 0.0  ;;  %v1194_v43 = vmax.f32 %v1041_v37, 0.0 }
 0x12b   : > { %v1099_v55 = vmax.f32 %v804_v47, 0.0  ;;  %v1131_v56 = vmax.f32 %v884_v48, 0.0 }
 0x12c   : > { %v2092_v44 = vpack.c.bf16 %v1162_v42, %v1161_v40  ;;  %v2172_v45 = vpack.c.bf16 %v1194_v43, %v1193_v41 }
 0x12e   : > { %2252 = vst [vmem:[%s2431_s13 + $0x138] sm:$0xff] %v2092_v44  }
 0x12f   : > { %2268 = vst [vmem:[%s2431_s13 + $0x1b8] sm:$0xff] %v2172_v45   ;;  %v963_v49 = vpop.f32.mrf.mxu2  ;;  %v1043_v50 = vpop.f32.mrf.mxu3 }
 0x130   : > { %v805_v51 = vpop.f32.mrf.mxu0  ;;  %v885_v52 = vpop.f32.mrf.mxu1  ;;  %v964_v61 = vadd.f32 %v2420_v46, %v963_v49  ;;  %v1044_v62 = vadd.f32 %v2420_v46, %v1043_v50 }
 0x131   : > { %v806_v53 = vadd.f32 %v2420_v46, %v805_v51  ;;  %v886_v54 = vadd.f32 %v2420_v46, %v885_v52 }
 0x132   : > { %v1163_v5 = vmax.f32 %v964_v61, 0.0  ;;  %v1195_v6 = vmax.f32 %v1044_v62, 0.0 }
 0x133   : > { %v1100_v57 = vmax.f32 %v806_v53, 0.0  ;;  %v1132_v58 = vmax.f32 %v886_v54, 0.0 }
 0x135   : > { %v1937_v59 = vpack.c.bf16 %v1100_v57, %v1099_v55  ;;  %v2017_v60 = vpack.c.bf16 %v1132_v58, %v1131_v56 }
 0x137   : > { %2221 = vst [vmem:[%s2431_s13 + $0x40] sm:$0xff] %v1937_v59   ;;  %v965_v63 = vpop.f32.mrf.mxu2  ;;  %v1045_v0 = vpop.f32.mrf.mxu3 }
 0x138   : > { %2237 = vst [vmem:[%s2431_s13 + $0xc0] sm:$0xff] %v2017_v60   ;;  %v966_v1 = vadd.f32 %v2420_v46, %v965_v63  ;;  %v1046_v2 = vadd.f32 %v2420_v46, %v1045_v0  ;;  %v808_v3 = vpop.f32.mrf.mxu0  ;;  %v888_v4 = vpop.f32.mrf.mxu1 }
 0x139   : > { %v809_v11 = vadd.f32 %v2420_v46, %v808_v3  ;;  %v889_v12 = vadd.f32 %v2420_v46, %v888_v4 }
 0x13a   : > { %v1164_v7 = vmax.f32 %v966_v1, 0.0  ;;  %v1196_v8 = vmax.f32 %v1046_v2, 0.0 }
 0x13b   : > { %v1101_v19 = vmax.f32 %v809_v11, 0.0  ;;  %v1133_v20 = vmax.f32 %v889_v12, 0.0 }
 0x13c   : > { %v2097_v9 = vpack.c.bf16 %v1164_v7, %v1163_v5  ;;  %v2177_v10 = vpack.c.bf16 %v1196_v8, %v1195_v6 }
 0x13e   : > { %2253 = vst [vmem:[%s2431_s13 + $0x140] sm:$0xff] %v2097_v9  }
 0x13f   : > { %2269 = vst [vmem:[%s2431_s13 + $0x1c0] sm:$0xff] %v2177_v10   ;;  %v968_v13 = vpop.f32.mrf.mxu2  ;;  %v1048_v14 = vpop.f32.mrf.mxu3 }
 0x140   : > { %v810_v15 = vpop.f32.mrf.mxu0  ;;  %v890_v16 = vpop.f32.mrf.mxu1  ;;  %v969_v25 = vadd.f32 %v2420_v46, %v968_v13  ;;  %v1049_v26 = vadd.f32 %v2420_v46, %v1048_v14 }
 0x141   : > { %v811_v17 = vadd.f32 %v2420_v46, %v810_v15  ;;  %v891_v18 = vadd.f32 %v2420_v46, %v890_v16 }
 0x142   : > { %v1165_v33 = vmax.f32 %v969_v25, 0.0  ;;  %v1197_v34 = vmax.f32 %v1049_v26, 0.0 }
 0x143   : > { %v1102_v21 = vmax.f32 %v811_v17, 0.0  ;;  %v1134_v22 = vmax.f32 %v891_v18, 0.0 }
 0x145   : > { %v1942_v23 = vpack.c.bf16 %v1102_v21, %v1101_v19  ;;  %v2022_v24 = vpack.c.bf16 %v1134_v22, %v1133_v20 }
 0x147   : > { %2222 = vst [vmem:[%s2431_s13 + $0x48] sm:$0xff] %v1942_v23   ;;  %v970_v27 = vpop.f32.mrf.mxu2  ;;  %v1050_v28 = vpop.f32.mrf.mxu3 }
 0x148   : > { %2238 = vst [vmem:[%s2431_s13 + $0xc8] sm:$0xff] %v2022_v24   ;;  %v971_v29 = vadd.f32 %v2420_v46, %v970_v27  ;;  %v1051_v30 = vadd.f32 %v2420_v46, %v1050_v28  ;;  %v813_v31 = vpop.f32.mrf.mxu0  ;;  %v893_v32 = vpop.f32.mrf.mxu1 }
 0x149   : > { %v814_v39 = vadd.f32 %v2420_v46, %v813_v31  ;;  %v894_v40 = vadd.f32 %v2420_v46, %v893_v32 }
 0x14a   : > { %v1166_v35 = vmax.f32 %v971_v29, 0.0  ;;  %v1198_v36 = vmax.f32 %v1051_v30, 0.0 }
 0x14b   : > { %v1103_v48 = vmax.f32 %v814_v39, 0.0  ;;  %v1135_v49 = vmax.f32 %v894_v40, 0.0 }
 0x14c   : > { %v2102_v37 = vpack.c.bf16 %v1166_v35, %v1165_v33  ;;  %v2182_v38 = vpack.c.bf16 %v1198_v36, %v1197_v34 }
 0x14e   : > { %2254 = vst [vmem:[%s2431_s13 + $0x148] sm:$0xff] %v2102_v37  }
 0x14f   : > { %2270 = vst [vmem:[%s2431_s13 + $0x1c8] sm:$0xff] %v2182_v38   ;;  %v973_v41 = vpop.f32.mrf.mxu2  ;;  %v1053_v42 = vpop.f32.mrf.mxu3 }
 0x150   : > { %v815_v43 = vpop.f32.mrf.mxu0  ;;  %v895_v44 = vpop.f32.mrf.mxu1  ;;  %v974_v54 = vadd.f32 %v2420_v46, %v973_v41  ;;  %v1054_v55 = vadd.f32 %v2420_v46, %v1053_v42 }
 0x151   : > { %v816_v45 = vadd.f32 %v2420_v46, %v815_v43  ;;  %v896_v47 = vadd.f32 %v2420_v46, %v895_v44 }
 0x152   : > { %v1167_v62 = vmax.f32 %v974_v54, 0.0  ;;  %v1199_v63 = vmax.f32 %v1054_v55, 0.0 }
 0x153   : > { %v1104_v50 = vmax.f32 %v816_v45, 0.0  ;;  %v1136_v51 = vmax.f32 %v896_v47, 0.0 }
 0x155   : > { %v1947_v52 = vpack.c.bf16 %v1104_v50, %v1103_v48  ;;  %v2027_v53 = vpack.c.bf16 %v1136_v51, %v1135_v49 }
 0x157   : > { %2223 = vst [vmem:[%s2431_s13 + $0x50] sm:$0xff] %v1947_v52   ;;  %v975_v56 = vpop.f32.mrf.mxu2  ;;  %v1055_v57 = vpop.f32.mrf.mxu3 }
 0x158   : > { %2239 = vst [vmem:[%s2431_s13 + $0xd0] sm:$0xff] %v2027_v53   ;;  %v976_v58 = vadd.f32 %v2420_v46, %v975_v56  ;;  %v1056_v59 = vadd.f32 %v2420_v46, %v1055_v57  ;;  %v818_v60 = vpop.f32.mrf.mxu0  ;;  %v898_v61 = vpop.f32.mrf.mxu1 }
 0x159   : > { %v819_v4 = vadd.f32 %v2420_v46, %v818_v60  ;;  %v899_v5 = vadd.f32 %v2420_v46, %v898_v61 }
 0x15a   : > { %v1168_v0 = vmax.f32 %v976_v58, 0.0  ;;  %v1200_v1 = vmax.f32 %v1056_v59, 0.0 }
 0x15b   : > { %v1105_v12 = vmax.f32 %v819_v4, 0.0  ;;  %v1137_v13 = vmax.f32 %v899_v5, 0.0 }
 0x15c   : > { %v2107_v2 = vpack.c.bf16 %v1168_v0, %v1167_v62  ;;  %v2187_v3 = vpack.c.bf16 %v1200_v1, %v1199_v63 }
 0x15e   : > { %2255 = vst [vmem:[%s2431_s13 + $0x150] sm:$0xff] %v2107_v2  }
 0x15f   : > { %2271 = vst [vmem:[%s2431_s13 + $0x1d0] sm:$0xff] %v2187_v3   ;;  %v978_v6 = vpop.f32.mrf.mxu2  ;;  %v1058_v7 = vpop.f32.mrf.mxu3 }
 0x160   : > { %v820_v8 = vpop.f32.mrf.mxu0  ;;  %v900_v9 = vpop.f32.mrf.mxu1  ;;  %v979_v18 = vadd.f32 %v2420_v46, %v978_v6  ;;  %v1059_v19 = vadd.f32 %v2420_v46, %v1058_v7 }
 0x161   : > { %v821_v10 = vadd.f32 %v2420_v46, %v820_v8  ;;  %v901_v11 = vadd.f32 %v2420_v46, %v900_v9 }
 0x162   : > { %v1169_v26 = vmax.f32 %v979_v18, 0.0  ;;  %v1201_v27 = vmax.f32 %v1059_v19, 0.0 }
 0x163   : > { %v1106_v14 = vmax.f32 %v821_v10, 0.0  ;;  %v1138_v15 = vmax.f32 %v901_v11, 0.0 }
 0x165   : > { %v1952_v16 = vpack.c.bf16 %v1106_v14, %v1105_v12  ;;  %v2032_v17 = vpack.c.bf16 %v1138_v15, %v1137_v13 }
 0x167   : > { %2224 = vst [vmem:[%s2431_s13 + $0x58] sm:$0xff] %v1952_v16   ;;  %v980_v20 = vpop.f32.mrf.mxu2  ;;  %v1060_v21 = vpop.f32.mrf.mxu3 }
 0x168   : > { %2240 = vst [vmem:[%s2431_s13 + $0xd8] sm:$0xff] %v2032_v17   ;;  %v981_v22 = vadd.f32 %v2420_v46, %v980_v20  ;;  %v1061_v23 = vadd.f32 %v2420_v46, %v1060_v21  ;;  %v823_v24 = vpop.f32.mrf.mxu0  ;;  %v903_v25 = vpop.f32.mrf.mxu1 }
 0x169   : > { %v824_v32 = vadd.f32 %v2420_v46, %v823_v24  ;;  %v904_v33 = vadd.f32 %v2420_v46, %v903_v25 }
 0x16a   : > { %v1170_v28 = vmax.f32 %v981_v22, 0.0  ;;  %v1202_v29 = vmax.f32 %v1061_v23, 0.0 }
 0x16b   : > { %v1107_v40 = vmax.f32 %v824_v32, 0.0  ;;  %v1139_v41 = vmax.f32 %v904_v33, 0.0 }
 0x16c   : > { %v2112_v30 = vpack.c.bf16 %v1170_v28, %v1169_v26  ;;  %v2192_v31 = vpack.c.bf16 %v1202_v29, %v1201_v27 }
 0x16e   : > { %2256 = vst [vmem:[%s2431_s13 + $0x158] sm:$0xff] %v2112_v30  }
 0x16f   : > { %2272 = vst [vmem:[%s2431_s13 + $0x1d8] sm:$0xff] %v2192_v31   ;;  %v983_v34 = vpop.f32.mrf.mxu2  ;;  %v1063_v35 = vpop.f32.mrf.mxu3  ;;  %v2310_v31 = vld [vmem:[%s2643_s2] ss:$0 sm:$0xff] }
 0x170   : > { %v825_v36 = vpop.f32.mrf.mxu0  ;;  %v905_v37 = vpop.f32.mrf.mxu1  ;;  %v984_v47 = vadd.f32 %v2420_v46, %v983_v34  ;;  %v1064_v48 = vadd.f32 %v2420_v46, %v1063_v35 }
 0x171   : > { %v826_v38 = vadd.f32 %v2420_v46, %v825_v36  ;;  %v906_v39 = vadd.f32 %v2420_v46, %v905_v37 }
 0x172   : > { %v1171_v55 = vmax.f32 %v984_v47, 0.0  ;;  %v1203_v56 = vmax.f32 %v1064_v48, 0.0 }
 0x173   : > { %v1108_v42 = vmax.f32 %v826_v38, 0.0  ;;  %v1140_v43 = vmax.f32 %v906_v39, 0.0 }
 0x175   : > { %v1957_v44 = vpack.c.bf16 %v1108_v42, %v1107_v40  ;;  %v2037_v45 = vpack.c.bf16 %v1140_v43, %v1139_v41 }
 0x177   : > { %2225 = vst [vmem:[%s2431_s13 + $0x60] sm:$0xff] %v1957_v44   ;;  %v985_v49 = vpop.f32.mrf.mxu2  ;;  %v1065_v50 = vpop.f32.mrf.mxu3 }
 0x178   : > { %2241 = vst [vmem:[%s2431_s13 + $0xe0] sm:$0xff] %v2037_v45   ;;  %v986_v51 = vadd.f32 %v2420_v46, %v985_v49  ;;  %v1066_v52 = vadd.f32 %v2420_v46, %v1065_v50  ;;  %v828_v53 = vpop.f32.mrf.mxu0  ;;  %v908_v54 = vpop.f32.mrf.mxu1 }
 0x179   : > { %v829_v61 = vadd.f32 %v2420_v46, %v828_v53  ;;  %v909_v62 = vadd.f32 %v2420_v46, %v908_v54 }
 0x17a   : > { %v1172_v57 = vmax.f32 %v986_v51, 0.0  ;;  %v1204_v58 = vmax.f32 %v1066_v52, 0.0 }
 0x17b   : > { %v1109_v5 = vmax.f32 %v829_v61, 0.0  ;;  %v1141_v6 = vmax.f32 %v909_v62, 0.0 }
 0x17c   : > { %v2117_v59 = vpack.c.bf16 %v1172_v57, %v1171_v55  ;;  %v2197_v60 = vpack.c.bf16 %v1204_v58, %v1203_v56 }
 0x17e   : > { %2257 = vst [vmem:[%s2431_s13 + $0x160] sm:$0xff] %v2117_v59  }
 0x17f   : > { %2273 = vst [vmem:[%s2431_s13 + $0x1e0] sm:$0xff] %v2197_v60   ;;  %v988_v63 = vpop.f32.mrf.mxu2  ;;  %v1068_v0 = vpop.f32.mrf.mxu3 }
 0x180   : > { %v830_v1 = vpop.f32.mrf.mxu0  ;;  %v910_v2 = vpop.f32.mrf.mxu1  ;;  %v989_v11 = vadd.f32 %v2420_v46, %v988_v63  ;;  %v1069_v12 = vadd.f32 %v2420_v46, %v1068_v0 }
 0x181   : > { %v831_v3 = vadd.f32 %v2420_v46, %v830_v1  ;;  %v911_v4 = vadd.f32 %v2420_v46, %v910_v2 }
 0x182   : > { %v1173_v19 = vmax.f32 %v989_v11, 0.0  ;;  %v1205_v20 = vmax.f32 %v1069_v12, 0.0 }
 0x183   : > { %v1110_v7 = vmax.f32 %v831_v3, 0.0  ;;  %v1142_v8 = vmax.f32 %v911_v4, 0.0 }
 0x185   : > { %v1962_v9 = vpack.c.bf16 %v1110_v7, %v1109_v5  ;;  %v2042_v10 = vpack.c.bf16 %v1142_v8, %v1141_v6 }
 0x187   : > { %2226 = vst [vmem:[%s2431_s13 + $0x68] sm:$0xff] %v1962_v9   ;;  %v990_v13 = vpop.f32.mrf.mxu2  ;;  %v1070_v14 = vpop.f32.mrf.mxu3 }
 0x188   : > { %2242 = vst [vmem:[%s2431_s13 + $0xe8] sm:$0xff] %v2042_v10   ;;  %v991_v15 = vadd.f32 %v2420_v46, %v990_v13  ;;  %v1071_v16 = vadd.f32 %v2420_v46, %v1070_v14  ;;  %v833_v17 = vpop.f32.mrf.mxu0  ;;  %v913_v18 = vpop.f32.mrf.mxu1 }
 0x189   : > { %v834_v25 = vadd.f32 %v2420_v46, %v833_v17  ;;  %v914_v26 = vadd.f32 %v2420_v46, %v913_v18 }
 0x18a   : > { %v1174_v21 = vmax.f32 %v991_v15, 0.0  ;;  %v1206_v22 = vmax.f32 %v1071_v16, 0.0 }
 0x18b   : > { %v1111_v34 = vmax.f32 %v834_v25, 0.0  ;;  %v1143_v35 = vmax.f32 %v914_v26, 0.0 }
 0x18c   : > { %v2122_v23 = vpack.c.bf16 %v1174_v21, %v1173_v19  ;;  %v2202_v24 = vpack.c.bf16 %v1206_v22, %v1205_v20 }
 0x18e   : > { %2258 = vst [vmem:[%s2431_s13 + $0x168] sm:$0xff] %v2122_v23  }
 0x18f   : > { %2274 = vst [vmem:[%s2431_s13 + $0x1e8] sm:$0xff] %v2202_v24   ;;  %v993_v27 = vpop.f32.mrf.mxu2  ;;  %v1073_v28 = vpop.f32.mrf.mxu3 }
 0x190   : > { %v835_v29 = vpop.f32.mrf.mxu0  ;;  %v915_v30 = vpop.f32.mrf.mxu1  ;;  %v994_v40 = vadd.f32 %v2310_v31, %v993_v27  ;;  %v1074_v46 = vadd.f32 %v2310_v31, %v1073_v28 }
 0x191   : > { %v836_v32 = vadd.f32 %v2310_v31, %v835_v29  ;;  %v916_v33 = vadd.f32 %v2310_v31, %v915_v30 }
 0x192   : > { %v1175_v48 = vmax.f32 %v994_v40, 0.0  ;;  %v1207_v49 = vmax.f32 %v1074_v46, 0.0 }
 0x193   : > { %v1112_v36 = vmax.f32 %v836_v32, 0.0  ;;  %v1144_v37 = vmax.f32 %v916_v33, 0.0 }
 0x195   : > { %v1967_v38 = vpack.c.bf16 %v1112_v36, %v1111_v34  ;;  %v2047_v39 = vpack.c.bf16 %v1144_v37, %v1143_v35 }
 0x197   : > { %2227 = vst [vmem:[%s2431_s13 + $0x70] sm:$0xff] %v1967_v38   ;;  %v995_v41 = vpop.f32.mrf.mxu2  ;;  %v1075_v42 = vpop.f32.mrf.mxu3 }
 0x198   : > { %2243 = vst [vmem:[%s2431_s13 + $0xf0] sm:$0xff] %v2047_v39   ;;  %v996_v43 = vadd.f32 %v2310_v31, %v995_v41  ;;  %v1076_v44 = vadd.f32 %v2310_v31, %v1075_v42  ;;  %v838_v45 = vpop.f32.mrf.mxu0  ;;  %v918_v47 = vpop.f32.mrf.mxu1 }
 0x199   : > { %v839_v54 = vadd.f32 %v2310_v31, %v838_v45  ;;  %v919_v55 = vadd.f32 %v2310_v31, %v918_v47 }
 0x19a   : > { %v1176_v50 = vmax.f32 %v996_v43, 0.0  ;;  %v1208_v51 = vmax.f32 %v1076_v44, 0.0 }
 0x19b   : > { %v1113_v62 = vmax.f32 %v839_v54, 0.0  ;;  %v1145_v63 = vmax.f32 %v919_v55, 0.0 }
 0x19c   : > { %v2127_v52 = vpack.c.bf16 %v1176_v50, %v1175_v48  ;;  %v2207_v53 = vpack.c.bf16 %v1208_v51, %v1207_v49 }
 0x19e   : > { %2259 = vst [vmem:[%s2431_s13 + $0x170] sm:$0xff] %v2127_v52  }
 0x19f   : > { %2275 = vst [vmem:[%s2431_s13 + $0x1f0] sm:$0xff] %v2207_v53   ;;  %v998_v56 = vpop.f32.mrf.mxu2  ;;  %v1078_v57 = vpop.f32.mrf.mxu3 }
 0x1a0   : > { %v840_v58 = vpop.f32.mrf.mxu0  ;;  %v920_v59 = vpop.f32.mrf.mxu1  ;;  %v999_v4 = vadd.f32 %v2310_v31, %v998_v56  ;;  %v1079_v5 = vadd.f32 %v2310_v31, %v1078_v57 }
 0x1a1   : > { %v841_v60 = vadd.f32 %v2310_v31, %v840_v58  ;;  %v921_v61 = vadd.f32 %v2310_v31, %v920_v59 }
 0x1a2   : > { %v1177_v10 = vmax.f32 %v999_v4, 0.0  ;;  %v1209_v11 = vmax.f32 %v1079_v5, 0.0 }
 0x1a3   : > { %v1114_v0 = vmax.f32 %v841_v60, 0.0  ;;  %v1146_v1 = vmax.f32 %v921_v61, 0.0 }
 0x1a5   : > { %v1972_v2 = vpack.c.bf16 %v1114_v0, %v1113_v62  ;;  %v2052_v3 = vpack.c.bf16 %v1146_v1, %v1145_v63 }
 0x1a7   : > { %2228 = vst [vmem:[%s2431_s13 + $0x78] sm:$0xff] %v1972_v2   ;;  %v1000_v6 = vpop.f32.mrf.mxu2  ;;  %v1080_v7 = vpop.f32.mrf.mxu3 }
 0x1a8   : > { %2244 = vst [vmem:[%s2431_s13 + $0xf8] sm:$0xff] %v2052_v3   ;;  %v1001_v8 = vadd.f32 %v2310_v31, %v1000_v6  ;;  %v1081_v9 = vadd.f32 %v2310_v31, %v1080_v7 }
 0x1aa   : > { %v1178_v12 = vmax.f32 %v1001_v8, 0.0  ;;  %v1210_v13 = vmax.f32 %v1081_v9, 0.0 }
 0x1ac   : > { %v2132_v14 = vpack.c.bf16 %v1178_v12, %v1177_v10  ;;  %v2212_v15 = vpack.c.bf16 %v1210_v13, %v1209_v11 }
 0x1ae   : > { %2260 = vst [vmem:[%s2431_s13 + $0x178] sm:$0xff] %v2132_v14  }
 0x1af   : > { %2276 = vst [vmem:[%s2431_s13 + $0x1f8] sm:$0xff] %v2212_v15  }
 0x1b0 PF: > { %s13_s12 = sadd.s32 1, %s2317_s12  }
 0x1b1   : > { %p10_p4 = scmp.ge.s32.totalorder %s13_s12, 4  }
 0x1b3   :  { %12 = sbr.rel (!%p10_p4) target bundleno = 1 (0x1), region = 62 }

// kernel: detector_forward.6
= control target key start
LH: loop header
LB: loop body
LE: loop exit
PB: predicated region body
PF: predicated region fallthrough
CT: control target
= control target key end

     0   :  { %s1232_s12 = smov 0   ;;  %s1422_s0 = inlined_call_operand.vmem [shape: bf16[512,256], index: 0, kind: input, shape index: {}]   ;;  %s1423_s1 = inlined_call_operand.vmem [shape: bf16[256,128], index: 1, kind: input, shape index: {}]   ;;  %s1424_s2 = inlined_call_operand.vmem [shape: f32[1,128], index: 2, kind: input, shape index: {}]   ;;  %s1425_s3 = inlined_call_operand.vmem [shape: bf16[512,128], index: 3, kind: output, shape index: {}]  }
   0x1 LB: > { %s831_s13 = sadd.s32 4294967295, %s1210_s12   ;;  %p835_p0 = scmp.ge.s32.totalorder %s1210_s12, 1  ;;  %s1210_s12 = sphi %s1232_s12, %s13_s12  }
   0x2   : > { %p139_p1 = scmp.lt.s32.totalorder %s1210_s12, 3 }
   0x4   : > { %p140_p2 = pnand %p835_p0, %p139_p1 }
   0x5   : > { %s836_s26 = sshll.u32 (!%p140_p2), %s831_s13, 5 }
   0x6   : > { %143 = sbr.rel (%p140_p2) target bundleno = 304 (0x130), region = 32  ;;  %p165_p3 = scmp.lt.s32.totalorder (!%p140_p2), %s836_s26, 63 }
   0xb   : > { %v1075_v0 = vld [vmem:[%s1423_s1 + $0x38] sm:$0xff]  ;;  %v1074_v2 = vld [vmem:[%s1423_s1 + $0x30] sm:$0xff]  ;;  %v1073_v4 = vld [vmem:[%s1423_s1 + $0x28] sm:$0xff]  ;;  %s1427_s26 = smov (!%p165_p3, %s836_s26), 63 }
   0xc   : > { %v1083_v1 = vld [vmem:[%s1423_s1 + $0x78] sm:$0xff]  ;;  %501 = vmatpush.bf16.msra.mxu0 %v1075_v0  ;;  %1179 = vmatpush.bf16.msra.mxu2 %v1075_v0  ;;  %v1082_v3 = vld [vmem:[%s1423_s1 + $0x70] sm:$0xff]  ;;  %v1081_v5 = vld [vmem:[%s1423_s1 + $0x68] sm:$0xff]  ;;  %s1035_s13 = sshll.u32 %s1427_s26, 3  ;;  %s840_s28 = sshll.u32 %s1427_s26, 2 }
   0xd   : > { %590 = vmatpush.bf16.msra.mxu1 %v1083_v1  ;;  %1187 = vmatpush.bf16.msra.mxu3 %v1083_v1  ;;  %v1072_v6 = vld [vmem:[%s1423_s1 + $0x20] sm:$0xff]  ;;  %v1071_v8 = vld [vmem:[%s1423_s1 + $0x18] sm:$0xff]  ;;  %v1070_v10 = vld [vmem:[%s1423_s1 + $0x10] sm:$0xff]  ;;  %s1285_s18 = scalar_lea.vmem %s1422_s0, %s1035_s13  ;;  %s1372_s4 = scalar_lea.vmem %s1425_s3, %s840_s28 }
   0xe   : > { %v1080_v7 = vld [vmem:[%s1423_s1 + $0x60] sm:$0xff]  ;;  %v1079_v9 = vld [vmem:[%s1423_s1 + $0x58] sm:$0xff]  ;;  %v1078_v11 = vld [vmem:[%s1423_s1 + $0x50] sm:$0xff] }
   0xf   : > { %v1069_v12 = vld [vmem:[%s1423_s1 + $0x8] sm:$0xff]  ;;  %v1068_v14 = vld [vmem:[%s1423_s1] sm:$0xff]  ;;  %v851_v28 = vld [vmem:[%s1285_s18 + $0x10] sm:$0xf] }
  0x10   : > { %502 = vmatpush.bf16.msra.mxu0 %v1074_v2  ;;  %1180 = vmatpush.bf16.msra.mxu2 %v1074_v2  ;;  %v1077_v13 = vld [vmem:[%s1423_s1 + $0x48] sm:$0xff]  ;;  %v1076_v15 = vld [vmem:[%s1423_s1 + $0x40] sm:$0xff]  ;;  %v1039_v29 = vld [vmem:[%s1285_s18 + $0x14] sm:$0xf0] }
  0x11   : > { %591 = vmatpush.bf16.msra.mxu1 %v1082_v3  ;;  %1188 = vmatpush.bf16.msra.mxu3 %v1082_v3  ;;  %v843_v16 = vld [vmem:[%s1285_s18] sm:$0xf]  ;;  %v1037_v17 = vld [vmem:[%s1285_s18 + $0x4] sm:$0xf0]  ;;  %v1036_v20 = vld [vmem:[%s1285_s18 + $0x4] sm:$0xf]  ;;  %v852_v36 = vor.u32 %v1039_v29, %v851_v28 }
  0x12   : > { %v907_v18 = vld [vmem:[%s1285_s18 + $0x80] sm:$0xf]  ;;  %v1053_v19 = vld [vmem:[%s1285_s18 + $0x84] sm:$0xf0]  ;;  %v845_v21 = vld [vmem:[%s1285_s18 + $0x8] sm:$0xf0]  ;;  %v844_v24 = vor.u32 %v1037_v17, %v843_v16 }
  0x13   : > { %v1052_v22 = vld [vmem:[%s1285_s18 + $0x84] sm:$0xf]  ;;  %v909_v23 = vld [vmem:[%s1285_s18 + $0x88] sm:$0xf0]  ;;  %v908_v25 = vor.u32 %v1053_v19, %v907_v18  ;;  %v848_v26 = vor.u32 %v1036_v20, %v845_v21  ;;  %v915_v30 = vld [vmem:[%s1285_s18 + $0x90] sm:$0xf] }
  0x14   : > { %503 = vmatpush.bf16.msra.mxu0 %v1073_v4  ;;  %1181 = vmatpush.bf16.msra.mxu2 %v1073_v4  ;;  %v912_v27 = vor.u32 %v1052_v22, %v909_v23  ;;  %v1055_v31 = vld [vmem:[%s1285_s18 + $0x94] sm:$0xf0]  ;;  %v1038_v32 = vld [vmem:[%s1285_s18 + $0x14] sm:$0xf]  ;;  %v853_v33 = vld [vmem:[%s1285_s18 + $0x18] sm:$0xf0] }
  0x15   : > { %592 = vmatpush.bf16.msra.mxu1 %v1081_v5  ;;  %1189 = vmatpush.bf16.msra.mxu3 %v1081_v5  ;;  %v1054_v34 = vld [vmem:[%s1285_s18 + $0x94] sm:$0xf]  ;;  %v917_v35 = vld [vmem:[%s1285_s18 + $0x98] sm:$0xf0]  ;;  %v916_v37 = vor.u32 %v1055_v31, %v915_v30  ;;  %v856_v38 = vor.u32 %v1038_v32, %v853_v33  ;;  %v859_v40 = vld [vmem:[%s1285_s18 + $0x20] sm:$0xf] }
  0x16   : > { %v920_v39 = vor.u32 %v1054_v34, %v917_v35  ;;  %v1041_v41 = vld [vmem:[%s1285_s18 + $0x24] sm:$0xf0]  ;;  %v923_v42 = vld [vmem:[%s1285_s18 + $0xa0] sm:$0xf]  ;;  %v1040_v44 = vld [vmem:[%s1285_s18 + $0x24] sm:$0xf] }
  0x17   : > { %v1057_v43 = vld [vmem:[%s1285_s18 + $0xa4] sm:$0xf0]  ;;  %v861_v45 = vld [vmem:[%s1285_s18 + $0x28] sm:$0xf0]  ;;  %v1056_v46 = vld [vmem:[%s1285_s18 + $0xa4] sm:$0xf]  ;;  %v860_v48 = vor.u32 %v1041_v41, %v859_v40 }
  0x18   : > { %504 = vmatpush.bf16.msra.mxu0 %v1072_v6  ;;  %1182 = vmatpush.bf16.msra.mxu2 %v1072_v6  ;;  %v925_v47 = vld [vmem:[%s1285_s18 + $0xa8] sm:$0xf0]  ;;  %v924_v49 = vor.u32 %v1057_v43, %v923_v42  ;;  %v864_v50 = vor.u32 %v1040_v44, %v861_v45  ;;  %v867_v52 = vld [vmem:[%s1285_s18 + $0x30] sm:$0xf]  ;;  %v1043_v53 = vld [vmem:[%s1285_s18 + $0x34] sm:$0xf0] }
  0x19   : > { %593 = vmatpush.bf16.msra.mxu1 %v1080_v7  ;;  %1190 = vmatpush.bf16.msra.mxu3 %v1080_v7  ;;  %v928_v51 = vor.u32 %v1056_v46, %v925_v47  ;;  %v931_v54 = vld [vmem:[%s1285_s18 + $0xb0] sm:$0xf]  ;;  %v1059_v55 = vld [vmem:[%s1285_s18 + $0xb4] sm:$0xf0]  ;;  %v1042_v56 = vld [vmem:[%s1285_s18 + $0x34] sm:$0xf]  ;;  %v868_v60 = vor.u32 %v1043_v53, %v867_v52 }
  0x1a   : > { %v869_v57 = vld [vmem:[%s1285_s18 + $0x38] sm:$0xf0]  ;;  %v1058_v58 = vld [vmem:[%s1285_s18 + $0xb4] sm:$0xf]  ;;  %v932_v61 = vor.u32 %v1059_v55, %v931_v54  ;;  %v875_v0 = vld [vmem:[%s1285_s18 + $0x40] sm:$0xf] }
  0x1b   : > { %v933_v59 = vld [vmem:[%s1285_s18 + $0xb8] sm:$0xf0]  ;;  %v872_v62 = vor.u32 %v1042_v56, %v869_v57  ;;  %v1045_v1 = vld [vmem:[%s1285_s18 + $0x44] sm:$0xf0]  ;;  %v939_v2 = vld [vmem:[%s1285_s18 + $0xc0] sm:$0xf] }
  0x1c   : > { %505 = vmatpush.bf16.msra.mxu0 %v1071_v8  ;;  %1183 = vmatpush.bf16.msra.mxu2 %v1071_v8  ;;  %v936_v63 = vor.u32 %v1058_v58, %v933_v59  ;;  %v1061_v3 = vld [vmem:[%s1285_s18 + $0xc4] sm:$0xf0]  ;;  %v1044_v4 = vld [vmem:[%s1285_s18 + $0x44] sm:$0xf]  ;;  %v877_v5 = vld [vmem:[%s1285_s18 + $0x48] sm:$0xf0]  ;;  %v876_v8 = vor.u32 %v1045_v1, %v875_v0 }
  0x1d   : > { %594 = vmatpush.bf16.msra.mxu1 %v1079_v9  ;;  %1191 = vmatpush.bf16.msra.mxu3 %v1079_v9  ;;  %v1060_v6 = vld [vmem:[%s1285_s18 + $0xc4] sm:$0xf]  ;;  %v941_v7 = vld [vmem:[%s1285_s18 + $0xc8] sm:$0xf0]  ;;  %v940_v9 = vor.u32 %v1061_v3, %v939_v2  ;;  %v1046_v16 = vld [vmem:[%s1285_s18 + $0x54] sm:$0xf] }
  0x1e   : > { %v885_v17 = vld [vmem:[%s1285_s18 + $0x58] sm:$0xf0]  ;;  %v1062_v18 = vld [vmem:[%s1285_s18 + $0xd4] sm:$0xf]  ;;  %v1048_v28 = vld [vmem:[%s1285_s18 + $0x64] sm:$0xf] }
  0x1f   : > { %v949_v19 = vld [vmem:[%s1285_s18 + $0xd8] sm:$0xf0]  ;;  %v888_v22 = vor.u32 %v1046_v16, %v885_v17  ;;  %v893_v29 = vld [vmem:[%s1285_s18 + $0x68] sm:$0xf0]  ;;  %v1064_v30 = vld [vmem:[%s1285_s18 + $0xe4] sm:$0xf] }
  0x20   : > { %506 = vmatpush.bf16.msra.mxu0 %v1070_v10  ;;  %1184 = vmatpush.bf16.msra.mxu2 %v1070_v10  ;;  %v880_v10 = vor.u32 %v1044_v4, %v877_v5  ;;  %v952_v23 = vor.u32 %v1062_v18, %v949_v19  ;;  %v957_v31 = vld [vmem:[%s1285_s18 + $0xe8] sm:$0xf0]  ;;  %v896_v34 = vor.u32 %v1048_v28, %v893_v29  ;;  %v1050_v40 = vld [vmem:[%s1285_s18 + $0x74] sm:$0xf]  ;;  %v901_v41 = vld [vmem:[%s1285_s18 + $0x78] sm:$0xf0] }
  0x21   : > { %595 = vmatpush.bf16.msra.mxu1 %v1078_v11  ;;  %1192 = vmatpush.bf16.msra.mxu3 %v1078_v11  ;;  %v944_v11 = vor.u32 %v1060_v6, %v941_v7  ;;  %v960_v35 = vor.u32 %v1064_v30, %v957_v31  ;;  %v1066_v42 = vld [vmem:[%s1285_s18 + $0xf4] sm:$0xf]  ;;  %v965_v43 = vld [vmem:[%s1285_s18 + $0xf8] sm:$0xf0]  ;;  %v904_v46 = vor.u32 %v1050_v40, %v901_v41 }
  0x22   : > { %v968_v47 = vor.u32 %v1066_v42, %v965_v43 }
  0x24   : > { %507 = vmatpush.bf16.msra.mxu0 %v1069_v12  ;;  %1185 = vmatpush.bf16.msra.mxu2 %v1069_v12  ;;  %v883_v12 = vld [vmem:[%s1285_s18 + $0x50] sm:$0xf] }
  0x25   : > { %596 = vmatpush.bf16.msra.mxu1 %v1077_v13  ;;  %1193 = vmatpush.bf16.msra.mxu3 %v1077_v13  ;;  %v1047_v13 = vld [vmem:[%s1285_s18 + $0x54] sm:$0xf0] }
  0x26   : > { %v884_v20 = vor.u32 %v1047_v13, %v883_v12 }
  0x28   : > { %508 = vmatpush.bf16.msra.mxu0 %v1068_v14  ;;  %1186 = vmatpush.bf16.msra.mxu2 %v1068_v14  ;;  %v947_v14 = vld [vmem:[%s1285_s18 + $0xd0] sm:$0xf] }
  0x29   : > { %597 = vmatpush.bf16.msra.mxu1 %v1076_v15  ;;  %1194 = vmatpush.bf16.msra.mxu3 %v1076_v15  ;;  %v1063_v15 = vld [vmem:[%s1285_s18 + $0xd4] sm:$0xf0] }
  0x2a   : > { %v948_v21 = vor.u32 %v1063_v15, %v947_v14 }
  0x2b   : > { %509 = vmatmul.bf16.vlgmr.msra.gmra.mxu0 %v844_v24  ;;  %549 = vmatmul.bf16.vlgmr.msra.gmra.mxu2 %v908_v25  ;;  %v891_v24 = vld [vmem:[%s1285_s18 + $0x60] sm:$0xf]  ;;  %v1049_v25 = vld [vmem:[%s1285_s18 + $0x64] sm:$0xf0] }
  0x2c   : > { %598 = vmatmul.bf16.vlgmr.msra.gmra.mxu1 %v848_v26  ;;  %638 = vmatmul.bf16.vlgmr.msra.gmra.mxu3 %v912_v27  ;;  %v955_v26 = vld [vmem:[%s1285_s18 + $0xe0] sm:$0xf]  ;;  %v1065_v27 = vld [vmem:[%s1285_s18 + $0xe4] sm:$0xf0]  ;;  %v892_v32 = vor.u32 %v1049_v25, %v891_v24 }
  0x2d   : > { %v956_v33 = vor.u32 %v1065_v27, %v955_v26 }
  0x3b   : > { %514 = vmatmul.bf16.gmra.mxu0 %v852_v36  ;;  %554 = vmatmul.bf16.gmra.mxu2 %v916_v37  ;;  %v899_v36 = vld [vmem:[%s1285_s18 + $0x70] sm:$0xf]  ;;  %v1051_v37 = vld [vmem:[%s1285_s18 + $0x74] sm:$0xf0] }
  0x3c   : > { %603 = vmatmul.bf16.gmra.mxu1 %v856_v38  ;;  %643 = vmatmul.bf16.gmra.mxu3 %v920_v39  ;;  %v963_v38 = vld [vmem:[%s1285_s18 + $0xf0] sm:$0xf]  ;;  %v1067_v39 = vld [vmem:[%s1285_s18 + $0xf4] sm:$0xf0]  ;;  %v900_v44 = vor.u32 %v1051_v37, %v899_v36 }
  0x3d   : > { %v964_v45 = vor.u32 %v1067_v39, %v963_v38 }
  0x4b   : > { %519 = vmatmul.bf16.gmra.mxu0 %v860_v48  ;;  %559 = vmatmul.bf16.gmra.mxu2 %v924_v49  ;;  %v1363_v49 = vld [vmem:[%s1424_s2] ss:$0 sm:$0xff] }
  0x4c   : > { %608 = vmatmul.bf16.gmra.mxu1 %v864_v50  ;;  %648 = vmatmul.bf16.gmra.mxu3 %v928_v51 }
  0x5b   : > { %524 = vmatmul.bf16.gmra.mxu0 %v868_v60  ;;  %564 = vmatmul.bf16.gmra.mxu2 %v932_v61 }
  0x5c   : > { %613 = vmatmul.bf16.gmra.mxu1 %v872_v62  ;;  %653 = vmatmul.bf16.gmra.mxu3 %v936_v63 }
  0x6b   : > { %529 = vmatmul.bf16.gmra.mxu0 %v876_v8  ;;  %569 = vmatmul.bf16.gmra.mxu2 %v940_v9 }
  0x6c   : > { %618 = vmatmul.bf16.gmra.mxu1 %v880_v10  ;;  %658 = vmatmul.bf16.gmra.mxu3 %v944_v11 }
  0x7b   : > { %534 = vmatmul.bf16.gmra.mxu0 %v884_v20  ;;  %574 = vmatmul.bf16.gmra.mxu2 %v948_v21 }
  0x7c   : > { %623 = vmatmul.bf16.gmra.mxu1 %v888_v22  ;;  %663 = vmatmul.bf16.gmra.mxu3 %v952_v23 }
  0x8b   : > { %539 = vmatmul.bf16.gmra.mxu0 %v892_v32  ;;  %579 = vmatmul.bf16.gmra.mxu2 %v956_v33 }
  0x8c   : > { %628 = vmatmul.bf16.gmra.mxu1 %v896_v34  ;;  %668 = vmatmul.bf16.gmra.mxu3 %v960_v35 }
  0x9b   : > { %544 = vmatmul.bf16.gmra.mxu0 %v900_v44  ;;  %584 = vmatmul.bf16.gmra.mxu2 %v964_v45 }
  0x9c   : > { %633 = vmatmul.bf16.gmra.mxu1 %v904_v46  ;;  %673 = vmatmul.bf16.gmra.mxu3 %v968_v47 }
  0xa8   : > { %v510_v48 = vpop.f32.mrf.mxu0 }
  0xa9   : > { %v599_v50 = vpop.f32.mrf.mxu1  ;;  %v511_v51 = vadd.f32 %v1363_v49, %v510_v48 }
  0xab   : > { %v600_v55 = vadd.f32 %v599_v50, %v511_v51 }
  0xad   : > { %v679_v60 = vmax.f32 %v600_v55, 0.0 }
  0xae   : > { %v550_v52 = vpop.f32.mrf.mxu2 }
  0xaf   : > { %v639_v53 = vpop.f32.mrf.mxu3  ;;  %v551_v58 = vadd.f32 %v1363_v49, %v550_v52 }
  0xb0   : > { %v512_v54 = vpop.f32.mrf.mxu0 }
  0xb1   : > { %v513_v56 = vadd.f32 %v1363_v49, %v512_v54  ;;  %v601_v57 = vpop.f32.mrf.mxu1  ;;  %v640_v63 = vadd.f32 %v639_v53, %v551_v58 }
  0xb3   : > { %v602_v59 = vadd.f32 %v601_v57, %v513_v56  ;;  %v695_v6 = vmax.f32 %v640_v63, 0.0 }
  0xb5   : > { %v680_v61 = vmax.f32 %v602_v59, 0.0 }
  0xb6   : > { %v552_v62 = vpop.f32.mrf.mxu2 }
  0xb7   : > { %v1087_v0 = vpack.c.bf16 %v680_v61, %v679_v60  ;;  %v553_v1 = vadd.f32 %v1363_v49, %v552_v62  ;;  %v641_v2 = vpop.f32.mrf.mxu3 }
  0xb8   : > { %v515_v3 = vpop.f32.mrf.mxu0 }
  0xb9   : > { %1088 = vst [vmem:[%s1372_s4] sm:$0xff] %v1087_v0   ;;  %v642_v4 = vadd.f32 %v641_v2, %v553_v1  ;;  %v604_v5 = vpop.f32.mrf.mxu1  ;;  %v516_v9 = vadd.f32 %v1363_v49, %v515_v3 }
  0xbb   : > { %v696_v7 = vmax.f32 %v642_v4, 0.0  ;;  %v605_v13 = vadd.f32 %v604_v5, %v516_v9 }
  0xbd   : > { %v1127_v8 = vpack.c.bf16 %v696_v7, %v695_v6  ;;  %v681_v18 = vmax.f32 %v605_v13, 0.0 }
  0xbe   : > { %v555_v10 = vpop.f32.mrf.mxu2 }
  0xbf   : > { %1171 = vst [vmem:[%s1372_s4 + $0x40] sm:$0xff] %v1127_v8   ;;  %v644_v11 = vpop.f32.mrf.mxu3  ;;  %v556_v16 = vadd.f32 %v1363_v49, %v555_v10 }
  0xc0   : > { %v517_v12 = vpop.f32.mrf.mxu0 }
  0xc1   : > { %v518_v14 = vadd.f32 %v1363_v49, %v517_v12  ;;  %v606_v15 = vpop.f32.mrf.mxu1  ;;  %v645_v21 = vadd.f32 %v644_v11, %v556_v16 }
  0xc3   : > { %v607_v17 = vadd.f32 %v606_v15, %v518_v14  ;;  %v697_v28 = vmax.f32 %v645_v21, 0.0 }
  0xc5   : > { %v682_v19 = vmax.f32 %v607_v17, 0.0 }
  0xc6   : > { %v557_v20 = vpop.f32.mrf.mxu2 }
  0xc7   : > { %v1092_v22 = vpack.c.bf16 %v682_v19, %v681_v18  ;;  %v558_v23 = vadd.f32 %v1363_v49, %v557_v20  ;;  %v646_v24 = vpop.f32.mrf.mxu3 }
  0xc8   : > { %v520_v25 = vpop.f32.mrf.mxu0 }
  0xc9   : > { %1164 = vst [vmem:[%s1372_s4 + $0x8] sm:$0xff] %v1092_v22   ;;  %v647_v26 = vadd.f32 %v646_v24, %v558_v23  ;;  %v609_v27 = vpop.f32.mrf.mxu1  ;;  %v521_v31 = vadd.f32 %v1363_v49, %v520_v25 }
  0xcb   : > { %v698_v29 = vmax.f32 %v647_v26, 0.0  ;;  %v610_v35 = vadd.f32 %v609_v27, %v521_v31 }
  0xcd   : > { %v1132_v30 = vpack.c.bf16 %v698_v29, %v697_v28  ;;  %v683_v40 = vmax.f32 %v610_v35, 0.0 }
  0xce   : > { %v560_v32 = vpop.f32.mrf.mxu2 }
  0xcf   : > { %1172 = vst [vmem:[%s1372_s4 + $0x48] sm:$0xff] %v1132_v30   ;;  %v649_v33 = vpop.f32.mrf.mxu3  ;;  %v561_v38 = vadd.f32 %v1363_v49, %v560_v32 }
  0xd0   : > { %v522_v34 = vpop.f32.mrf.mxu0 }
  0xd1   : > { %v523_v36 = vadd.f32 %v1363_v49, %v522_v34  ;;  %v611_v37 = vpop.f32.mrf.mxu1  ;;  %v650_v43 = vadd.f32 %v649_v33, %v561_v38 }
  0xd3   : > { %v612_v39 = vadd.f32 %v611_v37, %v523_v36  ;;  %v699_v51 = vmax.f32 %v650_v43, 0.0 }
  0xd5   : > { %v684_v41 = vmax.f32 %v612_v39, 0.0 }
  0xd6   : > { %v562_v42 = vpop.f32.mrf.mxu2 }
  0xd7   : > { %v1097_v44 = vpack.c.bf16 %v684_v41, %v683_v40  ;;  %v563_v45 = vadd.f32 %v1363_v49, %v562_v42  ;;  %v651_v46 = vpop.f32.mrf.mxu3 }
  0xd8   : > { %v525_v47 = vpop.f32.mrf.mxu0 }
  0xd9   : > { %1165 = vst [vmem:[%s1372_s4 + $0x10] sm:$0xff] %v1097_v44   ;;  %v652_v48 = vadd.f32 %v651_v46, %v563_v45  ;;  %v614_v50 = vpop.f32.mrf.mxu1  ;;  %v526_v54 = vadd.f32 %v1363_v49, %v525_v47 }
  0xdb   : > { %v700_v52 = vmax.f32 %v652_v48, 0.0  ;;  %v615_v58 = vadd.f32 %v614_v50, %v526_v54 }
  0xdd   : > { %v1137_v53 = vpack.c.bf16 %v700_v52, %v699_v51  ;;  %v685_v63 = vmax.f32 %v615_v58, 0.0 }
  0xde   : > { %v565_v55 = vpop.f32.mrf.mxu2 }
  0xdf   : > { %1173 = vst [vmem:[%s1372_s4 + $0x50] sm:$0xff] %v1137_v53   ;;  %v654_v56 = vpop.f32.mrf.mxu3  ;;  %v566_v61 = vadd.f32 %v1363_v49, %v565_v55 }
  0xe0   : > { %v527_v57 = vpop.f32.mrf.mxu0 }
  0xe1   : > { %v528_v59 = vadd.f32 %v1363_v49, %v527_v57  ;;  %v616_v60 = vpop.f32.mrf.mxu1  ;;  %v655_v2 = vadd.f32 %v654_v56, %v566_v61 }
  0xe3   : > { %v617_v62 = vadd.f32 %v616_v60, %v528_v59  ;;  %v701_v9 = vmax.f32 %v655_v2, 0.0 }
  0xe5   : > { %v686_v0 = vmax.f32 %v617_v62, 0.0 }
  0xe6   : > { %v567_v1 = vpop.f32.mrf.mxu2 }
  0xe7   : > { %v1102_v3 = vpack.c.bf16 %v686_v0, %v685_v63  ;;  %v568_v4 = vadd.f32 %v1363_v49, %v567_v1  ;;  %v656_v5 = vpop.f32.mrf.mxu3 }
  0xe8   : > { %v530_v6 = vpop.f32.mrf.mxu0 }
  0xe9   : > { %1166 = vst [vmem:[%s1372_s4 + $0x18] sm:$0xff] %v1102_v3   ;;  %v657_v7 = vadd.f32 %v656_v5, %v568_v4  ;;  %v619_v8 = vpop.f32.mrf.mxu1  ;;  %v531_v12 = vadd.f32 %v1363_v49, %v530_v6 }
  0xeb   : > { %v702_v10 = vmax.f32 %v657_v7, 0.0  ;;  %v620_v16 = vadd.f32 %v619_v8, %v531_v12 }
  0xed   : > { %v1142_v11 = vpack.c.bf16 %v702_v10, %v701_v9  ;;  %v687_v21 = vmax.f32 %v620_v16, 0.0 }
  0xee   : > { %v570_v13 = vpop.f32.mrf.mxu2 }
  0xef   : > { %1174 = vst [vmem:[%s1372_s4 + $0x58] sm:$0xff] %v1142_v11   ;;  %v659_v14 = vpop.f32.mrf.mxu3  ;;  %v571_v19 = vadd.f32 %v1363_v49, %v570_v13 }
  0xf0   : > { %v532_v15 = vpop.f32.mrf.mxu0 }
  0xf1   : > { %v533_v17 = vadd.f32 %v1363_v49, %v532_v15  ;;  %v621_v18 = vpop.f32.mrf.mxu1  ;;  %v660_v24 = vadd.f32 %v659_v14, %v571_v19 }
  0xf3   : > { %v622_v20 = vadd.f32 %v621_v18, %v533_v17  ;;  %v703_v31 = vmax.f32 %v660_v24, 0.0 }
  0xf5   : > { %v688_v22 = vmax.f32 %v622_v20, 0.0 }
  0xf6   : > { %v572_v23 = vpop.f32.mrf.mxu2 }
  0xf7   : > { %v1107_v25 = vpack.c.bf16 %v688_v22, %v687_v21  ;;  %v573_v26 = vadd.f32 %v1363_v49, %v572_v23  ;;  %v661_v27 = vpop.f32.mrf.mxu3 }
  0xf8   : > { %v535_v28 = vpop.f32.mrf.mxu0 }
  0xf9   : > { %1167 = vst [vmem:[%s1372_s4 + $0x20] sm:$0xff] %v1107_v25   ;;  %v662_v29 = vadd.f32 %v661_v27, %v573_v26  ;;  %v624_v30 = vpop.f32.mrf.mxu1  ;;  %v536_v34 = vadd.f32 %v1363_v49, %v535_v28 }
  0xfb   : > { %v704_v32 = vmax.f32 %v662_v29, 0.0  ;;  %v625_v38 = vadd.f32 %v624_v30, %v536_v34 }
  0xfd   : > { %v1147_v33 = vpack.c.bf16 %v704_v32, %v703_v31  ;;  %v689_v43 = vmax.f32 %v625_v38, 0.0 }
  0xfe   : > { %v575_v35 = vpop.f32.mrf.mxu2 }
  0xff   : > { %1175 = vst [vmem:[%s1372_s4 + $0x60] sm:$0xff] %v1147_v33   ;;  %v664_v36 = vpop.f32.mrf.mxu3  ;;  %v576_v41 = vadd.f32 %v1363_v49, %v575_v35 }
 0x100   : > { %v537_v37 = vpop.f32.mrf.mxu0 }
 0x101   : > { %v538_v39 = vadd.f32 %v1363_v49, %v537_v37  ;;  %v626_v40 = vpop.f32.mrf.mxu1  ;;  %v665_v46 = vadd.f32 %v664_v36, %v576_v41 }
 0x103   : > { %v627_v42 = vadd.f32 %v626_v40, %v538_v39  ;;  %v705_v54 = vmax.f32 %v665_v46, 0.0 }
 0x105   : > { %v690_v44 = vmax.f32 %v627_v42, 0.0 }
 0x106   : > { %v577_v45 = vpop.f32.mrf.mxu2 }
 0x107   : > { %v1112_v47 = vpack.c.bf16 %v690_v44, %v689_v43  ;;  %v578_v48 = vadd.f32 %v1363_v49, %v577_v45  ;;  %v666_v50 = vpop.f32.mrf.mxu3 }
 0x108   : > { %v540_v51 = vpop.f32.mrf.mxu0 }
 0x109   : > { %1168 = vst [vmem:[%s1372_s4 + $0x28] sm:$0xff] %v1112_v47   ;;  %v667_v52 = vadd.f32 %v666_v50, %v578_v48  ;;  %v629_v53 = vpop.f32.mrf.mxu1  ;;  %v541_v57 = vadd.f32 %v1363_v49, %v540_v51 }
 0x10b   : > { %v706_v55 = vmax.f32 %v667_v52, 0.0  ;;  %v630_v61 = vadd.f32 %v629_v53, %v541_v57 }
 0x10d   : > { %v1152_v56 = vpack.c.bf16 %v706_v55, %v705_v54  ;;  %v691_v2 = vmax.f32 %v630_v61, 0.0 }
 0x10e   : > { %v580_v58 = vpop.f32.mrf.mxu2 }
 0x10f   : > { %1176 = vst [vmem:[%s1372_s4 + $0x68] sm:$0xff] %v1152_v56   ;;  %v669_v59 = vpop.f32.mrf.mxu3  ;;  %v581_v0 = vadd.f32 %v1363_v49, %v580_v58 }
 0x110   : > { %v542_v60 = vpop.f32.mrf.mxu0 }
 0x111   : > { %v543_v62 = vadd.f32 %v1363_v49, %v542_v60  ;;  %v631_v63 = vpop.f32.mrf.mxu1  ;;  %v670_v5 = vadd.f32 %v669_v59, %v581_v0 }
 0x113   : > { %v632_v1 = vadd.f32 %v631_v63, %v543_v62  ;;  %v707_v12 = vmax.f32 %v670_v5, 0.0 }
 0x115   : > { %v692_v3 = vmax.f32 %v632_v1, 0.0 }
 0x116   : > { %v582_v4 = vpop.f32.mrf.mxu2 }
 0x117   : > { %v1117_v6 = vpack.c.bf16 %v692_v3, %v691_v2  ;;  %v583_v7 = vadd.f32 %v1363_v49, %v582_v4  ;;  %v671_v8 = vpop.f32.mrf.mxu3 }
 0x118   : > { %v545_v9 = vpop.f32.mrf.mxu0 }
 0x119   : > { %1169 = vst [vmem:[%s1372_s4 + $0x30] sm:$0xff] %v1117_v6   ;;  %v672_v10 = vadd.f32 %v671_v8, %v583_v7  ;;  %v634_v11 = vpop.f32.mrf.mxu1  ;;  %v546_v15 = vadd.f32 %v1363_v49, %v545_v9 }
 0x11b   : > { %v708_v13 = vmax.f32 %v672_v10, 0.0  ;;  %v635_v19 = vadd.f32 %v634_v11, %v546_v15 }
 0x11d   : > { %v1157_v14 = vpack.c.bf16 %v708_v13, %v707_v12  ;;  %v693_v24 = vmax.f32 %v635_v19, 0.0 }
 0x11e   : > { %v585_v16 = vpop.f32.mrf.mxu2 }
 0x11f   : > { %1177 = vst [vmem:[%s1372_s4 + $0x70] sm:$0xff] %v1157_v14   ;;  %v674_v17 = vpop.f32.mrf.mxu3  ;;  %v586_v22 = vadd.f32 %v1363_v49, %v585_v16 }
 0x120   : > { %v547_v18 = vpop.f32.mrf.mxu0 }
 0x121   : > { %v548_v20 = vadd.f32 %v1363_v49, %v547_v18  ;;  %v636_v21 = vpop.f32.mrf.mxu1  ;;  %v675_v27 = vadd.f32 %v674_v17, %v586_v22 }
 0x123   : > { %v637_v23 = vadd.f32 %v636_v21, %v548_v20  ;;  %v709_v32 = vmax.f32 %v675_v27, 0.0 }
 0x125   : > { %v694_v25 = vmax.f32 %v637_v23, 0.0 }
 0x126   : > { %v587_v26 = vpop.f32.mrf.mxu2 }
 0x127   : > { %v1122_v28 = vpack.c.bf16 %v694_v25, %v693_v24  ;;  %v588_v29 = vadd.f32 %v1363_v49, %v587_v26  ;;  %v676_v30 = vpop.f32.mrf.mxu3 }
 0x129   : > { %1170 = vst [vmem:[%s1372_s4 + $0x38] sm:$0xff] %v1122_v28   ;;  %v677_v31 = vadd.f32 %v676_v30, %v588_v29 }
 0x12b   : > { %v710_v33 = vmax.f32 %v677_v31, 0.0 }
 0x12d   : > { %v1162_v34 = vpack.c.bf16 %v710_v33, %v709_v32 }
 0x12f   : > { %1178 = vst [vmem:[%s1372_s4 + $0x78] sm:$0xff] %v1162_v34  }
 0x130 PF: > { %s13_s12 = sadd.s32 1, %s1210_s12  }
 0x131   : > { %p10_p4 = scmp.ge.s32.totalorder %s13_s12, 4  }
 0x133   :  { %12 = sbr.rel (!%p10_p4) target bundleno = 1 (0x1), region = 62 }

// kernel: detector_forward.8
= control target key start
LH: loop header
LB: loop body
LE: loop exit
PB: predicated region body
PF: predicated region fallthrough
CT: control target
= control target key end

     0   :  { %s1159_s1 = inlined_call_operand.vmem [shape: bf16[384,128], index: 1, kind: input, shape index: {}]   ;;  %s1160_s2 = inlined_call_operand.vmem [shape: f32[1,128], index: 2, kind: input, shape index: {}]   ;;  %s1161_s0 = inlined_call_operand.vmem [shape: bf16[128,384], index: 0, kind: input, shape index: {}]   ;;  %s1162_s3 = inlined_call_operand.vmem [shape: f32[128,128], index: 3, kind: output, shape index: {}]  }
   0x1   :  { %v760_v0 = vld [vmem:[%s1159_s1 + $0x38] sm:$0xff]  ;;  %v759_v3 = vld [vmem:[%s1159_s1 + $0x30] sm:$0xff]  ;;  %v758_v6 = vld [vmem:[%s1159_s1 + $0x28] sm:$0xff] }
   0x2   :  { %v828_v1 = vld [vmem:[%s1159_s1 + $0x78] sm:$0xff]  ;;  %370 = vmatpush.bf16.msra.mxu0 %v760_v0  ;;  %777 = vmatpush.bf16.msra.mxu3 %v760_v0  ;;  %v843_v4 = vld [vmem:[%s1159_s1 + $0x70] sm:$0xff]  ;;  %v766_v7 = vld [vmem:[%s1159_s1 + $0x68] sm:$0xff] }
   0x3   :  { %v833_v2 = vld [vmem:[%s1159_s1 + $0xb8] sm:$0xff]  ;;  %419 = vmatpush.bf16.msra.mxu1 %v828_v1  ;;  %v848_v5 = vld [vmem:[%s1159_s1 + $0xb0] sm:$0xff]  ;;  %v861_v8 = vld [vmem:[%s1159_s1 + $0xa8] sm:$0xff] }
   0x4   :  { %468 = vmatpush.bf16.msra.mxu2 %v833_v2  ;;  %v757_v9 = vld [vmem:[%s1159_s1 + $0x20] sm:$0xff]  ;;  %v756_v12 = vld [vmem:[%s1159_s1 + $0x18] sm:$0xff]  ;;  %v755_v15 = vld [vmem:[%s1159_s1 + $0x10] sm:$0xff] }
   0x5   :  { %v765_v10 = vld [vmem:[%s1159_s1 + $0x60] sm:$0xff]  ;;  %v764_v13 = vld [vmem:[%s1159_s1 + $0x58] sm:$0xff]  ;;  %v763_v16 = vld [vmem:[%s1159_s1 + $0x50] sm:$0xff] }
   0x6   :  { %371 = vmatpush.bf16.msra.mxu0 %v759_v3  ;;  %778 = vmatpush.bf16.msra.mxu3 %v759_v3  ;;  %v873_v11 = vld [vmem:[%s1159_s1 + $0xa0] sm:$0xff]  ;;  %v885_v14 = vld [vmem:[%s1159_s1 + $0x98] sm:$0xff]  ;;  %v897_v17 = vld [vmem:[%s1159_s1 + $0x90] sm:$0xff] }
   0x7   :  { %420 = vmatpush.bf16.msra.mxu1 %v843_v4  ;;  %v754_v18 = vld [vmem:[%s1159_s1 + $0x8] sm:$0xff]  ;;  %v753_v21 = vld [vmem:[%s1159_s1] sm:$0xff]  ;;  %v611_v26 = vld [vmem:[%s1161_s0 + $0x90] sm:$0xf] }
   0x8   :  { %469 = vmatpush.bf16.msra.mxu2 %v848_v5  ;;  %v762_v19 = vld [vmem:[%s1159_s1 + $0x48] sm:$0xff]  ;;  %v761_v22 = vld [vmem:[%s1159_s1 + $0x40] sm:$0xff]  ;;  %v748_v27 = vld [vmem:[%s1161_s0 + $0x98] sm:$0xf0] }
   0x9   :  { %v909_v20 = vld [vmem:[%s1159_s1 + $0x88] sm:$0xff]  ;;  %v920_v23 = vld [vmem:[%s1159_s1 + $0x80] sm:$0xff]  ;;  %v541_v29 = vld [vmem:[%s1161_s0 + $0xc] sm:$0xf0]  ;;  %v612_v33 = vor.u32 %v748_v27, %v611_v26 }
   0xa   :  { %372 = vmatpush.bf16.msra.mxu0 %v758_v6  ;;  %779 = vmatpush.bf16.msra.mxu3 %v758_v6  ;;  %v539_v24 = vld [vmem:[%s1161_s0] sm:$0xf]  ;;  %v730_v25 = vld [vmem:[%s1161_s0 + $0x8] sm:$0xf0]  ;;  %v729_v28 = vld [vmem:[%s1161_s0 + $0x4] sm:$0xf] }
   0xb   :  { %421 = vmatpush.bf16.msra.mxu1 %v766_v7  ;;  %v547_v30 = vld [vmem:[%s1161_s0 + $0x8] sm:$0xf]  ;;  %v731_v31 = vld [vmem:[%s1161_s0 + $0x10] sm:$0xf0]  ;;  %v540_v32 = vor.u32 %v730_v25, %v539_v24  ;;  %v544_v34 = vor.u32 %v729_v28, %v541_v29  ;;  %v551_v36 = vld [vmem:[%s1161_s0 + $0x18] sm:$0xf] }
   0xc   :  { %470 = vmatpush.bf16.msra.mxu2 %v861_v8  ;;  %v548_v35 = vor.u32 %v731_v31, %v547_v30  ;;  %v733_v37 = vld [vmem:[%s1161_s0 + $0x20] sm:$0xf0]  ;;  %v623_v38 = vld [vmem:[%s1161_s0 + $0xa8] sm:$0xf]  ;;  %v751_v39 = vld [vmem:[%s1161_s0 + $0xb0] sm:$0xf0] }
   0xd   :  { %v732_v40 = vld [vmem:[%s1161_s0 + $0x1c] sm:$0xf]  ;;  %v553_v41 = vld [vmem:[%s1161_s0 + $0x24] sm:$0xf0]  ;;  %v559_v42 = vld [vmem:[%s1161_s0 + $0x20] sm:$0xf]  ;;  %v552_v44 = vor.u32 %v733_v37, %v551_v36  ;;  %v624_v45 = vor.u32 %v751_v39, %v623_v38 }
   0xe   :  { %373 = vmatpush.bf16.msra.mxu0 %v757_v9  ;;  %780 = vmatpush.bf16.msra.mxu3 %v757_v9  ;;  %v734_v43 = vld [vmem:[%s1161_s0 + $0x28] sm:$0xf0]  ;;  %v556_v46 = vor.u32 %v732_v40, %v553_v41  ;;  %v563_v48 = vld [vmem:[%s1161_s0 + $0x30] sm:$0xf]  ;;  %v736_v49 = vld [vmem:[%s1161_s0 + $0x38] sm:$0xf0] }
   0xf   :  { %422 = vmatpush.bf16.msra.mxu1 %v765_v10  ;;  %v560_v47 = vor.u32 %v734_v43, %v559_v42  ;;  %v735_v50 = vld [vmem:[%s1161_s0 + $0x34] sm:$0xf]  ;;  %v613_v52 = vld [vmem:[%s1161_s0 + $0x9c] sm:$0xf0]  ;;  %v571_v54 = vld [vmem:[%s1161_s0 + $0x38] sm:$0xf]  ;;  %v564_v56 = vor.u32 %v736_v49, %v563_v48 }
  0x10   :  { %471 = vmatpush.bf16.msra.mxu2 %v873_v11  ;;  %v747_v51 = vld [vmem:[%s1161_s0 + $0x94] sm:$0xf]  ;;  %v565_v53 = vld [vmem:[%s1161_s0 + $0x3c] sm:$0xf0]  ;;  %v737_v55 = vld [vmem:[%s1161_s0 + $0x40] sm:$0xf0] }
  0x11   :  { %v616_v57 = vor.u32 %v747_v51, %v613_v52  ;;  %v568_v58 = vor.u32 %v735_v50, %v565_v53  ;;  %v572_v59 = vor.u32 %v737_v55, %v571_v54  ;;  %v575_v60 = vld [vmem:[%s1161_s0 + $0x48] sm:$0xf]  ;;  %v739_v61 = vld [vmem:[%s1161_s0 + $0x50] sm:$0xf0]  ;;  %v738_v62 = vld [vmem:[%s1161_s0 + $0x4c] sm:$0xf] }
  0x12   :  { %374 = vmatpush.bf16.msra.mxu0 %v756_v12  ;;  %781 = vmatpush.bf16.msra.mxu3 %v756_v12  ;;  %v750_v63 = vld [vmem:[%s1161_s0 + $0xac] sm:$0xf]  ;;  %v625_v0 = vld [vmem:[%s1161_s0 + $0xb4] sm:$0xf0]  ;;  %v740_v3 = vld [vmem:[%s1161_s0 + $0x58] sm:$0xf0] }
  0x13   :  { %423 = vmatpush.bf16.msra.mxu1 %v764_v13  ;;  %v742_v9 = vld [vmem:[%s1161_s0 + $0x68] sm:$0xf0]  ;;  %v749_v12 = vld [vmem:[%s1161_s0 + $0xa0] sm:$0xf0]  ;;  %v752_v24 = vld [vmem:[%s1161_s0 + $0xb8] sm:$0xf0] }
  0x14   :  { %472 = vmatpush.bf16.msra.mxu2 %v885_v14  ;;  %v601_v25 = vld [vmem:[%s1161_s0 + $0x84] sm:$0xf0]  ;;  %v607_v26 = vld [vmem:[%s1161_s0 + $0x80] sm:$0xf]  ;;  %v746_v27 = vld [vmem:[%s1161_s0 + $0x88] sm:$0xf0] }
  0x15   :  { %v608_v31 = vor.u32 %v746_v27, %v607_v26 }
  0x16   :  { %375 = vmatpush.bf16.msra.mxu0 %v755_v15  ;;  %782 = vmatpush.bf16.msra.mxu3 %v755_v15  ;;  %v743_v15 = vld [vmem:[%s1161_s0 + $0x70] sm:$0xf0] }
  0x17   :  { %424 = vmatpush.bf16.msra.mxu1 %v763_v16 }
  0x18   :  { %473 = vmatpush.bf16.msra.mxu2 %v897_v17 }
  0x1a   :  { %376 = vmatpush.bf16.msra.mxu0 %v754_v18  ;;  %783 = vmatpush.bf16.msra.mxu3 %v754_v18 }
  0x1b   :  { %425 = vmatpush.bf16.msra.mxu1 %v762_v19 }
  0x1c   :  { %474 = vmatpush.bf16.msra.mxu2 %v909_v20 }
  0x1e   :  { %377 = vmatpush.bf16.msra.mxu0 %v753_v21  ;;  %784 = vmatpush.bf16.msra.mxu3 %v753_v21  ;;  %v745_v21 = vld [vmem:[%s1161_s0 + $0x80] sm:$0xf0] }
  0x1f   :  { %426 = vmatpush.bf16.msra.mxu1 %v761_v22 }
  0x20   :  { %475 = vmatpush.bf16.msra.mxu2 %v920_v23 }
  0x21   :  { %378 = vmatmul.bf16.vlgmr.msra.gmra.mxu0 %v540_v32  ;;  %408 = vmatmul.bf16.vlgmr.msra.gmra.mxu3 %v612_v33  ;;  %v1081_v32 = vld [vmem:[%s1160_s2] ss:$0 sm:$0xff] }
  0x22   :  { %785 = vmatpush.bf16.msrb.mxu3 %v828_v1  ;;  %427 = vmatmul.bf16.vlgmr.msra.gmra.mxu1 %v544_v34  ;;  %v577_v1 = vld [vmem:[%s1161_s0 + $0x54] sm:$0xf0] }
  0x23   :  { %476 = vmatmul.bf16.vlgmr.msra.gmra.mxu2 %v548_v35  ;;  %v580_v6 = vor.u32 %v738_v62, %v577_v1 }
  0x26   :  { %786 = vmatpush.bf16.msrb.mxu3 %v843_v4  ;;  %v576_v4 = vor.u32 %v739_v61, %v575_v60 }
  0x2a   :  { %787 = vmatpush.bf16.msrb.mxu3 %v766_v7 }
  0x2e   :  { %788 = vmatpush.bf16.msrb.mxu3 %v765_v10  ;;  %v741_v10 = vld [vmem:[%s1161_s0 + $0x64] sm:$0xf] }
  0x31   :  { %383 = vmatmul.bf16.gmra.mxu0 %v552_v44  ;;  %413 = vmatmul.bf16.gmra.mxu3 %v624_v45 }
  0x32   :  { %789 = vmatpush.bf16.msrb.mxu3 %v764_v13  ;;  %432 = vmatmul.bf16.gmra.mxu1 %v556_v46  ;;  %v589_v13 = vld [vmem:[%s1161_s0 + $0x6c] sm:$0xf0] }
  0x33   :  { %481 = vmatmul.bf16.gmra.mxu2 %v560_v47  ;;  %v592_v18 = vor.u32 %v741_v10, %v589_v13 }
  0x36   :  { %790 = vmatpush.bf16.msrb.mxu3 %v763_v16 }
  0x3a   :  { %791 = vmatpush.bf16.msrb.mxu3 %v762_v19 }
  0x3e   :  { %792 = vmatpush.bf16.msrb.mxu3 %v761_v22  ;;  %v744_v22 = vld [vmem:[%s1161_s0 + $0x7c] sm:$0xf] }
  0x3f   :  { %v604_v30 = vor.u32 %v744_v22, %v601_v25 }
  0x41   :  { %388 = vmatmul.bf16.gmra.mxu0 %v564_v56  ;;  %457 = vmatmul.bf16.vlgmr.msrb.gmra.mxu3 %v616_v57 }
  0x42   :  { %793 = vmatpush.bf16.msra.mxu3 %v833_v2  ;;  %437 = vmatmul.bf16.gmra.mxu1 %v568_v58  ;;  %v583_v2 = vld [vmem:[%s1161_s0 + $0x50] sm:$0xf] }
  0x43   :  { %486 = vmatmul.bf16.gmra.mxu2 %v572_v59  ;;  %v584_v7 = vor.u32 %v740_v3, %v583_v2 }
  0x46   :  { %794 = vmatpush.bf16.msra.mxu3 %v848_v5  ;;  %v628_v5 = vor.u32 %v750_v63, %v625_v0 }
  0x4a   :  { %795 = vmatpush.bf16.msra.mxu3 %v861_v8  ;;  %v587_v8 = vld [vmem:[%s1161_s0 + $0x60] sm:$0xf] }
  0x4b   :  { %v588_v16 = vor.u32 %v742_v9, %v587_v8 }
  0x4e   :  { %796 = vmatpush.bf16.msra.mxu3 %v873_v11  ;;  %v619_v11 = vld [vmem:[%s1161_s0 + $0x98] sm:$0xf] }
  0x51   :  { %393 = vmatmul.bf16.gmra.mxu0 %v576_v4  ;;  %462 = vmatmul.bf16.gmra.mxu3 %v628_v5 }
  0x52   :  { %797 = vmatpush.bf16.msra.mxu3 %v885_v14  ;;  %442 = vmatmul.bf16.gmra.mxu1 %v580_v6  ;;  %v595_v14 = vld [vmem:[%s1161_s0 + $0x68] sm:$0xf] }
  0x53   :  { %491 = vmatmul.bf16.gmra.mxu2 %v584_v7  ;;  %v596_v19 = vor.u32 %v743_v15, %v595_v14 }
  0x56   :  { %798 = vmatpush.bf16.msra.mxu3 %v897_v17  ;;  %v620_v17 = vor.u32 %v749_v12, %v619_v11 }
  0x5a   :  { %799 = vmatpush.bf16.msra.mxu3 %v909_v20  ;;  %v599_v20 = vld [vmem:[%s1161_s0 + $0x78] sm:$0xf] }
  0x5b   :  { %v600_v28 = vor.u32 %v745_v21, %v599_v20 }
  0x5e   :  { %800 = vmatpush.bf16.msra.mxu3 %v920_v23  ;;  %v631_v23 = vld [vmem:[%s1161_s0 + $0xb0] sm:$0xf] }
  0x5f   :  { %v632_v29 = vor.u32 %v752_v24, %v631_v23 }
  0x61   :  { %398 = vmatmul.bf16.gmra.mxu0 %v588_v16  ;;  %506 = vmatmul.bf16.vlgmr.msra.gmra.mxu3 %v620_v17 }
  0x62   :  { %447 = vmatmul.bf16.gmra.mxu1 %v592_v18 }
  0x63   :  { %496 = vmatmul.bf16.gmra.mxu2 %v596_v19 }
  0x71   :  { %403 = vmatmul.bf16.gmra.mxu0 %v600_v28  ;;  %511 = vmatmul.bf16.gmra.mxu3 %v632_v29 }
  0x72   :  { %452 = vmatmul.bf16.gmra.mxu1 %v604_v30 }
  0x73   :  { %501 = vmatmul.bf16.gmra.mxu2 %v608_v31 }
  0x9e   :  { %v379_v33 = vpop.f32.mrf.mxu0 }
  0x9f   :  { %v380_v34 = vadd.f32 %v1081_v32, %v379_v33  ;;  %v428_v35 = vpop.f32.mrf.mxu1 }
  0xa1   :  { %v429_v36 = vadd.f32 %v428_v35, %v380_v34 }
  0xa4   :  { %v1084_v37 = vpop.f32.mrf.mxu3 }
  0xa5   :  { %v410_v28 = vadd.f32 %v1081_v32, %v1084_v37 }
  0xa6   :  { %v477_v38 = vpop.f32.mrf.mxu2  ;;  %v381_v40 = vpop.f32.mrf.mxu0 }
  0xa7   :  { %v478_v39 = vadd.f32 %v477_v38, %v429_v36  ;;  %v430_v41 = vpop.f32.mrf.mxu1  ;;  %v382_v42 = vadd.f32 %v1081_v32, %v381_v40 }
  0xa9   :  { %517 = vst [vmem:[%s1162_s3] sm:$0xff] %v478_v39  ;;  %v431_v43 = vadd.f32 %v430_v41, %v382_v42 }
  0xac   :  { %v1090_v44 = vpop.f32.mrf.mxu3 }
  0xad   :  { %v412_v37 = vadd.f32 %v1081_v32, %v1090_v44 }
  0xae   :  { %v479_v45 = vpop.f32.mrf.mxu2  ;;  %v384_v47 = vpop.f32.mrf.mxu0 }
  0xaf   :  { %v480_v46 = vadd.f32 %v479_v45, %v431_v43  ;;  %v385_v48 = vadd.f32 %v1081_v32, %v384_v47  ;;  %v433_v49 = vpop.f32.mrf.mxu1 }
  0xb1   :  { %518 = vst [vmem:[%s1162_s3 + $0x8] sm:$0xff] %v480_v46  ;;  %v434_v50 = vadd.f32 %v433_v49, %v385_v48 }
  0xb4   :  { %v1096_v51 = vpop.f32.mrf.mxu3 }
  0xb5   :  { %v415_v44 = vadd.f32 %v1081_v32, %v1096_v51 }
  0xb6   :  { %v482_v52 = vpop.f32.mrf.mxu2  ;;  %v386_v54 = vpop.f32.mrf.mxu0 }
  0xb7   :  { %v483_v53 = vadd.f32 %v482_v52, %v434_v50  ;;  %v435_v55 = vpop.f32.mrf.mxu1  ;;  %v387_v56 = vadd.f32 %v1081_v32, %v386_v54 }
  0xb9   :  { %519 = vst [vmem:[%s1162_s3 + $0x10] sm:$0xff] %v483_v53  ;;  %v436_v57 = vadd.f32 %v435_v55, %v387_v56 }
  0xbc   :  { %v1102_v58 = vpop.f32.mrf.mxu3 }
  0xbd   :  { %v417_v51 = vadd.f32 %v1081_v32, %v1102_v58 }
  0xbe   :  { %v484_v59 = vpop.f32.mrf.mxu2  ;;  %v389_v61 = vpop.f32.mrf.mxu0 }
  0xbf   :  { %v485_v60 = vadd.f32 %v484_v59, %v436_v57  ;;  %v390_v62 = vadd.f32 %v1081_v32, %v389_v61  ;;  %v438_v63 = vpop.f32.mrf.mxu1 }
  0xc1   :  { %520 = vst [vmem:[%s1162_s3 + $0x18] sm:$0xff] %v485_v60  ;;  %v439_v0 = vadd.f32 %v438_v63, %v390_v62 }
  0xc4   :  { %v458_v1 = vpop.f32.mrf.mxu3 }
  0xc5   :  { %v459_v30 = vadd.f32 %v458_v1, %v410_v28 }
  0xc6   :  { %v487_v2 = vpop.f32.mrf.mxu2  ;;  %v391_v4 = vpop.f32.mrf.mxu0 }
  0xc7   :  { %v488_v3 = vadd.f32 %v487_v2, %v439_v0  ;;  %v440_v5 = vpop.f32.mrf.mxu1  ;;  %v392_v6 = vadd.f32 %v1081_v32, %v391_v4 }
  0xc9   :  { %521 = vst [vmem:[%s1162_s3 + $0x20] sm:$0xff] %v488_v3  ;;  %v441_v7 = vadd.f32 %v440_v5, %v392_v6 }
  0xcc   :  { %v460_v8 = vpop.f32.mrf.mxu3 }
  0xcd   :  { %v461_v40 = vadd.f32 %v460_v8, %v412_v37 }
  0xce   :  { %v489_v9 = vpop.f32.mrf.mxu2  ;;  %v394_v11 = vpop.f32.mrf.mxu0 }
  0xcf   :  { %v490_v10 = vadd.f32 %v489_v9, %v441_v7  ;;  %v395_v12 = vadd.f32 %v1081_v32, %v394_v11  ;;  %v443_v13 = vpop.f32.mrf.mxu1 }
  0xd1   :  { %522 = vst [vmem:[%s1162_s3 + $0x28] sm:$0xff] %v490_v10  ;;  %v444_v14 = vadd.f32 %v443_v13, %v395_v12 }
  0xd4   :  { %v463_v15 = vpop.f32.mrf.mxu3 }
  0xd5   :  { %v464_v52 = vadd.f32 %v463_v15, %v415_v44 }
  0xd6   :  { %v492_v16 = vpop.f32.mrf.mxu2  ;;  %v396_v18 = vpop.f32.mrf.mxu0 }
  0xd7   :  { %v493_v17 = vadd.f32 %v492_v16, %v444_v14  ;;  %v445_v19 = vpop.f32.mrf.mxu1  ;;  %v397_v20 = vadd.f32 %v1081_v32, %v396_v18 }
  0xd9   :  { %523 = vst [vmem:[%s1162_s3 + $0x30] sm:$0xff] %v493_v17  ;;  %v446_v21 = vadd.f32 %v445_v19, %v397_v20 }
  0xdc   :  { %v465_v22 = vpop.f32.mrf.mxu3 }
  0xdd   :  { %v466_v60 = vadd.f32 %v465_v22, %v417_v51 }
  0xde   :  { %v494_v23 = vpop.f32.mrf.mxu2  ;;  %v399_v25 = vpop.f32.mrf.mxu0 }
  0xdf   :  { %v495_v24 = vadd.f32 %v494_v23, %v446_v21  ;;  %v400_v26 = vadd.f32 %v1081_v32, %v399_v25  ;;  %v448_v27 = vpop.f32.mrf.mxu1 }
  0xe1   :  { %524 = vst [vmem:[%s1162_s3 + $0x38] sm:$0xff] %v495_v24  ;;  %v449_v29 = vadd.f32 %v448_v27, %v400_v26 }
  0xe4   :  { %v507_v31 = vpop.f32.mrf.mxu3 }
  0xe5   :  { %v508_v34 = vadd.f32 %v507_v31, %v459_v30 }
  0xe6   :  { %v497_v33 = vpop.f32.mrf.mxu2  ;;  %v401_v36 = vpop.f32.mrf.mxu0 }
  0xe7   :  { %v498_v35 = vadd.f32 %v497_v33, %v449_v29  ;;  %529 = vst [vmem:[%s1162_s3 + $0x60] sm:$0xff] %v508_v34  ;;  %v450_v38 = vpop.f32.mrf.mxu1  ;;  %v402_v39 = vadd.f32 %v1081_v32, %v401_v36 }
  0xe9   :  { %525 = vst [vmem:[%s1162_s3 + $0x40] sm:$0xff] %v498_v35  ;;  %v451_v41 = vadd.f32 %v450_v38, %v402_v39 }
  0xec   :  { %v509_v42 = vpop.f32.mrf.mxu3 }
  0xed   :  { %v510_v45 = vadd.f32 %v509_v42, %v461_v40 }
  0xee   :  { %v499_v43 = vpop.f32.mrf.mxu2  ;;  %v404_v47 = vpop.f32.mrf.mxu0 }
  0xef   :  { %v500_v46 = vadd.f32 %v499_v43, %v451_v41  ;;  %530 = vst [vmem:[%s1162_s3 + $0x68] sm:$0xff] %v510_v45  ;;  %v405_v48 = vadd.f32 %v1081_v32, %v404_v47  ;;  %v453_v49 = vpop.f32.mrf.mxu1 }
  0xf1   :  { %526 = vst [vmem:[%s1162_s3 + $0x48] sm:$0xff] %v500_v46  ;;  %v454_v50 = vadd.f32 %v453_v49, %v405_v48 }
  0xf4   :  { %v512_v53 = vpop.f32.mrf.mxu3 }
  0xf5   :  { %v513_v55 = vadd.f32 %v512_v53, %v464_v52 }
  0xf6   :  { %v502_v54 = vpop.f32.mrf.mxu2  ;;  %v406_v57 = vpop.f32.mrf.mxu0 }
  0xf7   :  { %v503_v56 = vadd.f32 %v502_v54, %v454_v50  ;;  %531 = vst [vmem:[%s1162_s3 + $0x70] sm:$0xff] %v513_v55  ;;  %v407_v59 = vadd.f32 %v1081_v32, %v406_v57  ;;  %v455_v61 = vpop.f32.mrf.mxu1 }
  0xf9   :  { %527 = vst [vmem:[%s1162_s3 + $0x50] sm:$0xff] %v503_v56  ;;  %v456_v62 = vadd.f32 %v455_v61, %v407_v59 }
  0xfc   :  { %v514_v63 = vpop.f32.mrf.mxu3 }
  0xfd   :  { %v515_v1 = vadd.f32 %v514_v63, %v466_v60 }
  0xfe   :  { %v504_v0 = vpop.f32.mrf.mxu2 }
  0xff   :  { %v505_v2 = vadd.f32 %v504_v0, %v456_v62  ;;  %532 = vst [vmem:[%s1162_s3 + $0x78] sm:$0xff] %v515_v1 }
 0x101   :  { %528 = vst [vmem:[%s1162_s3 + $0x58] sm:$0xff] %v505_v2 }

// kernel: detector_forward.7
= control target key start
LH: loop header
LB: loop body
LE: loop exit
PB: predicated region body
PF: predicated region fallthrough
CT: control target
= control target key end

     0   :  { %s1214_s1 = inlined_call_operand.vmem [shape: bf16[384,128], index: 1, kind: input, shape index: {}]   ;;  %s1215_s2 = inlined_call_operand.vmem [shape: f32[1,128], index: 2, kind: input, shape index: {}]   ;;  %s1216_s0 = inlined_call_operand.vmem [shape: bf16[128,384], index: 0, kind: input, shape index: {}]   ;;  %s1217_s3 = inlined_call_operand.vmem [shape: bf16[128,128], index: 3, kind: output, shape index: {}]  }
   0x1   :  { %v792_v0 = vld [vmem:[%s1214_s1 + $0x38] sm:$0xff]  ;;  %v791_v3 = vld [vmem:[%s1214_s1 + $0x30] sm:$0xff]  ;;  %v790_v6 = vld [vmem:[%s1214_s1 + $0x28] sm:$0xff] }
   0x2   :  { %v907_v1 = vld [vmem:[%s1214_s1 + $0x78] sm:$0xff]  ;;  %370 = vmatpush.bf16.msra.mxu0 %v792_v0  ;;  %856 = vmatpush.bf16.msra.mxu3 %v792_v0  ;;  %v922_v4 = vld [vmem:[%s1214_s1 + $0x70] sm:$0xff]  ;;  %v798_v7 = vld [vmem:[%s1214_s1 + $0x68] sm:$0xff] }
   0x3   :  { %v912_v2 = vld [vmem:[%s1214_s1 + $0xb8] sm:$0xff]  ;;  %419 = vmatpush.bf16.msra.mxu1 %v907_v1  ;;  %v927_v5 = vld [vmem:[%s1214_s1 + $0xb0] sm:$0xff]  ;;  %v940_v8 = vld [vmem:[%s1214_s1 + $0xa8] sm:$0xff] }
   0x4   :  { %468 = vmatpush.bf16.msra.mxu2 %v912_v2  ;;  %v789_v9 = vld [vmem:[%s1214_s1 + $0x20] sm:$0xff]  ;;  %v788_v12 = vld [vmem:[%s1214_s1 + $0x18] sm:$0xff]  ;;  %v787_v15 = vld [vmem:[%s1214_s1 + $0x10] sm:$0xff] }
   0x5   :  { %v797_v10 = vld [vmem:[%s1214_s1 + $0x60] sm:$0xff]  ;;  %v796_v13 = vld [vmem:[%s1214_s1 + $0x58] sm:$0xff]  ;;  %v795_v16 = vld [vmem:[%s1214_s1 + $0x50] sm:$0xff] }
   0x6   :  { %371 = vmatpush.bf16.msra.mxu0 %v791_v3  ;;  %857 = vmatpush.bf16.msra.mxu3 %v791_v3  ;;  %v952_v11 = vld [vmem:[%s1214_s1 + $0xa0] sm:$0xff]  ;;  %v964_v14 = vld [vmem:[%s1214_s1 + $0x98] sm:$0xff]  ;;  %v976_v17 = vld [vmem:[%s1214_s1 + $0x90] sm:$0xff] }
   0x7   :  { %420 = vmatpush.bf16.msra.mxu1 %v922_v4  ;;  %v786_v18 = vld [vmem:[%s1214_s1 + $0x8] sm:$0xff]  ;;  %v785_v21 = vld [vmem:[%s1214_s1] sm:$0xff]  ;;  %v643_v26 = vld [vmem:[%s1216_s0 + $0x90] sm:$0xf] }
   0x8   :  { %469 = vmatpush.bf16.msra.mxu2 %v927_v5  ;;  %v794_v19 = vld [vmem:[%s1214_s1 + $0x48] sm:$0xff]  ;;  %v793_v22 = vld [vmem:[%s1214_s1 + $0x40] sm:$0xff]  ;;  %v780_v27 = vld [vmem:[%s1216_s0 + $0x98] sm:$0xf0] }
   0x9   :  { %v988_v20 = vld [vmem:[%s1214_s1 + $0x88] sm:$0xff]  ;;  %v999_v23 = vld [vmem:[%s1214_s1 + $0x80] sm:$0xff]  ;;  %v573_v29 = vld [vmem:[%s1216_s0 + $0xc] sm:$0xf0]  ;;  %v644_v33 = vor.u32 %v780_v27, %v643_v26 }
   0xa   :  { %372 = vmatpush.bf16.msra.mxu0 %v790_v6  ;;  %858 = vmatpush.bf16.msra.mxu3 %v790_v6  ;;  %v571_v24 = vld [vmem:[%s1216_s0] sm:$0xf]  ;;  %v762_v25 = vld [vmem:[%s1216_s0 + $0x8] sm:$0xf0]  ;;  %v761_v28 = vld [vmem:[%s1216_s0 + $0x4] sm:$0xf] }
   0xb   :  { %421 = vmatpush.bf16.msra.mxu1 %v798_v7  ;;  %v579_v30 = vld [vmem:[%s1216_s0 + $0x8] sm:$0xf]  ;;  %v763_v31 = vld [vmem:[%s1216_s0 + $0x10] sm:$0xf0]  ;;  %v572_v32 = vor.u32 %v762_v25, %v571_v24  ;;  %v576_v34 = vor.u32 %v761_v28, %v573_v29  ;;  %v583_v36 = vld [vmem:[%s1216_s0 + $0x18] sm:$0xf] }
   0xc   :  { %470 = vmatpush.bf16.msra.mxu2 %v940_v8  ;;  %v580_v35 = vor.u32 %v763_v31, %v579_v30  ;;  %v765_v37 = vld [vmem:[%s1216_s0 + $0x20] sm:$0xf0]  ;;  %v655_v38 = vld [vmem:[%s1216_s0 + $0xa8] sm:$0xf]  ;;  %v783_v39 = vld [vmem:[%s1216_s0 + $0xb0] sm:$0xf0] }
   0xd   :  { %v764_v40 = vld [vmem:[%s1216_s0 + $0x1c] sm:$0xf]  ;;  %v585_v41 = vld [vmem:[%s1216_s0 + $0x24] sm:$0xf0]  ;;  %v591_v42 = vld [vmem:[%s1216_s0 + $0x20] sm:$0xf]  ;;  %v584_v44 = vor.u32 %v765_v37, %v583_v36  ;;  %v656_v45 = vor.u32 %v783_v39, %v655_v38 }
   0xe   :  { %373 = vmatpush.bf16.msra.mxu0 %v789_v9  ;;  %859 = vmatpush.bf16.msra.mxu3 %v789_v9  ;;  %v766_v43 = vld [vmem:[%s1216_s0 + $0x28] sm:$0xf0]  ;;  %v588_v46 = vor.u32 %v764_v40, %v585_v41  ;;  %v595_v48 = vld [vmem:[%s1216_s0 + $0x30] sm:$0xf]  ;;  %v768_v49 = vld [vmem:[%s1216_s0 + $0x38] sm:$0xf0] }
   0xf   :  { %422 = vmatpush.bf16.msra.mxu1 %v797_v10  ;;  %v592_v47 = vor.u32 %v766_v43, %v591_v42  ;;  %v767_v50 = vld [vmem:[%s1216_s0 + $0x34] sm:$0xf]  ;;  %v645_v52 = vld [vmem:[%s1216_s0 + $0x9c] sm:$0xf0]  ;;  %v603_v54 = vld [vmem:[%s1216_s0 + $0x38] sm:$0xf]  ;;  %v596_v56 = vor.u32 %v768_v49, %v595_v48 }
  0x10   :  { %471 = vmatpush.bf16.msra.mxu2 %v952_v11  ;;  %v779_v51 = vld [vmem:[%s1216_s0 + $0x94] sm:$0xf]  ;;  %v597_v53 = vld [vmem:[%s1216_s0 + $0x3c] sm:$0xf0]  ;;  %v769_v55 = vld [vmem:[%s1216_s0 + $0x40] sm:$0xf0] }
  0x11   :  { %v648_v57 = vor.u32 %v779_v51, %v645_v52  ;;  %v600_v58 = vor.u32 %v767_v50, %v597_v53  ;;  %v604_v59 = vor.u32 %v769_v55, %v603_v54  ;;  %v607_v60 = vld [vmem:[%s1216_s0 + $0x48] sm:$0xf]  ;;  %v771_v61 = vld [vmem:[%s1216_s0 + $0x50] sm:$0xf0]  ;;  %v770_v62 = vld [vmem:[%s1216_s0 + $0x4c] sm:$0xf] }
  0x12   :  { %374 = vmatpush.bf16.msra.mxu0 %v788_v12  ;;  %860 = vmatpush.bf16.msra.mxu3 %v788_v12  ;;  %v782_v63 = vld [vmem:[%s1216_s0 + $0xac] sm:$0xf]  ;;  %v657_v0 = vld [vmem:[%s1216_s0 + $0xb4] sm:$0xf0]  ;;  %v772_v3 = vld [vmem:[%s1216_s0 + $0x58] sm:$0xf0] }
  0x13   :  { %423 = vmatpush.bf16.msra.mxu1 %v796_v13  ;;  %v774_v9 = vld [vmem:[%s1216_s0 + $0x68] sm:$0xf0]  ;;  %v781_v12 = vld [vmem:[%s1216_s0 + $0xa0] sm:$0xf0]  ;;  %v784_v24 = vld [vmem:[%s1216_s0 + $0xb8] sm:$0xf0] }
  0x14   :  { %472 = vmatpush.bf16.msra.mxu2 %v964_v14  ;;  %v633_v25 = vld [vmem:[%s1216_s0 + $0x84] sm:$0xf0]  ;;  %v639_v26 = vld [vmem:[%s1216_s0 + $0x80] sm:$0xf]  ;;  %v778_v27 = vld [vmem:[%s1216_s0 + $0x88] sm:$0xf0] }
  0x15   :  { %v640_v31 = vor.u32 %v778_v27, %v639_v26 }
  0x16   :  { %375 = vmatpush.bf16.msra.mxu0 %v787_v15  ;;  %861 = vmatpush.bf16.msra.mxu3 %v787_v15  ;;  %v775_v15 = vld [vmem:[%s1216_s0 + $0x70] sm:$0xf0] }
  0x17   :  { %424 = vmatpush.bf16.msra.mxu1 %v795_v16 }
  0x18   :  { %473 = vmatpush.bf16.msra.mxu2 %v976_v17 }
  0x1a   :  { %376 = vmatpush.bf16.msra.mxu0 %v786_v18  ;;  %862 = vmatpush.bf16.msra.mxu3 %v786_v18 }
  0x1b   :  { %425 = vmatpush.bf16.msra.mxu1 %v794_v19 }
  0x1c   :  { %474 = vmatpush.bf16.msra.mxu2 %v988_v20 }
  0x1e   :  { %377 = vmatpush.bf16.msra.mxu0 %v785_v21  ;;  %863 = vmatpush.bf16.msra.mxu3 %v785_v21  ;;  %v777_v21 = vld [vmem:[%s1216_s0 + $0x80] sm:$0xf0] }
  0x1f   :  { %426 = vmatpush.bf16.msra.mxu1 %v793_v22 }
  0x20   :  { %475 = vmatpush.bf16.msra.mxu2 %v999_v23 }
  0x21   :  { %378 = vmatmul.bf16.vlgmr.msra.gmra.mxu0 %v572_v32  ;;  %408 = vmatmul.bf16.vlgmr.msra.gmra.mxu3 %v644_v33 }
  0x22   :  { %864 = vmatpush.bf16.msrb.mxu3 %v907_v1  ;;  %427 = vmatmul.bf16.vlgmr.msra.gmra.mxu1 %v576_v34  ;;  %v609_v1 = vld [vmem:[%s1216_s0 + $0x54] sm:$0xf0]  ;;  %v1160_v34 = vld [vmem:[%s1215_s2] ss:$0 sm:$0xff] }
  0x23   :  { %476 = vmatmul.bf16.vlgmr.msra.gmra.mxu2 %v580_v35  ;;  %v612_v6 = vor.u32 %v770_v62, %v609_v1 }
  0x26   :  { %865 = vmatpush.bf16.msrb.mxu3 %v922_v4  ;;  %v608_v4 = vor.u32 %v771_v61, %v607_v60 }
  0x2a   :  { %866 = vmatpush.bf16.msrb.mxu3 %v798_v7 }
  0x2e   :  { %867 = vmatpush.bf16.msrb.mxu3 %v797_v10  ;;  %v773_v10 = vld [vmem:[%s1216_s0 + $0x64] sm:$0xf] }
  0x31   :  { %383 = vmatmul.bf16.gmra.mxu0 %v584_v44  ;;  %413 = vmatmul.bf16.gmra.mxu3 %v656_v45 }
  0x32   :  { %868 = vmatpush.bf16.msrb.mxu3 %v796_v13  ;;  %432 = vmatmul.bf16.gmra.mxu1 %v588_v46  ;;  %v621_v13 = vld [vmem:[%s1216_s0 + $0x6c] sm:$0xf0] }
  0x33   :  { %481 = vmatmul.bf16.gmra.mxu2 %v592_v47  ;;  %v624_v18 = vor.u32 %v773_v10, %v621_v13 }
  0x36   :  { %869 = vmatpush.bf16.msrb.mxu3 %v795_v16 }
  0x3a   :  { %870 = vmatpush.bf16.msrb.mxu3 %v794_v19 }
  0x3e   :  { %871 = vmatpush.bf16.msrb.mxu3 %v793_v22  ;;  %v776_v22 = vld [vmem:[%s1216_s0 + $0x7c] sm:$0xf] }
  0x3f   :  { %v636_v30 = vor.u32 %v776_v22, %v633_v25 }
  0x41   :  { %388 = vmatmul.bf16.gmra.mxu0 %v596_v56  ;;  %457 = vmatmul.bf16.vlgmr.msrb.gmra.mxu3 %v648_v57 }
  0x42   :  { %872 = vmatpush.bf16.msra.mxu3 %v912_v2  ;;  %437 = vmatmul.bf16.gmra.mxu1 %v600_v58  ;;  %v615_v2 = vld [vmem:[%s1216_s0 + $0x50] sm:$0xf] }
  0x43   :  { %486 = vmatmul.bf16.gmra.mxu2 %v604_v59  ;;  %v616_v7 = vor.u32 %v772_v3, %v615_v2 }
  0x46   :  { %873 = vmatpush.bf16.msra.mxu3 %v927_v5  ;;  %v660_v5 = vor.u32 %v782_v63, %v657_v0 }
  0x4a   :  { %874 = vmatpush.bf16.msra.mxu3 %v940_v8  ;;  %v619_v8 = vld [vmem:[%s1216_s0 + $0x60] sm:$0xf] }
  0x4b   :  { %v620_v16 = vor.u32 %v774_v9, %v619_v8 }
  0x4e   :  { %875 = vmatpush.bf16.msra.mxu3 %v952_v11  ;;  %v651_v11 = vld [vmem:[%s1216_s0 + $0x98] sm:$0xf] }
  0x51   :  { %393 = vmatmul.bf16.gmra.mxu0 %v608_v4  ;;  %462 = vmatmul.bf16.gmra.mxu3 %v660_v5 }
  0x52   :  { %876 = vmatpush.bf16.msra.mxu3 %v964_v14  ;;  %442 = vmatmul.bf16.gmra.mxu1 %v612_v6  ;;  %v627_v14 = vld [vmem:[%s1216_s0 + $0x68] sm:$0xf] }
  0x53   :  { %491 = vmatmul.bf16.gmra.mxu2 %v616_v7  ;;  %v628_v19 = vor.u32 %v775_v15, %v627_v14 }
  0x56   :  { %877 = vmatpush.bf16.msra.mxu3 %v976_v17  ;;  %v652_v17 = vor.u32 %v781_v12, %v651_v11 }
  0x5a   :  { %878 = vmatpush.bf16.msra.mxu3 %v988_v20  ;;  %v631_v20 = vld [vmem:[%s1216_s0 + $0x78] sm:$0xf] }
  0x5b   :  { %v632_v28 = vor.u32 %v777_v21, %v631_v20 }
  0x5e   :  { %879 = vmatpush.bf16.msra.mxu3 %v999_v23  ;;  %v663_v23 = vld [vmem:[%s1216_s0 + $0xb0] sm:$0xf] }
  0x5f   :  { %v664_v29 = vor.u32 %v784_v24, %v663_v23 }
  0x61   :  { %398 = vmatmul.bf16.gmra.mxu0 %v620_v16  ;;  %506 = vmatmul.bf16.vlgmr.msra.gmra.mxu3 %v652_v17 }
  0x62   :  { %447 = vmatmul.bf16.gmra.mxu1 %v624_v18 }
  0x63   :  { %496 = vmatmul.bf16.gmra.mxu2 %v628_v19 }
  0x71   :  { %403 = vmatmul.bf16.gmra.mxu0 %v632_v28  ;;  %511 = vmatmul.bf16.gmra.mxu3 %v664_v29 }
  0x72   :  { %452 = vmatmul.bf16.gmra.mxu1 %v636_v30 }
  0x73   :  { %501 = vmatmul.bf16.gmra.mxu2 %v640_v31 }
  0x9e   :  { %v379_v32 = vpop.f32.mrf.mxu0 }
  0x9f   :  { %v428_v33 = vpop.f32.mrf.mxu1  ;;  %v380_v35 = vadd.f32 %v1160_v34, %v379_v32 }
  0xa1   :  { %v429_v40 = vadd.f32 %v428_v33, %v380_v35 }
  0xa4   :  { %v1163_v36 = vpop.f32.mrf.mxu3 }
  0xa6   :  { %v477_v37 = vpop.f32.mrf.mxu2  ;;  %v381_v38 = vpop.f32.mrf.mxu0 }
  0xa7   :  { %v430_v39 = vpop.f32.mrf.mxu1  ;;  %v382_v41 = vadd.f32 %v1160_v34, %v381_v38  ;;  %v478_v42 = vadd.f32 %v477_v37, %v429_v40 }
  0xa9   :  { %v431_v43 = vadd.f32 %v430_v39, %v382_v41  ;;  %v517_v49 = vmax.f32 %v478_v42, 0.0 }
  0xac   :  { %v1166_v44 = vpop.f32.mrf.mxu3 }
  0xae   :  { %v479_v45 = vpop.f32.mrf.mxu2  ;;  %v384_v47 = vpop.f32.mrf.mxu0 }
  0xaf   :  { %v480_v46 = vadd.f32 %v479_v45, %v431_v43  ;;  %v433_v48 = vpop.f32.mrf.mxu1  ;;  %v385_v52 = vadd.f32 %v1160_v34, %v384_v47 }
  0xb1   :  { %v518_v50 = vmax.f32 %v480_v46, 0.0  ;;  %v434_v57 = vadd.f32 %v433_v48, %v385_v52  ;;  %v410_v46 = vadd.f32 %v1160_v34, %v1163_v36 }
  0xb3   :  { %v812_v51 = vpack.c.bf16 %v518_v50, %v517_v49  ;;  %v412_v50 = vadd.f32 %v1160_v34, %v1166_v44 }
  0xb4   :  { %v1172_v53 = vpop.f32.mrf.mxu3 }
  0xb5   :  { %813 = vst [vmem:[%s1217_s3] sm:$0xff] %v812_v51  }
  0xb6   :  { %v482_v54 = vpop.f32.mrf.mxu2  ;;  %v386_v55 = vpop.f32.mrf.mxu0 }
  0xb7   :  { %v435_v56 = vpop.f32.mrf.mxu1  ;;  %v387_v58 = vadd.f32 %v1160_v34, %v386_v55  ;;  %v483_v59 = vadd.f32 %v482_v54, %v434_v57 }
  0xb9   :  { %v436_v60 = vadd.f32 %v435_v56, %v387_v58  ;;  %v519_v2 = vmax.f32 %v483_v59, 0.0 }
  0xbc   :  { %v1175_v61 = vpop.f32.mrf.mxu3 }
  0xbe   :  { %v484_v62 = vpop.f32.mrf.mxu2  ;;  %v389_v0 = vpop.f32.mrf.mxu0 }
  0xbf   :  { %v485_v63 = vadd.f32 %v484_v62, %v436_v60  ;;  %v438_v1 = vpop.f32.mrf.mxu1  ;;  %v390_v5 = vadd.f32 %v1160_v34, %v389_v0 }
  0xc1   :  { %v520_v3 = vmax.f32 %v485_v63, 0.0  ;;  %v439_v10 = vadd.f32 %v438_v1, %v390_v5 }
  0xc3   :  { %v817_v4 = vpack.c.bf16 %v520_v3, %v519_v2 }
  0xc4   :  { %v458_v6 = vpop.f32.mrf.mxu3 }
  0xc5   :  { %849 = vst [vmem:[%s1217_s3 + $0x8] sm:$0xff] %v817_v4   ;;  %v459_v51 = vadd.f32 %v458_v6, %v410_v46 }
  0xc6   :  { %v487_v7 = vpop.f32.mrf.mxu2  ;;  %v391_v8 = vpop.f32.mrf.mxu0 }
  0xc7   :  { %v440_v9 = vpop.f32.mrf.mxu1  ;;  %v392_v11 = vadd.f32 %v1160_v34, %v391_v8  ;;  %v488_v12 = vadd.f32 %v487_v7, %v439_v10  ;;  %v415_v8 = vadd.f32 %v1160_v34, %v1172_v53 }
  0xc9   :  { %v441_v13 = vadd.f32 %v440_v9, %v392_v11  ;;  %v521_v19 = vmax.f32 %v488_v12, 0.0  ;;  %v417_v11 = vadd.f32 %v1160_v34, %v1175_v61 }
  0xcc   :  { %v460_v14 = vpop.f32.mrf.mxu3 }
  0xcd   :  { %v461_v52 = vadd.f32 %v460_v14, %v412_v50 }
  0xce   :  { %v489_v15 = vpop.f32.mrf.mxu2  ;;  %v394_v17 = vpop.f32.mrf.mxu0 }
  0xcf   :  { %v490_v16 = vadd.f32 %v489_v15, %v441_v13  ;;  %v443_v18 = vpop.f32.mrf.mxu1  ;;  %v395_v22 = vadd.f32 %v1160_v34, %v394_v17 }
  0xd1   :  { %v522_v20 = vmax.f32 %v490_v16, 0.0  ;;  %v444_v27 = vadd.f32 %v443_v18, %v395_v22 }
  0xd3   :  { %v822_v21 = vpack.c.bf16 %v522_v20, %v521_v19 }
  0xd4   :  { %v463_v23 = vpop.f32.mrf.mxu3 }
  0xd5   :  { %850 = vst [vmem:[%s1217_s3 + $0x10] sm:$0xff] %v822_v21   ;;  %v464_v12 = vadd.f32 %v463_v23, %v415_v8 }
  0xd6   :  { %v492_v24 = vpop.f32.mrf.mxu2  ;;  %v396_v25 = vpop.f32.mrf.mxu0 }
  0xd7   :  { %v445_v26 = vpop.f32.mrf.mxu1  ;;  %v397_v28 = vadd.f32 %v1160_v34, %v396_v25  ;;  %v493_v29 = vadd.f32 %v492_v24, %v444_v27 }
  0xd9   :  { %v446_v30 = vadd.f32 %v445_v26, %v397_v28  ;;  %v523_v38 = vmax.f32 %v493_v29, 0.0 }
  0xdc   :  { %v465_v31 = vpop.f32.mrf.mxu3 }
  0xdd   :  { %v466_v13 = vadd.f32 %v465_v31, %v417_v11 }
  0xde   :  { %v494_v32 = vpop.f32.mrf.mxu2  ;;  %v399_v35 = vpop.f32.mrf.mxu0 }
  0xdf   :  { %v495_v33 = vadd.f32 %v494_v32, %v446_v30  ;;  %v448_v37 = vpop.f32.mrf.mxu1  ;;  %v400_v41 = vadd.f32 %v1160_v34, %v399_v35 }
  0xe1   :  { %v524_v39 = vmax.f32 %v495_v33, 0.0  ;;  %v449_v48 = vadd.f32 %v448_v37, %v400_v41 }
  0xe3   :  { %v827_v40 = vpack.c.bf16 %v524_v39, %v523_v38 }
  0xe4   :  { %v507_v42 = vpop.f32.mrf.mxu3 }
  0xe5   :  { %851 = vst [vmem:[%s1217_s3 + $0x18] sm:$0xff] %v827_v40   ;;  %v508_v54 = vadd.f32 %v507_v42, %v459_v51 }
  0xe6   :  { %v497_v43 = vpop.f32.mrf.mxu2  ;;  %v401_v45 = vpop.f32.mrf.mxu0 }
  0xe7   :  { %v450_v47 = vpop.f32.mrf.mxu1  ;;  %v402_v49 = vadd.f32 %v1160_v34, %v401_v45  ;;  %v498_v55 = vadd.f32 %v497_v43, %v449_v48  ;;  %v529_v63 = vmax.f32 %v508_v54, 0.0 }
  0xe9   :  { %v451_v56 = vadd.f32 %v450_v47, %v402_v49  ;;  %v525_v36 = vmax.f32 %v498_v55, 0.0 }
  0xec   :  { %v509_v57 = vpop.f32.mrf.mxu3 }
  0xed   :  { %v510_v59 = vadd.f32 %v509_v57, %v461_v52 }
  0xee   :  { %v499_v58 = vpop.f32.mrf.mxu2  ;;  %v404_v62 = vpop.f32.mrf.mxu0 }
  0xef   :  { %v500_v60 = vadd.f32 %v499_v58, %v451_v56  ;;  %v530_v0 = vmax.f32 %v510_v59, 0.0  ;;  %v453_v3 = vpop.f32.mrf.mxu1  ;;  %v405_v44 = vadd.f32 %v1160_v34, %v404_v62 }
  0xf1   :  { %v526_v1 = vmax.f32 %v500_v60, 0.0  ;;  %v842_v2 = vpack.c.bf16 %v530_v0, %v529_v63  ;;  %v454_v9 = vadd.f32 %v453_v3, %v405_v44 }
  0xf3   :  { %v832_v4 = vpack.c.bf16 %v526_v1, %v525_v36  ;;  %854 = vst [vmem:[%s1217_s3 + $0x30] sm:$0xff] %v842_v2  }
  0xf4   :  { %v512_v5 = vpop.f32.mrf.mxu3 }
  0xf5   :  { %852 = vst [vmem:[%s1217_s3 + $0x20] sm:$0xff] %v832_v4   ;;  %v513_v14 = vadd.f32 %v512_v5, %v464_v12 }
  0xf6   :  { %v502_v6 = vpop.f32.mrf.mxu2  ;;  %v406_v7 = vpop.f32.mrf.mxu0 }
  0xf7   :  { %v407_v10 = vadd.f32 %v1160_v34, %v406_v7  ;;  %v455_v15 = vpop.f32.mrf.mxu1  ;;  %v503_v16 = vadd.f32 %v502_v6, %v454_v9  ;;  %v531_v22 = vmax.f32 %v513_v14, 0.0 }
  0xf9   :  { %v456_v17 = vadd.f32 %v455_v15, %v407_v10  ;;  %v527_v25 = vmax.f32 %v503_v16, 0.0 }
  0xfc   :  { %v514_v18 = vpop.f32.mrf.mxu3 }
  0xfd   :  { %v515_v20 = vadd.f32 %v514_v18, %v466_v13 }
  0xfe   :  { %v504_v19 = vpop.f32.mrf.mxu2 }
  0xff   :  { %v505_v21 = vadd.f32 %v504_v19, %v456_v17  ;;  %v532_v24 = vmax.f32 %v515_v20, 0.0 }
 0x101   :  { %v528_v53 = vmax.f32 %v505_v21, 0.0  ;;  %v847_v26 = vpack.c.bf16 %v532_v24, %v531_v22 }
 0x103   :  { %v837_v27 = vpack.c.bf16 %v528_v53, %v527_v25  ;;  %855 = vst [vmem:[%s1217_s3 + $0x38] sm:$0xff] %v847_v26  }
 0x105   :  { %853 = vst [vmem:[%s1217_s3 + $0x28] sm:$0xff] %v837_v27  }

// kernel: detector_forward.9
= control target key start
LH: loop header
LB: loop body
LE: loop exit
PB: predicated region body
PF: predicated region fallthrough
CT: control target
= control target key end

     0   :  { %s979_s1 = inlined_call_operand.vmem [shape: bf16[640,128], index: 1, kind: input, shape index: {}]   ;;  %s980_s2 = inlined_call_operand.vmem [shape: f32[1,128], index: 2, kind: input, shape index: {}]   ;;  %s981_s0 = inlined_call_operand.vmem [shape: bf16[32,640], index: 0, kind: input, shape index: {}]   ;;  %s982_s3 = inlined_call_operand.vmem [shape: f32[32,128], index: 3, kind: output, shape index: {}]  }
   0x1   :  { %v722_v0 = vld [vmem:[%s979_s1 + $0x38] sm:$0xff]  ;;  %v721_v4 = vld [vmem:[%s979_s1 + $0x30] sm:$0xff]  ;;  %v720_v8 = vld [vmem:[%s979_s1 + $0x28] sm:$0xff] }
   0x2   :  { %v730_v1 = vld [vmem:[%s979_s1 + $0x78] sm:$0xff]  ;;  %402 = vmatpush.bf16.msra.mxu0 %v722_v0  ;;  %v729_v5 = vld [vmem:[%s979_s1 + $0x70] sm:$0xff]  ;;  %v728_v9 = vld [vmem:[%s979_s1 + $0x68] sm:$0xff] }
   0x3   :  { %v738_v2 = vld [vmem:[%s979_s1 + $0xb8] sm:$0xff]  ;;  %421 = vmatpush.bf16.msra.mxu1 %v730_v1  ;;  %v737_v6 = vld [vmem:[%s979_s1 + $0xb0] sm:$0xff]  ;;  %v736_v10 = vld [vmem:[%s979_s1 + $0xa8] sm:$0xff] }
   0x4   :  { %v746_v3 = vld [vmem:[%s979_s1 + $0xf8] sm:$0xff]  ;;  %440 = vmatpush.bf16.msra.mxu2 %v738_v2  ;;  %v745_v7 = vld [vmem:[%s979_s1 + $0xf0] sm:$0xff]  ;;  %v744_v11 = vld [vmem:[%s979_s1 + $0xe8] sm:$0xff] }
   0x5   :  { %459 = vmatpush.bf16.msra.mxu3 %v746_v3  ;;  %v719_v12 = vld [vmem:[%s979_s1 + $0x20] sm:$0xff]  ;;  %v718_v16 = vld [vmem:[%s979_s1 + $0x18] sm:$0xff]  ;;  %v717_v20 = vld [vmem:[%s979_s1 + $0x10] sm:$0xff] }
   0x6   :  { %403 = vmatpush.bf16.msra.mxu0 %v721_v4  ;;  %v727_v13 = vld [vmem:[%s979_s1 + $0x60] sm:$0xff]  ;;  %v726_v17 = vld [vmem:[%s979_s1 + $0x58] sm:$0xff]  ;;  %v725_v21 = vld [vmem:[%s979_s1 + $0x50] sm:$0xff] }
   0x7   :  { %422 = vmatpush.bf16.msra.mxu1 %v729_v5  ;;  %v735_v14 = vld [vmem:[%s979_s1 + $0xa0] sm:$0xff]  ;;  %v734_v18 = vld [vmem:[%s979_s1 + $0x98] sm:$0xff]  ;;  %v733_v22 = vld [vmem:[%s979_s1 + $0x90] sm:$0xff] }
   0x8   :  { %441 = vmatpush.bf16.msra.mxu2 %v737_v6  ;;  %v743_v15 = vld [vmem:[%s979_s1 + $0xe0] sm:$0xff]  ;;  %v742_v19 = vld [vmem:[%s979_s1 + $0xd8] sm:$0xff]  ;;  %v741_v23 = vld [vmem:[%s979_s1 + $0xd0] sm:$0xff] }
   0x9   :  { %460 = vmatpush.bf16.msra.mxu3 %v745_v7  ;;  %v716_v24 = vld [vmem:[%s979_s1 + $0x8] sm:$0xff]  ;;  %v715_v28 = vld [vmem:[%s979_s1] sm:$0xff]  ;;  %v707_v33 = vld [vmem:[%s981_s0 + $0x10] sm:$0xf0] }
   0xa   :  { %404 = vmatpush.bf16.msra.mxu0 %v720_v8  ;;  %v724_v25 = vld [vmem:[%s979_s1 + $0x48] sm:$0xff]  ;;  %v723_v29 = vld [vmem:[%s979_s1 + $0x40] sm:$0xff]  ;;  %v509_v35 = vld [vmem:[%s981_s0 + $0x14] sm:$0xf0] }
   0xb   :  { %423 = vmatpush.bf16.msra.mxu1 %v728_v9  ;;  %v732_v26 = vld [vmem:[%s979_s1 + $0x88] sm:$0xff]  ;;  %v731_v30 = vld [vmem:[%s979_s1 + $0x80] sm:$0xff]  ;;  %v708_v37 = vld [vmem:[%s981_s0 + $0x18] sm:$0xf0] }
   0xc   :  { %442 = vmatpush.bf16.msra.mxu2 %v736_v10  ;;  %v740_v27 = vld [vmem:[%s979_s1 + $0xc8] sm:$0xff]  ;;  %v739_v31 = vld [vmem:[%s979_s1 + $0xc0] sm:$0xff]  ;;  %v754_v40 = vld [vmem:[%s979_s1 + $0x138] sm:$0xff] }
   0xd   :  { %461 = vmatpush.bf16.msra.mxu3 %v744_v11  ;;  %v507_v32 = vld [vmem:[%s981_s0] sm:$0xf]  ;;  %v705_v34 = vld [vmem:[%s981_s0 + $0x4] sm:$0xf]  ;;  %v515_v36 = vld [vmem:[%s981_s0 + $0x8] sm:$0xf] }
   0xe   :  { %405 = vmatpush.bf16.msra.mxu0 %v719_v12  ;;  %v706_v38 = vld [vmem:[%s981_s0 + $0xc] sm:$0xf]  ;;  %v517_v39 = vld [vmem:[%s981_s0 + $0x1c] sm:$0xf0]  ;;  %v508_v41 = vor.u32 %v707_v33, %v507_v32  ;;  %v512_v42 = vor.u32 %v705_v34, %v509_v35  ;;  %v516_v43 = vor.u32 %v708_v37, %v515_v36  ;;  %v753_v45 = vld [vmem:[%s979_s1 + $0x130] sm:$0xff] }
   0xf   :  { %424 = vmatpush.bf16.msra.mxu1 %v727_v13  ;;  %v520_v44 = vor.u32 %v706_v38, %v517_v39  ;;  %v752_v46 = vld [vmem:[%s979_s1 + $0x128] sm:$0xff]  ;;  %v751_v47 = vld [vmem:[%s979_s1 + $0x120] sm:$0xff]  ;;  %v712_v49 = vld [vmem:[%s981_s0 + $0x38] sm:$0xf0] }
  0x10   :  { %443 = vmatpush.bf16.msra.mxu2 %v735_v14  ;;  %v527_v48 = vld [vmem:[%s981_s0 + $0x28] sm:$0xf]  ;;  %v710_v50 = vld [vmem:[%s981_s0 + $0x2c] sm:$0xf]  ;;  %v529_v51 = vld [vmem:[%s981_s0 + $0x3c] sm:$0xf0] }
  0x11   :  { %462 = vmatpush.bf16.msra.mxu3 %v743_v15  ;;  %v535_v52 = vld [vmem:[%s981_s0 + $0x30] sm:$0xf]  ;;  %v713_v53 = vld [vmem:[%s981_s0 + $0x40] sm:$0xf0]  ;;  %v711_v54 = vld [vmem:[%s981_s0 + $0x34] sm:$0xf]  ;;  %v528_v57 = vor.u32 %v712_v49, %v527_v48  ;;  %v532_v58 = vor.u32 %v710_v50, %v529_v51 }
  0x12   :  { %406 = vmatpush.bf16.msra.mxu0 %v718_v16  ;;  %v537_v55 = vld [vmem:[%s981_s0 + $0x44] sm:$0xf0]  ;;  %v750_v56 = vld [vmem:[%s979_s1 + $0x118] sm:$0xff]  ;;  %v536_v59 = vor.u32 %v713_v53, %v535_v52  ;;  %v749_v61 = vld [vmem:[%s979_s1 + $0x110] sm:$0xff] }
  0x13   :  { %425 = vmatpush.bf16.msra.mxu1 %v726_v17  ;;  %v540_v60 = vor.u32 %v711_v54, %v537_v55  ;;  %v748_v62 = vld [vmem:[%s979_s1 + $0x108] sm:$0xff]  ;;  %v747_v63 = vld [vmem:[%s979_s1 + $0x100] sm:$0xff]  ;;  %v523_v0 = vld [vmem:[%s981_s0 + $0x10] sm:$0xf] }
  0x14   :  { %444 = vmatpush.bf16.msra.mxu2 %v734_v18  ;;  %v709_v1 = vld [vmem:[%s981_s0 + $0x20] sm:$0xf0]  ;;  %v543_v2 = vld [vmem:[%s981_s0 + $0x38] sm:$0xf]  ;;  %v714_v3 = vld [vmem:[%s981_s0 + $0x48] sm:$0xf0] }
  0x15   :  { %463 = vmatpush.bf16.msra.mxu3 %v742_v19  ;;  %v524_v4 = vor.u32 %v709_v1, %v523_v0  ;;  %v544_v5 = vor.u32 %v714_v3, %v543_v2  ;;  %v763_v15 = vld [vmem:[%s980_s2] ss:$0 sm:$0xff] }
  0x16   :  { %407 = vmatpush.bf16.msra.mxu0 %v717_v20 }
  0x17   :  { %426 = vmatpush.bf16.msra.mxu1 %v725_v21 }
  0x18   :  { %445 = vmatpush.bf16.msra.mxu2 %v733_v22 }
  0x19   :  { %464 = vmatpush.bf16.msra.mxu3 %v741_v23 }
  0x1a   :  { %408 = vmatpush.bf16.msra.mxu0 %v716_v24 }
  0x1b   :  { %427 = vmatpush.bf16.msra.mxu1 %v724_v25 }
  0x1c   :  { %446 = vmatpush.bf16.msra.mxu2 %v732_v26 }
  0x1d   :  { %465 = vmatpush.bf16.msra.mxu3 %v740_v27 }
  0x1e   :  { %409 = vmatpush.bf16.msra.mxu0 %v715_v28 }
  0x1f   :  { %428 = vmatpush.bf16.msra.mxu1 %v723_v29 }
  0x20   :  { %447 = vmatpush.bf16.msra.mxu2 %v731_v30 }
  0x21   :  { %466 = vmatpush.bf16.msra.mxu3 %v739_v31  ;;  %410 = vmatmul.bf16.vlgmr.msra.gmra.mxu0 %v508_v41 }
  0x22   :  { %478 = vmatpush.bf16.msrb.mxu0 %v754_v40  ;;  %429 = vmatmul.bf16.vlgmr.msra.gmra.mxu1 %v512_v42 }
  0x23   :  { %755 = vmatpush.bf16.msrb.mxu1 %v754_v40  ;;  %448 = vmatmul.bf16.vlgmr.msra.gmra.mxu2 %v516_v43 }
  0x24   :  { %467 = vmatmul.bf16.vlgmr.msra.gmra.mxu3 %v520_v44 }
  0x26   :  { %479 = vmatpush.bf16.msrb.mxu0 %v753_v45 }
  0x27   :  { %756 = vmatpush.bf16.msrb.mxu1 %v753_v45 }
  0x2a   :  { %480 = vmatpush.bf16.msrb.mxu0 %v752_v46 }
  0x2b   :  { %757 = vmatpush.bf16.msrb.mxu1 %v752_v46 }
  0x2e   :  { %481 = vmatpush.bf16.msrb.mxu0 %v751_v47 }
  0x2f   :  { %758 = vmatpush.bf16.msrb.mxu1 %v751_v47 }
  0x31   :  { %415 = vmatmul.bf16.gmra.mxu0 %v528_v57 }
  0x32   :  { %482 = vmatpush.bf16.msrb.mxu0 %v750_v56  ;;  %434 = vmatmul.bf16.gmra.mxu1 %v532_v58 }
  0x33   :  { %759 = vmatpush.bf16.msrb.mxu1 %v750_v56  ;;  %453 = vmatmul.bf16.gmra.mxu2 %v536_v59 }
  0x34   :  { %472 = vmatmul.bf16.gmra.mxu3 %v540_v60 }
  0x36   :  { %483 = vmatpush.bf16.msrb.mxu0 %v749_v61 }
  0x37   :  { %760 = vmatpush.bf16.msrb.mxu1 %v749_v61 }
  0x3a   :  { %484 = vmatpush.bf16.msrb.mxu0 %v748_v62 }
  0x3b   :  { %761 = vmatpush.bf16.msrb.mxu1 %v748_v62 }
  0x3e   :  { %485 = vmatpush.bf16.msrb.mxu0 %v747_v63 }
  0x3f   :  { %762 = vmatpush.bf16.msrb.mxu1 %v747_v63 }
  0x41   :  { %486 = vmatmul.bf16.vlgmr.msrb.gmra.mxu0 %v524_v4 }
  0x42   :  { %491 = vmatmul.bf16.vlgmr.msrb.gmra.mxu1 %v544_v5 }
  0x9e   :  { %v411_v6 = vpop.f32.mrf.mxu0 }
  0x9f   :  { %v430_v7 = vpop.f32.mrf.mxu1  ;;  %v412_v17 = vadd.f32 %v763_v15, %v411_v6 }
  0xa1   :  { %v431_v22 = vadd.f32 %v430_v7, %v412_v17 }
  0xa6   :  { %v449_v8 = vpop.f32.mrf.mxu2  ;;  %v413_v10 = vpop.f32.mrf.mxu0 }
  0xa7   :  { %v468_v9 = vpop.f32.mrf.mxu3  ;;  %v432_v11 = vpop.f32.mrf.mxu1  ;;  %v450_v24 = vadd.f32 %v449_v8, %v431_v22  ;;  %v414_v27 = vadd.f32 %v763_v15, %v413_v10 }
  0xa9   :  { %v469_v29 = vadd.f32 %v468_v9, %v450_v24  ;;  %v433_v34 = vadd.f32 %v432_v11, %v414_v27 }
  0xae   :  { %v451_v12 = vpop.f32.mrf.mxu2  ;;  %v416_v13 = vpop.f32.mrf.mxu0 }
  0xaf   :  { %v435_v14 = vpop.f32.mrf.mxu1  ;;  %v470_v16 = vpop.f32.mrf.mxu3  ;;  %v417_v18 = vadd.f32 %v763_v15, %v416_v13  ;;  %v452_v38 = vadd.f32 %v451_v12, %v433_v34 }
  0xb1   :  { %v436_v23 = vadd.f32 %v435_v14, %v417_v18  ;;  %v471_v41 = vadd.f32 %v470_v16, %v452_v38 }
  0xb6   :  { %v454_v19 = vpop.f32.mrf.mxu2  ;;  %v418_v20 = vpop.f32.mrf.mxu0 }
  0xb7   :  { %v437_v21 = vpop.f32.mrf.mxu1  ;;  %v455_v25 = vadd.f32 %v454_v19, %v436_v23  ;;  %v473_v26 = vpop.f32.mrf.mxu3  ;;  %v419_v28 = vadd.f32 %v763_v15, %v418_v20 }
  0xb9   :  { %v474_v30 = vadd.f32 %v473_v26, %v455_v25  ;;  %v438_v35 = vadd.f32 %v437_v21, %v419_v28 }
  0xbe   :  { %v456_v31 = vpop.f32.mrf.mxu2  ;;  %v487_v32 = vpop.f32.mrf.mxu0 }
  0xbf   :  { %v492_v33 = vpop.f32.mrf.mxu1  ;;  %v488_v36 = vadd.f32 %v487_v32, %v469_v29  ;;  %v457_v39 = vadd.f32 %v456_v31, %v438_v35  ;;  %v475_v40 = vpop.f32.mrf.mxu3 }
  0xc0   :  { %v493_v37 = vadd.f32 %v492_v33, %v474_v30 }
  0xc1   :  { %497 = vst [vmem:[%s982_s3] sm:$0xff] %v488_v36  ;;  %v476_v42 = vadd.f32 %v475_v40, %v457_v39 }
  0xc2   :  { %499 = vst [vmem:[%s982_s3 + $0x10] sm:$0xff] %v493_v37 }
  0xc6   :  { %v489_v43 = vpop.f32.mrf.mxu0 }
  0xc7   :  { %v494_v44 = vpop.f32.mrf.mxu1  ;;  %v490_v45 = vadd.f32 %v489_v43, %v471_v41 }
  0xc8   :  { %v495_v46 = vadd.f32 %v494_v44, %v476_v42 }
  0xc9   :  { %498 = vst [vmem:[%s982_s3 + $0x8] sm:$0xff] %v490_v45 }
  0xca   :  { %500 = vst [vmem:[%s982_s3 + $0x18] sm:$0xff] %v495_v46 }

</bundles_post_ra>
